<compile_context>
chip_gen: v7x
topology: tpu7x:2x2x1
jax: 0.10.0
libtpu: 0.0.40
codegen_flags: <defaults>
</compile_context>

<pallas_src>
import jax
import jax.numpy as jnp
from jax import lax
from jax.experimental import pallas as pl
from jax.experimental.pallas import tpu as pltpu


def _leaky_relu(x, slope=0.2):
    return jnp.where(x >= 0, x, slope * x)


def _zero_pad_2d(x, row_pad, lane_pad):
    """Zero-pad a 2-D (rows, lanes) value via concatenation (in-register)."""
    rows, lanes = x.shape
    zl = jnp.zeros((rows, lane_pad), x.dtype)
    x = jnp.concatenate([zl, x, zl], axis=1)
    zr = jnp.zeros((row_pad, lanes + 2 * lane_pad), x.dtype)
    return jnp.concatenate([zr, x, zr], axis=0)


def cab_kernel(x_ref, w1t_ref, b1_ref, w2t_ref, b2_ref,
               w3t_ref, b3_ref, w4_ref, b4_ref, out_ref):
    _, H, WC = x_ref.shape
    C = w3t_ref.shape[1]
    W = WC // C
    Cm = w1t_ref.shape[2] // W

    # ---- conv1: 3x3, C -> Cm. x is (H, W*C); pad 1 row top/bottom, C lanes L/R.
    xp = _zero_pad_2d(x_ref[0], 1, C)                              # (H+2, (W+2)*C)
    acc1 = jnp.dot(xp[0:H, :], w1t_ref[0], preferred_element_type=jnp.float32)
    acc1 = acc1 + jnp.dot(xp[1:H + 1, :], w1t_ref[1], preferred_element_type=jnp.float32)
    acc1 = acc1 + jnp.dot(xp[2:H + 2, :], w1t_ref[2], preferred_element_type=jnp.float32)
    h1 = _leaky_relu(acc1 + b1_ref[...])                           # (H, W*Cm)

    # ---- conv2: 3x3, Cm -> C. Pad the intermediate in-register (no VMEM scratch).
    h1p = _zero_pad_2d(h1, 1, Cm)                                  # (H+2, (W+2)*Cm)
    acc2 = jnp.dot(h1p[0:H, :], w2t_ref[0], preferred_element_type=jnp.float32)
    acc2 = acc2 + jnp.dot(h1p[1:H + 1, :], w2t_ref[1], preferred_element_type=jnp.float32)
    acc2 = acc2 + jnp.dot(h1p[2:H + 2, :], w2t_ref[2], preferred_element_type=jnp.float32)
    feat = acc2 + b2_ref[...]                                      # (H, W*C), lane-dense

    # ---- ChannelAttention: GAP -> 1x1 -> LeakyReLU(0.2) -> 1x1 -> sigmoid.
    col = jnp.sum(feat, axis=0, keepdims=True)                     # (1, W*C) sublane reduce
    pooled = jnp.zeros((1, C), jnp.float32)
    for w in range(W):                                             # fold the W channel groups
        pooled = pooled + col[:, w * C:(w + 1) * C]
    pooled = pooled * (1.0 / (H * W))                              # (1, C) global average

    # 1x1 "convs" on the VPU/XLU (tiny; avoids MXU fill/drain on the serial tail).
    a = jnp.sum(pooled * w3t_ref[...], axis=-1, keepdims=True) + b3_ref[...]   # (Cs, 1)
    a = _leaky_relu(a)
    s = jnp.sum(a * w4_ref[...], axis=0, keepdims=True) + b4_ref[...]          # (1, C)
    scale = jax.nn.sigmoid(s)                                      # (1, C)
    scale_row = jnp.concatenate([scale] * W, axis=-1)              # (1, W*C)

    out_ref[...] = (feat * scale_row)[None].astype(out_ref.dtype)


def _block_toeplitz(w_hwio, out_w):
    """Fold the horizontal taps + input channels of an HWIO conv kernel into the
    matmul K dim.  Returns (kh, (out_w+kw-1)*Ci, out_w*Co): for each vertical tap
    dy, one (rows, Wp*Ci) x (Wp*Ci, W*Co) matmul reproduces the SAME-padded conv."""
    kh, kw, Ci, Co = w_hwio.shape
    wp = out_w + kw - 1
    u = jnp.arange(wp)[:, None]                     # padded input column
    w = jnp.arange(out_w)[None, :]                  # output column
    dx = u - w                                      # horizontal tap index
    valid = (dx >= 0) & (dx < kw)
    taps = w_hwio[:, jnp.clip(dx, 0, kw - 1)]       # (kh, wp, out_w, Ci, Co)
    taps = jnp.where(valid[None, :, :, None, None], taps, 0.0)
    taps = jnp.transpose(taps, (0, 1, 3, 2, 4))     # (kh, wp, Ci, out_w, Co)
    return taps.reshape(kh, wp * Ci, out_w * Co)


def cab_forward(x_nchw, params):
    """CAB forward. x_nchw: (N, C, H, W) float32. Returns (N, C, H, W)."""
    w1, b1, w2, b2, w3, b3, w4, b4 = params
    N, C, H, W = x_nchw.shape
    Cm = w1.shape[3]
    Cs = w3.shape[1]
    Wp = W + 2

    # NHWC with W and C folded onto the lane axis (W*C lanes -> dense vld/vst/DMA).
    xf = jnp.transpose(x_nchw, (0, 2, 3, 1)).reshape(N, H, W * C)

    w1t = _block_toeplitz(w1, W)                    # (3, Wp*C,  W*Cm)
    w2t = _block_toeplitz(w2, W)                    # (3, Wp*Cm, W*C)
    b1r = jnp.tile(b1.reshape(1, Cm), (1, W))       # (1, W*Cm)
    b2r = jnp.tile(b2.reshape(1, C), (1, W))        # (1, W*C)
    w3t = jnp.transpose(w3)                         # (Cs, C)
    b3t = jnp.transpose(b3.reshape(1, Cs))          # (Cs, 1)
    b4r = b4.reshape(1, C)

    grid_spec = pltpu.PrefetchScalarGridSpec(
        num_scalar_prefetch=0,
        grid=(N,),
        in_specs=[
            pl.BlockSpec((1, H, W * C), lambda b: (b, 0, 0)),          # x (lane-dense)
            pl.BlockSpec((3, Wp * C, W * Cm), lambda b: (0, 0, 0)),    # conv1 Toeplitz
            pl.BlockSpec((1, W * Cm), lambda b: (0, 0)),               # conv1 bias row
            pl.BlockSpec((3, Wp * Cm, W * C), lambda b: (0, 0, 0)),    # conv2 Toeplitz
            pl.BlockSpec((1, W * C), lambda b: (0, 0)),                # conv2 bias row
            pl.BlockSpec((Cs, C), lambda b: (0, 0)),                   # attn w3^T
            pl.BlockSpec((Cs, 1), lambda b: (0, 0)),                   # attn b3^T
            pl.BlockSpec((Cs, C), lambda b: (0, 0)),                   # attn w4
            pl.BlockSpec((1, C), lambda b: (0, 0)),                    # attn b4
        ],
        out_specs=pl.BlockSpec((1, H, W * C), lambda b: (b, 0, 0)),
    )
    out_flat = pl.pallas_call(
        cab_kernel,
        out_shape=jax.ShapeDtypeStruct((N, H, W * C), x_nchw.dtype),
        grid_spec=grid_spec,
        compiler_params=pltpu.CompilerParams(
            dimension_semantics=("parallel",)),     # v7x: batch across both TCs
    )(xf, w1t, b1r, w2t, b2r, w3t, b3t, w4, b4r)

    return jnp.transpose(out_flat.reshape(N, H, W, C), (0, 3, 1, 2))


def cab_reference(x_nchw, params):
    """Pure-JAX reference (matches the PyTorch CAB forward semantics)."""
    w1, b1, w2, b2, w3, b3, w4, b4 = params
    x = jnp.transpose(x_nchw, (0, 2, 3, 1))
    dn = ('NHWC', 'HWIO', 'NHWC')
    h = lax.conv_general_dilated(x, w1, (1, 1), 'SAME', dimension_numbers=dn) + b1
    h = jnp.where(h >= 0, h, 0.2 * h)
    f = lax.conv_general_dilated(h, w2, (1, 1), 'SAME', dimension_numbers=dn) + b2
    pooled = jnp.mean(f, axis=(1, 2))                      # (N, C)
    a = pooled @ w3 + b3
    a = jnp.where(a >= 0, a, 0.2 * a)
    a = a @ w4 + b4
    scale = jax.nn.sigmoid(a)[:, None, None, :]
    out = f * scale
    return jnp.transpose(out, (0, 3, 1, 2))


if __name__ == "__main__":
    # Shapes implied by CAB(num_feat, compress_ratio=16, squeeze_factor=32):
    # num_feat must be divisible by both, so use C=64 -> mid=4, squeeze=2.
    N, C, H, W = 2, 64, 16, 16
    compress_ratio, squeeze_factor = 16, 32
    Cm = C // compress_ratio   # 4
    Cs = C // squeeze_factor   # 2

    key = jax.random.PRNGKey(0)
    ks = jax.random.split(key, 9)
    x = jax.random.normal(ks[0], (N, C, H, W), jnp.float32)

    # Deterministic synthetic parameters (HWIO for 3x3 convs, (in,out) for 1x1).
    w1 = jax.random.normal(ks[1], (3, 3, C, Cm), jnp.float32) * 0.1
    b1 = jax.random.normal(ks[2], (1, Cm), jnp.float32) * 0.1
    w2 = jax.random.normal(ks[3], (3, 3, Cm, C), jnp.float32) * 0.1
    b2 = jax.random.normal(ks[4], (1, C), jnp.float32) * 0.1
    w3 = jax.random.normal(ks[5], (C, Cs), jnp.float32) * 0.1
    b3 = jax.random.normal(ks[6], (1, Cs), jnp.float32) * 0.1
    w4 = jax.random.normal(ks[7], (Cs, C), jnp.float32) * 0.1
    b4 = jax.random.normal(ks[8], (1, C), jnp.float32) * 0.1
    params = (w1, b1, w2, b2, w3, b3, w4, b4)

    out = jax.block_until_ready(jax.jit(cab_forward)(x, params))

    ref = cab_reference(x, params)
    assert out.shape == (N, C, H, W), out.shape
    max_err = float(jnp.max(jnp.abs(out - ref)))
    assert jnp.allclose(out, ref, atol=1e-4, rtol=1e-4), max_err
    print("KERNEL_OK")
</pallas_src>

<mosaic_0001>
module attributes {stable_mosaic.version = 11 : i64} {
  func.func @cab_kernel(%arg0: i32, %arg1: memref<1x16x1024xf32, #tpu.memory_space<vmem>>, %arg2: memref<3x1152x64xf32, #tpu.memory_space<vmem>>, %arg3: memref<1x64xf32, #tpu.memory_space<vmem>>, %arg4: memref<3x72x1024xf32, #tpu.memory_space<vmem>>, %arg5: memref<1x1024xf32, #tpu.memory_space<vmem>>, %arg6: memref<2x64xf32, #tpu.memory_space<vmem>>, %arg7: memref<2x1xf32, #tpu.memory_space<vmem>>, %arg8: memref<2x64xf32, #tpu.memory_space<vmem>>, %arg9: memref<1x64xf32, #tpu.memory_space<vmem>>, %arg10: memref<1x16x1024xf32, #tpu.memory_space<vmem>>) attributes {dimension_semantics = [#tpu.dimension_semantics<parallel>], iteration_bounds = array<i64: 2>, scalar_prefetch = 0 : i64, scratch_operands = 0 : i64, tpu.core_type = #tpu.core_type<tc>, window_params = [{transform_indices = @transform_0, window_bounds = array<i64: 1, 16, 1024>}, {pipeline_mode = #tpu.pipeline_mode<synchronous>, transform_indices = @transform_1, window_bounds = array<i64: 3, 1152, 64>}, {pipeline_mode = #tpu.pipeline_mode<synchronous>, transform_indices = @transform_2, window_bounds = array<i64: 1, 64>}, {pipeline_mode = #tpu.pipeline_mode<synchronous>, transform_indices = @transform_3, window_bounds = array<i64: 3, 72, 1024>}, {pipeline_mode = #tpu.pipeline_mode<synchronous>, transform_indices = @transform_4, window_bounds = array<i64: 1, 1024>}, {pipeline_mode = #tpu.pipeline_mode<synchronous>, transform_indices = @transform_5, window_bounds = array<i64: 2, 64>}, {pipeline_mode = #tpu.pipeline_mode<synchronous>, transform_indices = @transform_6, window_bounds = array<i64: 2, 1>}, {pipeline_mode = #tpu.pipeline_mode<synchronous>, transform_indices = @transform_7, window_bounds = array<i64: 2, 64>}, {pipeline_mode = #tpu.pipeline_mode<synchronous>, transform_indices = @transform_8, window_bounds = array<i64: 1, 64>}, {transform_indices = @transform_9, window_bounds = array<i64: 1, 16, 1024>}]} {
    %c0 = arith.constant 0 : index
    %c0_0 = arith.constant 0 : index
    %c0_1 = arith.constant 0 : index
    %0 = vector.load %arg1[%c0, %c0_0, %c0_1] : memref<1x16x1024xf32, #tpu.memory_space<vmem>>, vector<1x16x1024xf32>
    %1 = vector.shape_cast %0 : vector<1x16x1024xf32> to vector<16x1024xf32>
    %cst = arith.constant 0.000000e+00 : f32
    %2 = vector.broadcast %cst : f32 to vector<16x64xf32>
    %3 = tpu.concatenate %2, %1, %2 in 1 : vector<16x64xf32>, vector<16x1024xf32>, vector<16x64xf32> -> vector<16x1152xf32>
    %cst_2 = arith.constant 0.000000e+00 : f32
    %4 = vector.broadcast %cst_2 : f32 to vector<1x1152xf32>
    %5 = tpu.concatenate %4, %3, %4 in 0 : vector<1x1152xf32>, vector<16x1152xf32>, vector<1x1152xf32> -> vector<18x1152xf32>
    %6 = vector.extract_strided_slice %5 {offsets = [0, 0], sizes = [16, 1152], strides = [1, 1]} : vector<18x1152xf32> to vector<16x1152xf32>
    %c0_3 = arith.constant 0 : index
    %c0_4 = arith.constant 0 : index
    %c0_5 = arith.constant 0 : index
    %7 = vector.load %arg2[%c0_3, %c0_4, %c0_5] : memref<3x1152x64xf32, #tpu.memory_space<vmem>>, vector<1x1152x64xf32>
    %8 = vector.shape_cast %7 : vector<1x1152x64xf32> to vector<1152x64xf32>
    %cst_6 = arith.constant dense<0.000000e+00> : vector<16x64xf32>
    %9 = tpu.matmul %6, %8, %cst_6 {dimension_numbers = #tpu.dot_dimension_numbers<[1], [0], [0], [1], [0, 0, 1, 1], [], []>} : vector<16x1152xf32>, vector<1152x64xf32>, vector<16x64xf32> -> vector<16x64xf32>
    %10 = vector.extract_strided_slice %5 {offsets = [1, 0], sizes = [16, 1152], strides = [1, 1]} : vector<18x1152xf32> to vector<16x1152xf32>
    %c1 = arith.constant 1 : index
    %c0_7 = arith.constant 0 : index
    %c0_8 = arith.constant 0 : index
    %11 = vector.load %arg2[%c1, %c0_7, %c0_8] : memref<3x1152x64xf32, #tpu.memory_space<vmem>>, vector<1x1152x64xf32>
    %12 = vector.shape_cast %11 : vector<1x1152x64xf32> to vector<1152x64xf32>
    %cst_9 = arith.constant dense<0.000000e+00> : vector<16x64xf32>
    %13 = tpu.matmul %10, %12, %cst_9 {dimension_numbers = #tpu.dot_dimension_numbers<[1], [0], [0], [1], [0, 0, 1, 1], [], []>} : vector<16x1152xf32>, vector<1152x64xf32>, vector<16x64xf32> -> vector<16x64xf32>
    %14 = arith.addf %9, %13 : vector<16x64xf32>
    %15 = vector.extract_strided_slice %5 {offsets = [2, 0], sizes = [16, 1152], strides = [1, 1]} : vector<18x1152xf32> to vector<16x1152xf32>
    %c2 = arith.constant 2 : index
    %c0_10 = arith.constant 0 : index
    %c0_11 = arith.constant 0 : index
    %16 = vector.load %arg2[%c2, %c0_10, %c0_11] : memref<3x1152x64xf32, #tpu.memory_space<vmem>>, vector<1x1152x64xf32>
    %17 = vector.shape_cast %16 : vector<1x1152x64xf32> to vector<1152x64xf32>
    %cst_12 = arith.constant dense<0.000000e+00> : vector<16x64xf32>
    %18 = tpu.matmul %15, %17, %cst_12 {dimension_numbers = #tpu.dot_dimension_numbers<[1], [0], [0], [1], [0, 0, 1, 1], [], []>} : vector<16x1152xf32>, vector<1152x64xf32>, vector<16x64xf32> -> vector<16x64xf32>
    %19 = arith.addf %14, %18 : vector<16x64xf32>
    %c0_13 = arith.constant 0 : index
    %c0_14 = arith.constant 0 : index
    %20 = vector.load %arg3[%c0_13, %c0_14] : memref<1x64xf32, #tpu.memory_space<vmem>>, vector<1x64xf32>
    %21 = vector.broadcast %20 : vector<1x64xf32> to vector<16x64xf32>
    %22 = arith.addf %19, %21 : vector<16x64xf32>
    %cst_15 = arith.constant 0.000000e+00 : f32
    %23 = vector.broadcast %cst_15 : f32 to vector<16x64xf32>
    %24 = arith.cmpf oge, %22, %23 : vector<16x64xf32>
    %cst_16 = arith.constant 2.000000e-01 : f32
    %25 = vector.broadcast %cst_16 : f32 to vector<16x64xf32>
    %26 = arith.mulf %25, %22 : vector<16x64xf32>
    %27 = arith.select %24, %22, %26 : vector<16x64xi1>, vector<16x64xf32>
    %cst_17 = arith.constant 0.000000e+00 : f32
    %28 = vector.broadcast %cst_17 : f32 to vector<16x4xf32>
    %29 = tpu.concatenate %28, %27, %28 in 1 : vector<16x4xf32>, vector<16x64xf32>, vector<16x4xf32> -> vector<16x72xf32>
    %cst_18 = arith.constant 0.000000e+00 : f32
    %30 = vector.broadcast %cst_18 : f32 to vector<1x72xf32>
    %31 = tpu.concatenate %30, %29, %30 in 0 : vector<1x72xf32>, vector<16x72xf32>, vector<1x72xf32> -> vector<18x72xf32>
    %32 = vector.extract_strided_slice %31 {offsets = [0, 0], sizes = [16, 72], strides = [1, 1]} : vector<18x72xf32> to vector<16x72xf32>
    %c0_19 = arith.constant 0 : index
    %c0_20 = arith.constant 0 : index
    %c0_21 = arith.constant 0 : index
    %33 = vector.load %arg4[%c0_19, %c0_20, %c0_21] : memref<3x72x1024xf32, #tpu.memory_space<vmem>>, vector<1x72x1024xf32>
    %34 = vector.shape_cast %33 : vector<1x72x1024xf32> to vector<72x1024xf32>
    %cst_22 = arith.constant dense<0.000000e+00> : vector<16x1024xf32>
    %35 = tpu.matmul %32, %34, %cst_22 {dimension_numbers = #tpu.dot_dimension_numbers<[1], [0], [0], [1], [0, 0, 1, 1], [], []>} : vector<16x72xf32>, vector<72x1024xf32>, vector<16x1024xf32> -> vector<16x1024xf32>
    %36 = vector.extract_strided_slice %31 {offsets = [1, 0], sizes = [16, 72], strides = [1, 1]} : vector<18x72xf32> to vector<16x72xf32>
    %c1_23 = arith.constant 1 : index
    %c0_24 = arith.constant 0 : index
    %c0_25 = arith.constant 0 : index
    %37 = vector.load %arg4[%c1_23, %c0_24, %c0_25] : memref<3x72x1024xf32, #tpu.memory_space<vmem>>, vector<1x72x1024xf32>
    %38 = vector.shape_cast %37 : vector<1x72x1024xf32> to vector<72x1024xf32>
    %cst_26 = arith.constant dense<0.000000e+00> : vector<16x1024xf32>
    %39 = tpu.matmul %36, %38, %cst_26 {dimension_numbers = #tpu.dot_dimension_numbers<[1], [0], [0], [1], [0, 0, 1, 1], [], []>} : vector<16x72xf32>, vector<72x1024xf32>, vector<16x1024xf32> -> vector<16x1024xf32>
    %40 = arith.addf %35, %39 : vector<16x1024xf32>
    %41 = vector.extract_strided_slice %31 {offsets = [2, 0], sizes = [16, 72], strides = [1, 1]} : vector<18x72xf32> to vector<16x72xf32>
    %c2_27 = arith.constant 2 : index
    %c0_28 = arith.constant 0 : index
    %c0_29 = arith.constant 0 : index
    %42 = vector.load %arg4[%c2_27, %c0_28, %c0_29] : memref<3x72x1024xf32, #tpu.memory_space<vmem>>, vector<1x72x1024xf32>
    %43 = vector.shape_cast %42 : vector<1x72x1024xf32> to vector<72x1024xf32>
    %cst_30 = arith.constant dense<0.000000e+00> : vector<16x1024xf32>
    %44 = tpu.matmul %41, %43, %cst_30 {dimension_numbers = #tpu.dot_dimension_numbers<[1], [0], [0], [1], [0, 0, 1, 1], [], []>} : vector<16x72xf32>, vector<72x1024xf32>, vector<16x1024xf32> -> vector<16x1024xf32>
    %45 = arith.addf %40, %44 : vector<16x1024xf32>
    %c0_31 = arith.constant 0 : index
    %c0_32 = arith.constant 0 : index
    %46 = vector.load %arg5[%c0_31, %c0_32] : memref<1x1024xf32, #tpu.memory_space<vmem>>, vector<1x1024xf32>
    %47 = vector.broadcast %46 : vector<1x1024xf32> to vector<16x1024xf32>
    %48 = arith.addf %45, %47 : vector<16x1024xf32>
    %cst_33 = arith.constant dense<0.000000e+00> : vector<1024xf32>
    %49 = vector.multi_reduction <add>, %48, %cst_33 [0] : vector<16x1024xf32> to vector<1024xf32>
    %50 = vector.shape_cast %49 : vector<1024xf32> to vector<1x1024xf32>
    %cst_34 = arith.constant 0.000000e+00 : f32
    %51 = vector.broadcast %cst_34 : f32 to vector<1x64xf32>
    %52 = vector.extract_strided_slice %50 {offsets = [0, 0], sizes = [1, 64], strides = [1, 1]} : vector<1x1024xf32> to vector<1x64xf32>
    %53 = arith.addf %51, %52 : vector<1x64xf32>
    %54 = vector.extract_strided_slice %50 {offsets = [0, 64], sizes = [1, 64], strides = [1, 1]} : vector<1x1024xf32> to vector<1x64xf32>
    %55 = arith.addf %53, %54 : vector<1x64xf32>
    %56 = vector.extract_strided_slice %50 {offsets = [0, 128], sizes = [1, 64], strides = [1, 1]} : vector<1x1024xf32> to vector<1x64xf32>
    %57 = arith.addf %55, %56 : vector<1x64xf32>
    %58 = vector.extract_strided_slice %50 {offsets = [0, 192], sizes = [1, 64], strides = [1, 1]} : vector<1x1024xf32> to vector<1x64xf32>
    %59 = arith.addf %57, %58 : vector<1x64xf32>
    %60 = vector.extract_strided_slice %50 {offsets = [0, 256], sizes = [1, 64], strides = [1, 1]} : vector<1x1024xf32> to vector<1x64xf32>
    %61 = arith.addf %59, %60 : vector<1x64xf32>
    %62 = vector.extract_strided_slice %50 {offsets = [0, 320], sizes = [1, 64], strides = [1, 1]} : vector<1x1024xf32> to vector<1x64xf32>
    %63 = arith.addf %61, %62 : vector<1x64xf32>
    %64 = vector.extract_strided_slice %50 {offsets = [0, 384], sizes = [1, 64], strides = [1, 1]} : vector<1x1024xf32> to vector<1x64xf32>
    %65 = arith.addf %63, %64 : vector<1x64xf32>
    %66 = vector.extract_strided_slice %50 {offsets = [0, 448], sizes = [1, 64], strides = [1, 1]} : vector<1x1024xf32> to vector<1x64xf32>
    %67 = arith.addf %65, %66 : vector<1x64xf32>
    %68 = vector.extract_strided_slice %50 {offsets = [0, 512], sizes = [1, 64], strides = [1, 1]} : vector<1x1024xf32> to vector<1x64xf32>
    %69 = arith.addf %67, %68 : vector<1x64xf32>
    %70 = vector.extract_strided_slice %50 {offsets = [0, 576], sizes = [1, 64], strides = [1, 1]} : vector<1x1024xf32> to vector<1x64xf32>
    %71 = arith.addf %69, %70 : vector<1x64xf32>
    %72 = vector.extract_strided_slice %50 {offsets = [0, 640], sizes = [1, 64], strides = [1, 1]} : vector<1x1024xf32> to vector<1x64xf32>
    %73 = arith.addf %71, %72 : vector<1x64xf32>
    %74 = vector.extract_strided_slice %50 {offsets = [0, 704], sizes = [1, 64], strides = [1, 1]} : vector<1x1024xf32> to vector<1x64xf32>
    %75 = arith.addf %73, %74 : vector<1x64xf32>
    %76 = vector.extract_strided_slice %50 {offsets = [0, 768], sizes = [1, 64], strides = [1, 1]} : vector<1x1024xf32> to vector<1x64xf32>
    %77 = arith.addf %75, %76 : vector<1x64xf32>
    %78 = vector.extract_strided_slice %50 {offsets = [0, 832], sizes = [1, 64], strides = [1, 1]} : vector<1x1024xf32> to vector<1x64xf32>
    %79 = arith.addf %77, %78 : vector<1x64xf32>
    %80 = vector.extract_strided_slice %50 {offsets = [0, 896], sizes = [1, 64], strides = [1, 1]} : vector<1x1024xf32> to vector<1x64xf32>
    %81 = arith.addf %79, %80 : vector<1x64xf32>
    %82 = vector.extract_strided_slice %50 {offsets = [0, 960], sizes = [1, 64], strides = [1, 1]} : vector<1x1024xf32> to vector<1x64xf32>
    %83 = arith.addf %81, %82 : vector<1x64xf32>
    %cst_35 = arith.constant 3.906250e-03 : f32
    %84 = vector.broadcast %cst_35 : f32 to vector<1x64xf32>
    %85 = arith.mulf %83, %84 : vector<1x64xf32>
    %c0_36 = arith.constant 0 : index
    %c0_37 = arith.constant 0 : index
    %86 = vector.load %arg6[%c0_36, %c0_37] : memref<2x64xf32, #tpu.memory_space<vmem>>, vector<2x64xf32>
    %87 = vector.broadcast %85 : vector<1x64xf32> to vector<2x64xf32>
    %88 = arith.mulf %87, %86 : vector<2x64xf32>
    %cst_38 = arith.constant dense<0.000000e+00> : vector<2xf32>
    %89 = vector.multi_reduction <add>, %88, %cst_38 [1] : vector<2x64xf32> to vector<2xf32>
    %90 = vector.shape_cast %89 : vector<2xf32> to vector<2x1xf32>
    %c0_39 = arith.constant 0 : index
    %c0_40 = arith.constant 0 : index
    %91 = vector.load %arg7[%c0_39, %c0_40] : memref<2x1xf32, #tpu.memory_space<vmem>>, vector<2x1xf32>
    %92 = arith.addf %90, %91 : vector<2x1xf32>
    %cst_41 = arith.constant 0.000000e+00 : f32
    %93 = vector.broadcast %cst_41 : f32 to vector<2x1xf32>
    %94 = arith.cmpf oge, %92, %93 : vector<2x1xf32>
    %cst_42 = arith.constant 2.000000e-01 : f32
    %95 = vector.broadcast %cst_42 : f32 to vector<2x1xf32>
    %96 = arith.mulf %95, %92 : vector<2x1xf32>
    %97 = arith.select %94, %92, %96 : vector<2x1xi1>, vector<2x1xf32>
    %c0_43 = arith.constant 0 : index
    %c0_44 = arith.constant 0 : index
    %98 = vector.load %arg8[%c0_43, %c0_44] : memref<2x64xf32, #tpu.memory_space<vmem>>, vector<2x64xf32>
    %99 = vector.broadcast %97 : vector<2x1xf32> to vector<2x64xf32>
    %100 = arith.mulf %99, %98 : vector<2x64xf32>
    %cst_45 = arith.constant dense<0.000000e+00> : vector<64xf32>
    %101 = vector.multi_reduction <add>, %100, %cst_45 [0] : vector<2x64xf32> to vector<64xf32>
    %102 = vector.shape_cast %101 : vector<64xf32> to vector<1x64xf32>
    %c0_46 = arith.constant 0 : index
    %c0_47 = arith.constant 0 : index
    %103 = vector.load %arg9[%c0_46, %c0_47] : memref<1x64xf32, #tpu.memory_space<vmem>>, vector<1x64xf32>
    %104 = arith.addf %102, %103 : vector<1x64xf32>
    %105 = arith.negf %104 : vector<1x64xf32>
    %106 = math.exp %105 : vector<1x64xf32>
    %cst_48 = arith.constant 1.000000e+00 : f32
    %107 = vector.broadcast %cst_48 : f32 to vector<1x64xf32>
    %108 = arith.addf %107, %106 : vector<1x64xf32>
    %109 = arith.divf %107, %108 : vector<1x64xf32>
    %110 = tpu.concatenate %109, %109, %109, %109, %109, %109, %109, %109, %109, %109, %109, %109, %109, %109, %109, %109 in 1 : vector<1x64xf32>, vector<1x64xf32>, vector<1x64xf32>, vector<1x64xf32>, vector<1x64xf32>, vector<1x64xf32>, vector<1x64xf32>, vector<1x64xf32>, vector<1x64xf32>, vector<1x64xf32>, vector<1x64xf32>, vector<1x64xf32>, vector<1x64xf32>, vector<1x64xf32>, vector<1x64xf32>, vector<1x64xf32> -> vector<1x1024xf32>
    %111 = vector.broadcast %110 : vector<1x1024xf32> to vector<16x1024xf32>
    %112 = arith.mulf %48, %111 : vector<16x1024xf32>
    %113 = vector.shape_cast %112 : vector<16x1024xf32> to vector<1x16x1024xf32>
    %c0_49 = arith.constant 0 : index
    %c0_50 = arith.constant 0 : index
    %c0_51 = arith.constant 0 : index
    %114 = vector.load %arg10[%c0_49, %c0_50, %c0_51] : memref<1x16x1024xf32, #tpu.memory_space<vmem>>, vector<1x16x1024xf32>
    tpu.vector_store %arg10[%c0_49, %c0_50, %c0_51], %113 {strides = array<i32>} : memref<1x16x1024xf32, #tpu.memory_space<vmem>>, vector<1x16x1024xf32>,
    return
  }
  func.func @transform_0(%arg0: i32) -> (i32, i32, i32) {
    %c0_i32 = arith.constant 0 : i32
    %c0_i32_0 = arith.constant 0 : i32
    %c0_i32_1 = arith.constant 0 : i32
    return %arg0, %c0_i32, %c0_i32_0 : i32, i32, i32
  }
  func.func @transform_1(%arg0: i32) -> (i32, i32, i32) {
    %c0_i32 = arith.constant 0 : i32
    %c0_i32_0 = arith.constant 0 : i32
    %c0_i32_1 = arith.constant 0 : i32
    %c0_i32_2 = arith.constant 0 : i32
    return %c0_i32, %c0_i32_0, %c0_i32_1 : i32, i32, i32
  }
  func.func @transform_2(%arg0: i32) -> (i32, i32) {
    %c0_i32 = arith.constant 0 : i32
    %c0_i32_0 = arith.constant 0 : i32
    %c0_i32_1 = arith.constant 0 : i32
    return %c0_i32, %c0_i32_0 : i32, i32
  }
  func.func @transform_3(%arg0: i32) -> (i32, i32, i32) {
    %c0_i32 = arith.constant 0 : i32
    %c0_i32_0 = arith.constant 0 : i32
    %c0_i32_1 = arith.constant 0 : i32
    %c0_i32_2 = arith.constant 0 : i32
    return %c0_i32, %c0_i32_0, %c0_i32_1 : i32, i32, i32
  }
  func.func @transform_4(%arg0: i32) -> (i32, i32) {
    %c0_i32 = arith.constant 0 : i32
    %c0_i32_0 = arith.constant 0 : i32
    %c0_i32_1 = arith.constant 0 : i32
    return %c0_i32, %c0_i32_0 : i32, i32
  }
  func.func @transform_5(%arg0: i32) -> (i32, i32) {
    %c0_i32 = arith.constant 0 : i32
    %c0_i32_0 = arith.constant 0 : i32
    %c0_i32_1 = arith.constant 0 : i32
    return %c0_i32, %c0_i32_0 : i32, i32
  }
  func.func @transform_6(%arg0: i32) -> (i32, i32) {
    %c0_i32 = arith.constant 0 : i32
    %c0_i32_0 = arith.constant 0 : i32
    %c0_i32_1 = arith.constant 0 : i32
    return %c0_i32, %c0_i32_0 : i32, i32
  }
  func.func @transform_7(%arg0: i32) -> (i32, i32) {
    %c0_i32 = arith.constant 0 : i32
    %c0_i32_0 = arith.constant 0 : i32
    %c0_i32_1 = arith.constant 0 : i32
    return %c0_i32, %c0_i32_0 : i32, i32
  }
  func.func @transform_8(%arg0: i32) -> (i32, i32) {
    %c0_i32 = arith.constant 0 : i32
    %c0_i32_0 = arith.constant 0 : i32
    %c0_i32_1 = arith.constant 0 : i32
    return %c0_i32, %c0_i32_0 : i32, i32
  }
  func.func @transform_9(%arg0: i32) -> (i32, i32, i32) {
    %c0_i32 = arith.constant 0 : i32
    %c0_i32_0 = arith.constant 0 : i32
    %c0_i32_1 = arith.constant 0 : i32
    return %arg0, %c0_i32, %c0_i32_0 : i32, i32, i32
  }
}

</mosaic_0001>

<bundles_post_ra>
// kernel: cab_forward.1
= control target key start
LH: loop header
LB: loop body
LE: loop exit
PB: predicated region body
PF: predicated region fallthrough
CT: control target
= control target key end

     0   :  { %s5645_s30 = smov 0   ;;  %s8316_s0 = inlined_call_operand.vmem [shape: f32[2,16,1024], index: 0, kind: input, shape index: {}]   ;;  %s8317_s1 = inlined_call_operand.vmem [shape: f32[3,1152,64], index: 1, kind: input, shape index: {}]   ;;  %s8318_s2 = inlined_call_operand.vmem [shape: f32[1,64], index: 2, kind: input, shape index: {}]   ;;  %s8319_s3 = inlined_call_operand.vmem [shape: f32[3,72,1024], index: 3, kind: input, shape index: {}]   ;;  %s8320_s4 = inlined_call_operand.vmem [shape: f32[1,1024], index: 4, kind: input, shape index: {}]   ;;  %s8321_s5 = inlined_call_operand.vmem [shape: f32[2,64], index: 5, kind: input, shape index: {}]   ;;  %s8322_s6 = inlined_call_operand.vmem [shape: f32[2,1], index: 6, kind: input, shape index: {}]   ;;  %s8323_s7 = inlined_call_operand.vmem [shape: f32[2,64], index: 7, kind: input, shape index: {}]   ;;  %s8324_s8 = inlined_call_operand.vmem [shape: f32[1,64], index: 8, kind: input, shape index: {}]   ;;  %s8325_s9 = inlined_call_operand.vmem [shape: f32[2,16,1024], index: 9, kind: output, shape index: {}]  }
   0x1 LB: > { %s3721_s10 = sadd.s32 4294967295, %s5589_s30   ;;  %p3725_p0 = scmp.ge.s32.totalorder %s5589_s30, 1  ;;  %s5589_s30 = sphi %s5645_s30, %s19_s30  }
   0x2   : > { %p287_p1 = scmp.lt.s32.totalorder %s5589_s30, 3 }
   0x4   : > { %p288_p2 = pnand %p3725_p0, %p287_p1 }
   0x5   : > { %p323_p3 = scmp.lt.s32.totalorder (!%p288_p2), %s3721_s10, 1  ;;  %v3746_v0 = vld [vmem:[%s8317_s1 + $0x500] sm:$0xff] (!%p288_p2)  ;;  %v3747_v1 = vld [vmem:[%s8317_s1 + $0x508] sm:$0xff] (!%p288_p2)  ;;  %v3748_v5 = vld [vmem:[%s8317_s1 + $0x510] sm:$0xff] (!%p288_p2)  ;;  %s5591_s24 = smov (!%p288_p2), 64   ;;  %vm397_vm0 = vcmask (!%p288_p2), 523264  }
   0x6   : > { %291 = sbr.rel (%p288_p2) target bundleno = 1697 (0x6a1), region = 56  ;;  %v3730_v2 = vld [vmem:[%s8317_s1 + $0x480] sm:$0xff] (!%p288_p2)  ;;  %v4825_v3 = vpack.c.bf16 (!%p288_p2), %v3747_v1, %v3746_v0  ;;  %v3731_v4 = vld [vmem:[%s8317_s1 + $0x488] sm:$0xff] (!%p288_p2)  ;;  %v3749_v6 = vld [vmem:[%s8317_s1 + $0x518] sm:$0xff] (!%p288_p2)  ;;  %vm424_vm1 = vcmask (!%p288_p2), 1040384   ;;  %vm804_vm2 = vcmask (!%p288_p2), 1046528  }
   0x7   : > { %v4827_v7 = vpack.c.bf16 (!%p288_p2), %v3731_v4, %v3730_v2  ;;  %v4829_v8 = vpack.c.bf16 (!%p288_p2), %v3749_v6, %v3748_v5  ;;  %v3732_v9 = vld [vmem:[%s8317_s1 + $0x490] sm:$0xff] (!%p288_p2)  ;;  %v3733_v10 = vld [vmem:[%s8317_s1 + $0x498] sm:$0xff] (!%p288_p2)  ;;  %v3750_v11 = vld [vmem:[%s8317_s1 + $0x520] sm:$0xff] (!%p288_p2)  ;;  %vm1763_vm3 = vcmask (!%p288_p2), 1045504   ;;  %s5593_s29 = smov (!%p288_p2), 4   ;;  %vm2227_vm7 = vcmask (!%p288_p2), 31744  }
   0x8   : > { %4826 = vmatprep.subr.bf16.mxu0 (!%p288_p2), %v4825_v3  ;;  %v3751_v12 = vld [vmem:[%s8317_s1 + $0x528] sm:$0xff] (!%p288_p2)  ;;  %v4831_v13 = vpack.c.bf16 (!%p288_p2), %v3733_v10, %v3732_v9  ;;  %v3734_v14 = vld [vmem:[%s8317_s1 + $0x4a0] sm:$0xff] (!%p288_p2)  ;;  %v3752_v17 = vld [vmem:[%s8317_s1 + $0x530] sm:$0xff] (!%p288_p2)  ;;  %vm2230_vm8 = vcmask (!%p288_p2), 556032   ;;  %vm2394_vm9 = vcmask (!%p288_p2), 588800   ;;  %vm3594_vm10 = vcmask (!%p288_p2), 517120  }
   0x9   : > { %4828 = vmatpush3.bf16.msra.mxu0 (!%p288_p2), %v4827_v7  ;;  %v4833_v15 = vpack.c.bf16 (!%p288_p2), %v3751_v12, %v3750_v11  ;;  %v3735_v16 = vld [vmem:[%s8317_s1 + $0x4a8] sm:$0xff] (!%p288_p2)  ;;  %v3753_v18 = vld [vmem:[%s8317_s1 + $0x538] sm:$0xff] (!%p288_p2)  ;;  %v3736_v25 = vld [vmem:[%s8317_s1 + $0x4b0] sm:$0xff] (!%p288_p2) }
   0xa   : > { %4830 = vmatprep.subr.bf16.mxu0 (!%p288_p2), %v4829_v8  ;;  %v4835_v24 = vpack.c.bf16 (!%p288_p2), %v3735_v16, %v3734_v14  ;;  %v4837_v26 = vpack.c.bf16 (!%p288_p2), %v3753_v18, %v3752_v17  ;;  %v3737_v27 = vld [vmem:[%s8317_s1 + $0x4b8] sm:$0xff] (!%p288_p2)  ;;  %v3754_v28 = vld [vmem:[%s8317_s1 + $0x540] sm:$0xff] (!%p288_p2)  ;;  %v3755_v29 = vld [vmem:[%s8317_s1 + $0x548] sm:$0xff] (!%p288_p2) }
   0xb   : > { %v4839_v34 = vpack.c.bf16 (!%p288_p2), %v3737_v27, %v3736_v25  ;;  %v3738_v35 = vld [vmem:[%s8317_s1 + $0x4c0] sm:$0xff] (!%p288_p2)  ;;  %v4841_v38 = vpack.c.bf16 (!%p288_p2), %v3755_v29, %v3754_v28  ;;  %v3739_v39 = vld [vmem:[%s8317_s1 + $0x4c8] sm:$0xff] (!%p288_p2)  ;;  %v3756_v40 = vld [vmem:[%s8317_s1 + $0x550] sm:$0xff] (!%p288_p2) }
   0xc   : > { %v3842_v36 = vld [vmem:[%s8317_s1 + $0x800] sm:$0xff] (!%p288_p2)  ;;  %v3843_v41 = vld [vmem:[%s8317_s1 + $0x808] sm:$0xff] (!%p288_p2)  ;;  %v3757_v43 = vld [vmem:[%s8317_s1 + $0x558] sm:$0xff] (!%p288_p2)  ;;  %v4843_v53 = vpack.c.bf16 (!%p288_p2), %v3739_v39, %v3738_v35 }
   0xd   : > { %s8329_s10 = smov (!%p323_p3, %s3721_s10), 1  ;;  %4832 = vmatpush3.bf16.msra.mxu0 %v4831_v13  ;;  %v4921_v44 = vpack.c.bf16 %v3843_v41, %v3842_v36  ;;  %v3826_v45 = vld [vmem:[%s8317_s1 + $0x780] sm:$0xff]  ;;  %v3827_v46 = vld [vmem:[%s8317_s1 + $0x788] sm:$0xff]  ;;  %v3844_v49 = vld [vmem:[%s8317_s1 + $0x810] sm:$0xff]  ;;  %v4845_v57 = vpack.c.bf16 %v3757_v43, %v3756_v40 }
   0xe   : > { %s4208_s12 = sshll.u32 %s8329_s10, 7  ;;  %4834 = vmatprep.subr.bf16.mxu0 %v4833_v15  ;;  %v4923_v48 = vpack.c.bf16 %v3827_v46, %v3826_v45  ;;  %v3845_v50 = vld [vmem:[%s8317_s1 + $0x818] sm:$0xff]  ;;  %v3740_v54 = vld [vmem:[%s8317_s1 + $0x4d0] sm:$0xff]  ;;  %v3758_v59 = vld [vmem:[%s8317_s1 + $0x560] sm:$0xff] }
   0xf   : > { %s5694_s17 = scalar_lea.vmem %s8316_s0, %s4208_s12  ;;  %4922 = vmatprep.subr.bf16.mxu1 %v4921_v44  ;;  %v4925_v55 = vpack.c.bf16 %v3845_v50, %v3844_v49  ;;  %v3828_v56 = vld [vmem:[%s8317_s1 + $0x790] sm:$0xff]  ;;  %v3741_v58 = vld [vmem:[%s8317_s1 + $0x4d8] sm:$0xff]  ;;  %v3759_v61 = vld [vmem:[%s8317_s1 + $0x568] sm:$0xff]  ;;  %s8279_s19 = scalar_lea.vmem %s8325_s9, %s4208_s12 }
  0x10   : > { %v333_v19 = vld [vmem:[%s5694_s17] sm:$0xff]  ;;  %v342_v21 = vld [vmem:[%s5694_s17 + $0x48] sm:$0xff]  ;;  %v335_v30 = vld [vmem:[%s5694_s17 + $0x10] sm:$0xff]  ;;  %4924 = vmatpush3.bf16.msra.mxu1 %v4923_v48  ;;  %v4847_v7 = vpack.c.bf16 %v3741_v58, %v3740_v54  ;;  %v4849_v9 = vpack.c.bf16 %v3759_v61, %v3758_v59 }
  0x11   : > { %v341_v20 = vld [vmem:[%s5694_s17 + $0x40] sm:$0xff]  ;;  %365 = vrot.lane.b32.xlu0 %v333_v19, %s5591_s24  ;;  %v334_v23 = vld [vmem:[%s5694_s17 + $0x8] sm:$0xff]  ;;  %v343_v31 = vld [vmem:[%s5694_s17 + $0x50] sm:$0xff]  ;;  %4836 = vmatpush3.bf16.msra.mxu0 %v4835_v24 }
  0x12   : > { %v5557_v22 = vpack.i.bf16 %v342_v21, %v341_v20  ;;  %v344_v32 = vld [vmem:[%s5694_s17 + $0x58] sm:$0xff]  ;;  %4838 = vmatprep.subr.bf16.mxu0 %v4837_v26  ;;  %v337_v42 = vld [vmem:[%s5694_s17 + $0x20] sm:$0xff]  ;;  %v338_v51 = vld [vmem:[%s5694_s17 + $0x28] sm:$0xff]  ;;  %4926 = vmatprep.subr.bf16.mxu1 %v4925_v55 }
  0x13   : > { %v336_v33 = vld [vmem:[%s5694_s17 + $0x18] sm:$0xff]  ;;  %v5562_v37 = vpack.i.bf16 %v344_v32, %v343_v31  ;;  %v345_v47 = vld [vmem:[%s5694_s17 + $0x60] sm:$0xff]  ;;  %v346_v52 = vld [vmem:[%s5694_s17 + $0x68] sm:$0xff] }
  0x14   : > { %5558 = vrot.lane.b32.xlu1 %v5557_v22, %s5591_s24  ;;  %v3829_v60 = vld [vmem:[%s8317_s1 + $0x798] sm:$0xff]  ;;  %v3846_v63 = vld [vmem:[%s8317_s1 + $0x820] sm:$0xff]  ;;  %v3847_v0 = vld [vmem:[%s8317_s1 + $0x828] sm:$0xff]  ;;  %v5567_v1 = vpack.i.bf16 %v346_v52, %v345_v47 }
  0x15   : > { %367 = vrot.lane.b32.xlu0 %v334_v23, %s5591_s24  ;;  %4840 = vmatpush3.bf16.msra.mxu0 %v4839_v34  ;;  %v4927_v62 = vpack.c.bf16 %v3829_v60, %v3828_v56  ;;  %v4929_v2 = vpack.c.bf16 %v3847_v0, %v3846_v63  ;;  %v3830_v3 = vld [vmem:[%s8317_s1 + $0x7a0] sm:$0xff]  ;;  %v3831_v4 = vld [vmem:[%s8317_s1 + $0x7a8] sm:$0xff]  ;;  %v339_v5 = vld [vmem:[%s5694_s17 + $0x30] sm:$0xff] }
  0x16   : > { %4842 = vmatprep.subr.bf16.mxu0 %v4841_v38  ;;  %v347_v6 = vld [vmem:[%s5694_s17 + $0x70] sm:$0xff]  ;;  %v3742_v10 = vld [vmem:[%s8317_s1 + $0x4e0] sm:$0xff]  ;;  %v3743_v11 = vld [vmem:[%s8317_s1 + $0x4e8] sm:$0xff]  ;;  %v4931_v16 = vpack.c.bf16 %v3831_v4, %v3830_v3 }
  0x17   : > { %v3848_v8 = vld [vmem:[%s8317_s1 + $0x830] sm:$0xff]  ;;  %v3849_v12 = vld [vmem:[%s8317_s1 + $0x838] sm:$0xff]  ;;  %4928 = vmatpush3.bf16.msra.mxu1 %v4927_v62  ;;  %v4851_v21 = vpack.c.bf16 %v3743_v11, %v3742_v10  ;;  %v3850_v22 = vld [vmem:[%s8317_s1 + $0x840] sm:$0xff] }
  0x18   : > { %369 = vrot.lane.b32.xlu1 %v335_v30, %s5591_s24  ;;  %v348_v13 = vld [vmem:[%s5694_s17 + $0x78] sm:$0xff]  ;;  %v3760_v14 = vld [vmem:[%s8317_s1 + $0x570] sm:$0xff]  ;;  %4930 = vmatprep.subr.bf16.mxu1 %v4929_v2  ;;  %v4933_v17 = vpack.c.bf16 %v3849_v12, %v3848_v8  ;;  %v3851_v23 = vld [vmem:[%s8317_s1 + $0x848] sm:$0xff] }
  0x19   : > { %371 = vrot.lane.b32.xlu0 %v336_v33, %s5591_s24  ;;  %4844 = vmatpush3.bf16.msra.mxu0 %v4843_v53  ;;  %v3761_v15 = vld [vmem:[%s8317_s1 + $0x578] sm:$0xff]  ;;  %v3832_v18 = vld [vmem:[%s8317_s1 + $0x7b0] sm:$0xff]  ;;  %v5572_v24 = vpack.i.bf16 %v348_v13, %v347_v6  ;;  %v3778_v28 = vld [vmem:[%s8317_s1 + $0x600] sm:$0xff]  ;;  %v4937_v31 = vpack.c.bf16 %v3851_v23, %v3850_v22 }
  0x1a   : > { %4846 = vmatprep.subr.bf16.mxu0 %v4845_v57  ;;  %v3833_v19 = vld [vmem:[%s8317_s1 + $0x7b8] sm:$0xff]  ;;  %v4853_v25 = vpack.c.bf16 %v3761_v15, %v3760_v14  ;;  %v3744_v26 = vld [vmem:[%s8317_s1 + $0x4f0] sm:$0xff]  ;;  %v3779_v29 = vld [vmem:[%s8317_s1 + $0x608] sm:$0xff] }
  0x1b   : > { %v340_v20 = vld [vmem:[%s5694_s17 + $0x38] sm:$0xff]  ;;  %4932 = vmatpush3.bf16.msra.mxu1 %v4931_v16  ;;  %v4935_v30 = vpack.c.bf16 %v3833_v19, %v3832_v18  ;;  %v3834_v32 = vld [vmem:[%s8317_s1 + $0x7c0] sm:$0xff]  ;;  %v3835_v33 = vld [vmem:[%s8317_s1 + $0x7c8] sm:$0xff] }
  0x1c   : > { %5563 = vrot.lane.b32.xlu1 %v5562_v37, %s5591_s24  ;;  %v3745_v27 = vld [vmem:[%s8317_s1 + $0x4f8] sm:$0xff]  ;;  %4934 = vmatprep.subr.bf16.mxu1 %v4933_v17  ;;  %v3852_v35 = vld [vmem:[%s8317_s1 + $0x850] sm:$0xff]  ;;  %v4857_v37 = vpack.c.bf16 %v3779_v29, %v3778_v28  ;;  %v4939_v38 = vpack.c.bf16 %v3835_v33, %v3834_v32  ;;  %v3855_v43 = vld [vmem:[%s8317_s1 + $0x868] sm:$0xff] }
  0x1d   : > { %373 = vrot.lane.b32.xlu0 %v337_v42, %s5591_s24  ;;  %4848 = vmatpush3.bf16.msra.mxu0 %v4847_v7  ;;  %v4855_v34 = vpack.c.bf16 %v3745_v27, %v3744_v26  ;;  %v3853_v36 = vld [vmem:[%s8317_s1 + $0x858] sm:$0xff]  ;;  %v3836_v40 = vld [vmem:[%s8317_s1 + $0x7d0] sm:$0xff]  ;;  %v3854_v42 = vld [vmem:[%s8317_s1 + $0x860] sm:$0xff] }
  0x1e   : > { %4850 = vmatprep.subr.bf16.mxu0 %v4849_v9  ;;  %v4941_v39 = vpack.c.bf16 %v3853_v36, %v3852_v35  ;;  %v3837_v41 = vld [vmem:[%s8317_s1 + $0x7d8] sm:$0xff]  ;;  %v4945_v45 = vpack.c.bf16 %v3855_v43, %v3854_v42  ;;  %v3838_v46 = vld [vmem:[%s8317_s1 + $0x7e0] sm:$0xff]  ;;  %v3839_v47 = vld [vmem:[%s8317_s1 + $0x7e8] sm:$0xff] }
  0x1f   : > { %4936 = vmatpush3.bf16.msra.mxu1 %v4935_v30  ;;  %v4943_v44 = vpack.c.bf16 %v3837_v41, %v3836_v40  ;;  %v3856_v48 = vld [vmem:[%s8317_s1 + $0x870] sm:$0xff]  ;;  %v3857_v49 = vld [vmem:[%s8317_s1 + $0x878] sm:$0xff]  ;;  %v4947_v50 = vpack.c.bf16 %v3839_v47, %v3838_v46  ;;  %v513_v54 = vld [vmem:[%s8317_s1 + $0x80] sm:$0xff] }
  0x20   : > { %375 = vrot.lane.b32.xlu1 %v338_v51, %s5591_s24  ;;  %4938 = vmatprep.subr.bf16.mxu1 %v4937_v31  ;;  %v4949_v51 = vpack.c.bf16 %v3857_v49, %v3856_v48  ;;  %v3840_v52 = vld [vmem:[%s8317_s1 + $0x7f0] sm:$0xff]  ;;  %v3841_v53 = vld [vmem:[%s8317_s1 + $0x7f8] sm:$0xff]  ;;  %v514_v55 = vld [vmem:[%s8317_s1 + $0x88] sm:$0xff] }
  0x21   : > { %5568 = vrot.lane.b32.xlu0 %v5567_v1, %s5591_s24  ;;  %4852 = vmatpush3.bf16.msra.mxu0 %v4851_v21  ;;  %v4951_v56 = vpack.c.bf16 %v3841_v53, %v3840_v52  ;;  %v4985_v57 = vpack.c.bf16 %v514_v55, %v513_v54  ;;  %v3762_v13 = vld [vmem:[%s8317_s1 + $0x580] sm:$0xff]  ;;  %v3763_v14 = vld [vmem:[%s8317_s1 + $0x588] sm:$0xff]  ;;  %v3780_v19 = vld [vmem:[%s8317_s1 + $0x610] sm:$0xff] }
  0x22   : > { %4854 = vmatprep.subr.bf16.mxu0 %v4853_v25  ;;  %v4859_v28 = vpack.c.bf16 %v3763_v14, %v3762_v13  ;;  %v3765_v35 = vld [vmem:[%s8317_s1 + $0x598] sm:$0xff]  ;;  %v3783_v40 = vld [vmem:[%s8317_s1 + $0x628] sm:$0xff]  ;;  %v3766_v48 = vld [vmem:[%s8317_s1 + $0x5a0] sm:$0xff] }
  0x23   : > { %4940 = vmatpush3.bf16.msra.mxu1 %v4939_v38  ;;  %v3767_v49 = vld [vmem:[%s8317_s1 + $0x5a8] sm:$0xff]  ;;  %v3784_v52 = vld [vmem:[%s8317_s1 + $0x630] sm:$0xff]  ;;  %v3785_v53 = vld [vmem:[%s8317_s1 + $0x638] sm:$0xff] }
  0x24   : > { %377 = vrot.lane.b32.xlu1 %v339_v5, %s5591_s24  ;;  %4942 = vmatprep.subr.bf16.mxu1 %v4941_v39  ;;  %v3782_v39 = vld [vmem:[%s8317_s1 + $0x620] sm:$0xff]  ;;  %v3787_v13 = vld [vmem:[%s8317_s1 + $0x648] sm:$0xff]  ;;  %vm6186_vm4 = vmneg %vm424_vm1 }
  0x25   : > { %379 = vrot.lane.b32.xlu0 %v340_v20, %s5591_s24  ;;  %4856 = vmatpush3.bf16.msra.mxu0 %v4855_v34  ;;  %v3781_v20 = vld [vmem:[%s8317_s1 + $0x618] sm:$0xff]  ;;  %v3764_v34 = vld [vmem:[%s8317_s1 + $0x590] sm:$0xff]  ;;  %v4865_v46 = vpack.c.bf16 %v3783_v40, %v3782_v39  ;;  %v497_v40 = vld [vmem:[%s8317_s1] sm:$0xff] }
  0x26   : > { %4858 = vmatprep.subr.bf16.mxu0 %v4857_v37  ;;  %v4861_v32 = vpack.c.bf16 %v3781_v20, %v3780_v19  ;;  %v3770_v20 = vld [vmem:[%s8317_s1 + $0x5c0] sm:$0xff] }
  0x27   : > { %4944 = vmatpush3.bf16.msra.mxu1 %v4943_v44  ;;  %v4863_v44 = vpack.c.bf16 %v3765_v35, %v3764_v34  ;;  %v6072_v34 = vld [vmem:[%s8317_s1 + $0x5d0] sm:$0xff]  ;;  %v6077_v35 = vld [vmem:[%s8317_s1 + $0x5d8] sm:$0xff] }
  0x28   : > { %5573 = vrot.lane.b32.xlu1 %v5572_v24, %s5591_s24  ;;  %4946 = vmatprep.subr.bf16.mxu1 %v4945_v45 }
  0x2b   : > { %4948 = vmatpush3.bf16.msra.mxu1 %v4947_v50 }
  0x2c   : > { %4950 = vmatprep.subr.bf16.mxu1 %v4949_v51 }
  0x2f   : > { %4952 = vmatpush3.bf16.msra.mxu1 %v4951_v56 }
  0x30   : > { %4986 = vmatprep.subr.bf16.mxu1 %v4985_v57  ;;  %v4867_v57 = vpack.c.bf16 %v3767_v49, %v3766_v48  ;;  %v6099_v49 = vld [vmem:[%s8317_s1 + $0x668] sm:$0xff] }
  0x83   : > { %v366_v58 = vpop.permute.xlu0 %365 }
  0x84   : > { %v416_v59 = vsel %vm397_vm0, 0.0, %v366_v58 }
  0x85   : > { %v5896_v60 = vrot.slane %v416_v59, 7  ;;  %v4869_v59 = vpack.c.bf16 %v3785_v53, %v3784_v52 }
  0x86   : > { %v5898_v61 = vpop.permute.xlu1 %5558 }
  0x87   : > { %v5561_v62 = vunpack.i.h.bf16 %v5898_v61  ;;  %v5560_v63 = vunpack.i.l.bf16 %v5898_v61  ;;  %v5902_v0 = vpop.permute.xlu0 %367  ;;  %v5906_v1 = vsel %vm424_vm1, 0.0, %v5896_v60 }
  0x88   : > { %v398_v4 = vsel %vm397_vm0, %v366_v58, %v5902_v0  ;;  %v805_v12 = vrot.slane %v5906_v1, 1 }
  0x89   : > { %v405_v2 = vsel %vm397_vm0, %v5560_v63, %v5561_v62  ;;  %v417_v3 = vsel %vm397_vm0, 0.0, %v5560_v63  ;;  %v5914_v7 = vrot.slane %v398_v4, 7 }
  0x8a   : > { %v434_v5 = vrot.slane %v417_v3, 7  ;;  %v436_v6 = vrot.slane %v405_v2, 7  ;;  %v5916_v8 = vpop.permute.xlu1 %369  ;;  %v3768_v2 = vld [vmem:[%s8317_s1 + $0x5b0] sm:$0xff]  ;;  %v3769_v3 = vld [vmem:[%s8317_s1 + $0x5b8] sm:$0xff] }
  0x8b   : > { %v5924_v10 = vsel %vm424_vm1, 0.0, %v5914_v7  ;;  %v5926_v11 = vpop.permute.xlu0 %371  ;;  %v4871_v19 = vpack.c.bf16 %v3769_v3, %v3768_v2  ;;  %v4879_v3 = vpack.c.bf16 %v6077_v35, %v6072_v34 }
  0x8c   : > { %v5920_v9 = vsel %vm424_vm1, %v5914_v7, %v436_v6  ;;  %v808_v15 = vrot.slane %v5924_v10, 1  ;;  %v400_v17 = vsel %vm397_vm0, %v5916_v8, %v5926_v11  ;;  %v5942_v18 = vsel %vm424_vm1, %v5896_v60, %v434_v5 }
  0x8d   : > { %v809_v16 = vrot.slane %v5920_v9, 1  ;;  %v5951_v21 = vsel %vm424_vm1, %v434_v5, 0.0  ;;  %v5955_v23 = vrot.slane %v400_v17, 7  ;;  %v806_v24 = vrot.slane %v5942_v18, 1 }
  0x8e   : > { %v5953_v22 = vpop.permute.xlu1 %5563  ;;  %v5959_v25 = vsel %vm424_vm1, %v436_v6, 0.0  ;;  %v832_v38 = vrot.slane %v5951_v21, 1 }
  0x8f   : > { %v5566_v26 = vunpack.i.h.bf16 %v5953_v22  ;;  %v5565_v27 = vunpack.i.l.bf16 %v5953_v22  ;;  %v810_v29 = vsel %vm804_vm2, %v808_v15, %v809_v16  ;;  %v807_v30 = vsel %vm804_vm2, %v805_v12, %v806_v24  ;;  %v5966_v33 = vpop.permute.xlu0 %373  ;;  %v3786_v12 = vld [vmem:[%s8317_s1 + $0x640] sm:$0xff] }
  0x90   : > { %v834_v31 = vrot.slane %v5959_v25, 1  ;;  %932 = vmatprep.mubr.f32.mxu0 %v810_v29  ;;  %v5983_v37 = vsel %vm424_vm1, 0.0, %v5955_v23  ;;  %v833_v51 = vsel %vm804_vm2, %v806_v24, %v832_v38  ;;  %v3771_v24 = vld [vmem:[%s8317_s1 + $0x5c8] sm:$0xff] }
  0x91   : > { %v5979_v36 = vsel %vm397_vm0, %v5565_v27, %v5566_v26  ;;  %933 = vmatmul.mubr.f32.vlgmr.msra.gmra.mrb[0].mxu0 %v807_v30  ;;  %v814_v50 = vrot.slane %v5983_v37, 1  ;;  %v4873_v30 = vpack.c.bf16 %v3787_v13, %v3786_v12  ;;  %v4875_v52 = vpack.c.bf16 %v3771_v24, %v3770_v20  ;;  %v499_v12 = vld [vmem:[%s8317_s1 + $0x10] sm:$0xff]  ;;  %v500_v24 = vld [vmem:[%s8317_s1 + $0x18] sm:$0xff] }
  0x92   : > { %v440_v41 = vrot.slane %v5979_v36, 7  ;;  %v5993_v42 = vpop.permute.xlu1 %375  ;;  %v835_v43 = vsel %vm804_vm2, %v809_v16, %v834_v31  ;;  %4860 = vmatpush3.bf16.msra.mxu0 %v4859_v28  ;;  %v3788_v28 = vld [vmem:[%s8317_s1 + $0x650] sm:$0xff]  ;;  %v3789_v31 = vld [vmem:[%s8317_s1 + $0x658] sm:$0xff] }
  0x93   : > { %937 = vmatprep.mubr.f32.mxu0 %v835_v43  ;;  %4862 = vmatprep.subr.bf16.mxu0 %v4861_v32  ;;  %v6002_v47 = vpop.permute.xlu0 %5568  ;;  %v498_v43 = vld [vmem:[%s8317_s1 + $0x8] sm:$0xff]  ;;  %v4877_v53 = vpack.c.bf16 %v3789_v31, %v3788_v28  ;;  %v6142_v28 = vld [vmem:[%s8317_s1 + $0x670] sm:$0xff]  ;;  %v6154_v31 = vsel %vm397_vm0, %v5561_v62, %v5565_v27  ;;  %v1764_v62 = vrot.slane %v5906_v1, 2  ;;  %v4991_v27 = vpack.c.bf16 %v500_v24, %v499_v12  ;;  %v3810_v24 = vld [vmem:[%s8317_s1 + $0x700] sm:$0xff] }
  0x94   : > { %v6000_v45 = vsel %vm424_vm1, %v5955_v23, %v440_v41  ;;  %v5571_v5 = vunpack.i.h.bf16 %v6002_v47  ;;  %v399_v1 = vsel %vm397_vm0, %v5902_v0, %v5916_v8  ;;  %v1765_v0 = vrot.slane %v5942_v18, 2  ;;  %v3812_v36 = vld [vmem:[%s8317_s1 + $0x710] sm:$0xff] }
  0x95   : > { %938 = vmatmul.mubr.f32.gmra.mrb[2].mxu0 %v833_v51  ;;  %v815_v55 = vrot.slane %v6000_v45, 1  ;;  %v516_v51 = vld [vmem:[%s8317_s1 + $0x98] sm:$0xff]  ;;  %v1793_v8 = vrot.slane %v5959_v25, 2  ;;  %v501_v25 = vld [vmem:[%s8317_s1 + $0x20] sm:$0xff]  ;;  %v1791_v12 = vrot.slane %v5951_v21, 2 }
  0x96   : > { %v378_v54 = vpop.permute.xlu1 %377  ;;  %4864 = vmatpush3.bf16.msra.mxu0 %v4863_v44  ;;  %v6094_v44 = vld [vmem:[%s8317_s1 + $0x660] sm:$0xff]  ;;  %v6228_v21 = vsel %vm1763_vm3, %v1764_v62, %v1765_v0  ;;  %v504_v62 = vld [vmem:[%s8317_s1 + $0x38] sm:$0xff] }
  0x97   : > { %v403_v56 = vsel %vm397_vm0, %v5993_v42, %v378_v54  ;;  %4866 = vmatprep.subr.bf16.mxu0 %v4865_v46  ;;  %v6023_v63 = vpop.permute.xlu0 %379  ;;  %v816_v4 = vsel %vm804_vm2, %v814_v50, %v815_v55  ;;  %v515_v50 = vld [vmem:[%s8317_s1 + $0x90] sm:$0xff] }
  0x98   : > { %v6021_v58 = vrot.slane %v403_v56, 7  ;;  %v404_v6 = vsel %vm397_vm0, %v378_v54, %v6023_v63  ;;  %1007 = vmatprep.mubr.f32.mxu0 %v816_v4  ;;  %v4989_v20 = vpack.c.bf16 %v516_v51, %v515_v50  ;;  %v438_v50 = vrot.slane %v6154_v31, 7 }
  0x99   : > { %v6045_v15 = vrot.slane %v404_v6, 7  ;;  %v4987_v6 = vpack.c.bf16 %v498_v43, %v497_v40  ;;  %v5570_v51 = vunpack.i.l.bf16 %v6002_v47  ;;  %v582_v47 = vld [vmem:[%s8317_s1 + $0x2a8] sm:$0xff] }
  0x9a   : > { %v6043_v14 = vpop.permute.xlu1 %5573  ;;  %4868 = vmatpush3.bf16.msra.mxu0 %v4867_v57  ;;  %v6060_v29 = vsel %vm424_vm1, 0.0, %v6021_v58  ;;  %v6112_v57 = vld [vmem:[%s8317_s1 + $0x5e0] sm:$0xff] }
  0x9b   : > { %v5576_v16 = vunpack.i.h.bf16 %v6043_v14  ;;  %v5575_v17 = vunpack.i.l.bf16 %v6043_v14  ;;  %4870 = vmatprep.subr.bf16.mxu0 %v4869_v59  ;;  %v6067_v32 = vsel %vm424_vm1, 0.0, %v6045_v15  ;;  %v823_v56 = vrot.slane %v6060_v29, 1  ;;  %v6117_v59 = vld [vmem:[%s8317_s1 + $0x5e8] sm:$0xff]  ;;  %v3809_v14 = vld [vmem:[%s8317_s1 + $0x6f8] sm:$0xff] }
  0x9c   : > { %v826_v54 = vrot.slane %v6067_v32, 1  ;;  %v4883_v35 = vpack.c.bf16 %v6117_v59, %v6112_v57  ;;  %v6201_v57 = vsel %vm397_vm0, %v5570_v51, %v5571_v5 }
  0x9d   : > { %v410_v38 = vsel %vm397_vm0, %v5571_v5, %v5575_v17  ;;  %v411_v39 = vsel %vm397_vm0, %v5575_v17, %v5576_v16  ;;  %v3777_v5 = vld [vmem:[%s8317_s1 + $0x5f8] sm:$0xff] }
  0x9e   : > { %v446_v46 = vrot.slane %v410_v38, 7  ;;  %v448_v48 = vrot.slane %v411_v39, 7  ;;  %4872 = vmatpush3.bf16.msra.mxu0 %v4871_v19  ;;  %v4881_v19 = vpack.c.bf16 %v6099_v49, %v6094_v44  ;;  %v1767_v49 = vrot.slane %v5924_v10, 2 }
  0x9f   : > { %4874 = vmatprep.subr.bf16.mxu0 %v4873_v30  ;;  %v6147_v30 = vld [vmem:[%s8317_s1 + $0x678] sm:$0xff]  ;;  %v1768_v10 = vrot.slane %v5920_v9, 2 }
  0xa0   : > { %v6121_v2 = vsel %vm424_vm1, %v6045_v15, %v448_v48  ;;  %v6127_v4 = vsel %vm424_vm1, %v6021_v58, %v446_v46  ;;  %v6157_v34 = vsel %vm424_vm1, %v448_v48, 0.0  ;;  %v6162_v38 = vsel %vm424_vm1, %v446_v46, 0.0  ;;  %v517_v46 = vld [vmem:[%s8317_s1 + $0xa0] sm:$0xff]  ;;  %v518_v48 = vld [vmem:[%s8317_s1 + $0xa8] sm:$0xff] }
  0xa1   : > { %v827_v13 = vrot.slane %v6121_v2, 1  ;;  %v824_v17 = vrot.slane %v6127_v4, 1  ;;  %v846_v43 = vrot.slane %v6157_v34, 1  ;;  %v844_v61 = vrot.slane %v6162_v38, 1 }
  0xa2   : > { %4876 = vmatpush3.bf16.msra.mxu0 %v4875_v52  ;;  %v4885_v44 = vpack.c.bf16 %v6147_v30, %v6142_v28  ;;  %v4993_v59 = vpack.c.bf16 %v518_v48, %v517_v46  ;;  %v3811_v28 = vld [vmem:[%s8317_s1 + $0x708] sm:$0xff]  ;;  %v6240_v30 = vsel %vm1763_vm3, %v1765_v0, %v1791_v12 }
  0xa3   : > { %v828_v39 = vsel %vm804_vm2, %v826_v54, %v827_v13  ;;  %v825_v40 = vsel %vm804_vm2, %v823_v56, %v824_v17  ;;  %4878 = vmatprep.subr.bf16.mxu0 %v4877_v53  ;;  %v847_v52 = vsel %vm804_vm2, %v827_v13, %v846_v43  ;;  %v845_v53 = vsel %vm804_vm2, %v824_v17, %v844_v61  ;;  %v520_v17 = vld [vmem:[%s8317_s1 + $0xb8] sm:$0xff]  ;;  %v503_v61 = vld [vmem:[%s8317_s1 + $0x30] sm:$0xff]  ;;  %v506_v12 = vld [vmem:[%s8317_s1 + $0x48] sm:$0xff] }
  0xa4   : > { %1157 = vmatprep.mubr.f32.mxu1 %v828_v39  ;;  %v402_v56 = vsel %vm397_vm0, %v5966_v33, %v5993_v42  ;;  %v502_v42 = vld [vmem:[%s8317_s1 + $0x28] sm:$0xff]  ;;  %v6213_v13 = vrot.slane %v399_v1, 7  ;;  %v3794_v1 = vld [vmem:[%s8317_s1 + $0x680] sm:$0xff]  ;;  %v4019_v54 = vld [vmem:[%s8317_s1 + $0xcf8] sm:$0xff] }
  0xa5   : > { %1158 = vmatmul.mubr.f32.vlgmr.msra.gmra.mrb[0].mxu1 %v825_v40  ;;  %v6246_v39 = vrot.slane %v402_v56, 7  ;;  %v444_v40 = vrot.slane %v6201_v57, 7  ;;  %v4995_v43 = vpack.c.bf16 %v502_v42, %v501_v25  ;;  %v6292_v56 = vsel %vm424_vm1, %v438_v50, 0.0  ;;  %v3796_v42 = vld [vmem:[%s8317_s1 + $0x690] sm:$0xff]  ;;  %v585_v57 = vld [vmem:[%s8317_s1 + $0x2c0] sm:$0xff] }
  0xa6   : > { %4988 = vmatpush3.bf16.msra.mxu1 %v4987_v6  ;;  %1162 = vmatprep.mubr.f32.mxu1 %v847_v52  ;;  %v3776_v6 = vld [vmem:[%s8317_s1 + $0x5f0] sm:$0xff]  ;;  %v6244_v31 = vsel %vm424_vm1, %v6213_v13, %v438_v50  ;;  %v4999_v52 = vpack.c.bf16 %v504_v62, %v503_v61  ;;  %v505_v50 = vld [vmem:[%s8317_s1 + $0x40] sm:$0xff]  ;;  %v836_v61 = vrot.slane %v6292_v56, 1 }
  0xa7   : > { %4880 = vmatpush3.bf16.msra.mxu0 %v4879_v3  ;;  %4990 = vmatprep.subr.bf16.mxu1 %v4989_v20  ;;  %v519_v3 = vld [vmem:[%s8317_s1 + $0xb0] sm:$0xff]  ;;  %v6225_v20 = vsel %vm1763_vm3, %v1767_v49, %v1768_v10  ;;  %v4887_v46 = vpack.c.bf16 %v3777_v5, %v3776_v6  ;;  %v4889_v49 = vpack.c.bf16 %v3811_v28, %v3810_v24  ;;  %v6288_v0 = vsel %vm424_vm1, 0.0, %v6246_v39  ;;  %v524_v28 = vld [vmem:[%s8317_s1 + $0xd8] sm:$0xff]  ;;  %v3814_v62 = vld [vmem:[%s8317_s1 + $0x720] sm:$0xff] }
  0xa8   : > { %4882 = vmatprep.subr.bf16.mxu0 %v4881_v19  ;;  %v6231_v19 = vsel %vm1763_vm3, %v1768_v10, %v1793_v8  ;;  %v4997_v48 = vpack.c.bf16 %v520_v17, %v519_v3  ;;  %v522_v10 = vld [vmem:[%s8317_s1 + $0xc8] sm:$0xff]  ;;  %v3797_v17 = vld [vmem:[%s8317_s1 + $0x698] sm:$0xff]  ;;  %v523_v24 = vld [vmem:[%s8317_s1 + $0xd0] sm:$0xff] }
  0xa9   : > { %1163 = vmatmul.mubr.f32.gmra.mrb[2].mxu1 %v845_v53  ;;  %v521_v53 = vld [vmem:[%s8317_s1 + $0xc0] sm:$0xff] }
  0xaa   : > { %4992 = vmatpush3.bf16.msra.mxu1 %v4991_v27  ;;  %3875 = vmatprep.mubr.msk.f32.mxu1 %vm6186_vm4, %v5914_v7  ;;  %v6261_v27 = vsel %vm424_vm1, %v440_v41, 0.0  ;;  %v6265_v7 = vsel %vm424_vm1, 0.0, %v6213_v13  ;;  %v812_v41 = vrot.slane %v6244_v31, 1  ;;  %v5001_v3 = vpack.c.bf16 %v522_v10, %v521_v53  ;;  %v3798_v53 = vld [vmem:[%s8317_s1 + $0x6a0] sm:$0xff]  ;;  %v507_v10 = vld [vmem:[%s8317_s1 + $0x50] sm:$0xff] }
  0xab   : > { %4884 = vmatpush3.bf16.msra.mxu0 %v4883_v35  ;;  %4994 = vmatprep.subr.bf16.mxu1 %v4993_v59  ;;  %v3795_v35 = vld [vmem:[%s8317_s1 + $0x688] sm:$0xff]  ;;  %v838_v8 = vrot.slane %v6261_v27, 1  ;;  %v6298_v59 = vsel %vm424_vm1, %v6246_v39, %v444_v40  ;;  %v811_v6 = vrot.slane %v6265_v7, 1 }
  0xac   : > { %4886 = vmatprep.subr.bf16.mxu0 %v4885_v44  ;;  %v3813_v44 = vld [vmem:[%s8317_s1 + $0x718] sm:$0xff]  ;;  %v4891_v25 = vpack.c.bf16 %v3795_v35, %v3794_v1  ;;  %v5003_v35 = vpack.c.bf16 %v506_v12, %v505_v50  ;;  %v3816_v50 = vld [vmem:[%s8317_s1 + $0x730] sm:$0xff] }
  0xad   : > { %v4893_v5 = vpack.c.bf16 %v3813_v44, %v3812_v36  ;;  %v839_v1 = vsel %vm804_vm2, %v815_v55, %v838_v8  ;;  %v4895_v36 = vpack.c.bf16 %v3797_v17, %v3796_v42  ;;  %v5005_v44 = vpack.c.bf16 %v524_v28, %v523_v24  ;;  %v525_v8 = vld [vmem:[%s8317_s1 + $0xe0] sm:$0xff]  ;;  %v3817_v12 = vld [vmem:[%s8317_s1 + $0x738] sm:$0xff] }
  0xae   : > { %4996 = vmatpush3.bf16.msra.mxu1 %v4995_v43  ;;  %v813_v43 = vsel %vm804_vm2, %v811_v6, %v812_v41  ;;  %v508_v6 = vld [vmem:[%s8317_s1 + $0x58] sm:$0xff]  ;;  %v837_v42 = vsel %vm804_vm2, %v812_v41, %v836_v61  ;;  %v3800_v41 = vld [vmem:[%s8317_s1 + $0x6b0] sm:$0xff]  ;;  %v509_v28 = vld [vmem:[%s8317_s1 + $0x60] sm:$0xff]  ;;  %v4901_v61 = vpack.c.bf16 %v3817_v12, %v3816_v50 }
  0xaf   : > { %4888 = vmatpush3.bf16.msra.mxu0 %v4887_v46  ;;  %4998 = vmatprep.subr.bf16.mxu1 %v4997_v48  ;;  %v3815_v46 = vld [vmem:[%s8317_s1 + $0x728] sm:$0xff]  ;;  %v820_v48 = vrot.slane %v6288_v0, 1  ;;  %v3820_v50 = vld [vmem:[%s8317_s1 + $0x750] sm:$0xff]  ;;  %v3821_v12 = vld [vmem:[%s8317_s1 + $0x758] sm:$0xff] }
  0xb0   : > { %4890 = vmatprep.subr.bf16.mxu0 %v4889_v49  ;;  %v821_v49 = vrot.slane %v6298_v59, 1  ;;  %v4897_v55 = vpack.c.bf16 %v3815_v46, %v3814_v62  ;;  %v3801_v62 = vld [vmem:[%s8317_s1 + $0x6b8] sm:$0xff]  ;;  %v527_v46 = vld [vmem:[%s8317_s1 + $0xf0] sm:$0xff] }
  0xb2   : > { %1008 = vmatmul.mubr.f32.vlgmr.msra.gmra.mrb[4].mxu0 %v813_v43  ;;  %5000 = vmatpush3.bf16.msra.mxu1 %v4999_v52  ;;  %v3799_v52 = vld [vmem:[%s8317_s1 + $0x6a8] sm:$0xff] }
  0xb3   : > { %1012 = vmatprep.mubr.f32.mxu0 %v839_v1  ;;  %4892 = vmatpush3.bf16.msra.mxu0 %v4891_v25  ;;  %v526_v25 = vld [vmem:[%s8317_s1 + $0xe8] sm:$0xff]  ;;  %v4899_v17 = vpack.c.bf16 %v3799_v52, %v3798_v53  ;;  %v3818_v1 = vld [vmem:[%s8317_s1 + $0x740] sm:$0xff] }
  0xb4   : > { %4894 = vmatprep.subr.bf16.mxu0 %v4893_v5  ;;  %5002 = vmatprep.subr.bf16.mxu1 %v5001_v3  ;;  %v822_v5 = vsel %vm804_vm2, %v820_v48, %v821_v49  ;;  %v5007_v3 = vpack.c.bf16 %v508_v6, %v507_v10  ;;  %v5009_v24 = vpack.c.bf16 %v526_v25, %v525_v8  ;;  %v510_v43 = vld [vmem:[%s8317_s1 + $0x68] sm:$0xff]  ;;  %v528_v48 = vld [vmem:[%s8317_s1 + $0xf8] sm:$0xff]  ;;  %v3802_v10 = vld [vmem:[%s8317_s1 + $0x6c0] sm:$0xff] }
  0xb5   : > { %v5013_v53 = vpack.c.bf16 %v528_v48, %v527_v46  ;;  %v511_v6 = vld [vmem:[%s8317_s1 + $0x70] sm:$0xff]  ;;  %v3803_v8 = vld [vmem:[%s8317_s1 + $0x6c8] sm:$0xff]  ;;  %v577_v25 = vld [vmem:[%s8317_s1 + $0x280] sm:$0xff] }
  0xb6   : > { %1013 = vmatmul.mubr.f32.gmra.mrb[6].mxu0 %v837_v42  ;;  %5004 = vmatpush3.bf16.msra.mxu1 %v5003_v35  ;;  %v3819_v35 = vld [vmem:[%s8317_s1 + $0x748] sm:$0xff]  ;;  %v580_v46 = vld [vmem:[%s8317_s1 + $0x298] sm:$0xff]  ;;  %v3822_v48 = vld [vmem:[%s8317_s1 + $0x760] sm:$0xff] }
  0xb7   : > { %4896 = vmatpush3.bf16.msra.mxu0 %v4895_v36  ;;  %5006 = vmatprep.subr.bf16.mxu1 %v5005_v44  ;;  %v5011_v36 = vpack.c.bf16 %v510_v43, %v509_v28  ;;  %v4903_v44 = vpack.c.bf16 %v3801_v62, %v3800_v41  ;;  %v4905_v52 = vpack.c.bf16 %v3819_v35, %v3818_v1  ;;  %v578_v42 = vld [vmem:[%s8317_s1 + $0x288] sm:$0xff]  ;;  %v3805_v41 = vld [vmem:[%s8317_s1 + $0x6d8] sm:$0xff]  ;;  %v561_v28 = vld [vmem:[%s8317_s1 + $0x200] sm:$0xff] }
  0xb8   : > { %4898 = vmatprep.subr.bf16.mxu0 %v4897_v55  ;;  %1082 = vmatprep.mubr.f32.mxu0 %v822_v5  ;;  %v512_v55 = vld [vmem:[%s8317_s1 + $0x78] sm:$0xff]  ;;  %v562_v43 = vld [vmem:[%s8317_s1 + $0x208] sm:$0xff]  ;;  %v579_v62 = vld [vmem:[%s8317_s1 + $0x290] sm:$0xff] }
  0xb9   : > { %v5015_v5 = vpack.c.bf16 %v512_v55, %v511_v6  ;;  %v3823_v1 = vld [vmem:[%s8317_s1 + $0x768] sm:$0xff]  ;;  %v3806_v6 = vld [vmem:[%s8317_s1 + $0x6e0] sm:$0xff]  ;;  %v563_v55 = vld [vmem:[%s8317_s1 + $0x210] sm:$0xff] }
  0xba   : > { %5008 = vmatpush3.bf16.msra.mxu1 %v5007_v3  ;;  %v3804_v3 = vld [vmem:[%s8317_s1 + $0x6d0] sm:$0xff]  ;;  %v4913_v22 = vpack.c.bf16 %v3823_v1, %v3822_v48  ;;  %v568_v1 = vld [vmem:[%s8317_s1 + $0x238] sm:$0xff] }
  0xbb   : > { %4900 = vmatpush3.bf16.msra.mxu0 %v4899_v17  ;;  %5010 = vmatprep.subr.bf16.mxu1 %v5009_v24  ;;  %v4907_v17 = vpack.c.bf16 %v3803_v8, %v3802_v10  ;;  %v5049_v24 = vpack.c.bf16 %v578_v42, %v577_v25  ;;  %v4911_v35 = vpack.c.bf16 %v3805_v41, %v3804_v3  ;;  %v567_v48 = vld [vmem:[%s8317_s1 + $0x230] sm:$0xff] }
  0xbc   : > { %4902 = vmatprep.subr.bf16.mxu0 %v4901_v61  ;;  %v4909_v61 = vpack.c.bf16 %v3821_v12, %v3820_v50  ;;  %v5053_v10 = vpack.c.bf16 %v580_v46, %v579_v62  ;;  %v566_v50 = vld [vmem:[%s8317_s1 + $0x228] sm:$0xff]  ;;  %v6482_v12 = vsel %vm397_vm0, %v5576_v16, 0.0  ;;  %v583_v16 = vld [vmem:[%s8317_s1 + $0x2b0] sm:$0xff] }
  0xbd   : > { %v450_v46 = vrot.slane %v6482_v12, 7 }
  0xbe   : > { %5012 = vmatpush3.bf16.msra.mxu1 %v5011_v36  ;;  %v5051_v36 = vpack.c.bf16 %v562_v43, %v561_v28  ;;  %v3858_v28 = vld [vmem:[%s8317_s1 + $0x880] sm:$0xff]  ;;  %v3859_v43 = vld [vmem:[%s8317_s1 + $0x888] sm:$0xff] }
  0xbf   : > { %4904 = vmatpush3.bf16.msra.mxu0 %v4903_v44  ;;  %5014 = vmatprep.subr.bf16.mxu1 %v5013_v53  ;;  %v401_v44 = vsel %vm397_vm0, %v5926_v11, %v5966_v33  ;;  %v6440_v53 = vsel %vm397_vm0, %v5566_v26, %v5570_v51  ;;  %v564_v11 = vld [vmem:[%s8317_s1 + $0x218] sm:$0xff]  ;;  %v3807_v26 = vld [vmem:[%s8317_s1 + $0x6e8] sm:$0xff]  ;;  %v581_v33 = vld [vmem:[%s8317_s1 + $0x2a0] sm:$0xff] }
  0xc0   : > { %4906 = vmatprep.subr.bf16.mxu0 %v4905_v52  ;;  %v3824_v51 = vld [vmem:[%s8317_s1 + $0x770] sm:$0xff]  ;;  %v3825_v52 = vld [vmem:[%s8317_s1 + $0x778] sm:$0xff]  ;;  %v6469_v8 = vrot.slane %v401_v44, 7  ;;  %v442_v25 = vrot.slane %v6440_v53, 7  ;;  %v5055_v42 = vpack.c.bf16 %v564_v11, %v563_v55  ;;  %v5057_v3 = vpack.c.bf16 %v582_v47, %v581_v33 }
  0xc1   : > { %v6528_v44 = vsel %vm424_vm1, %v444_v40, 0.0  ;;  %v4953_v53 = vpack.c.bf16 %v3859_v43, %v3858_v28  ;;  %v5063_v55 = vpack.c.bf16 %v568_v1, %v567_v48  ;;  %v3861_v11 = vld [vmem:[%s8317_s1 + $0x898] sm:$0xff]  ;;  %v586_v40 = vld [vmem:[%s8317_s1 + $0x2c8] sm:$0xff]  ;;  %v571_v28 = vld [vmem:[%s8317_s1 + $0x250] sm:$0xff] }
  0xc2   : > { %5016 = vmatpush3.bf16.msra.mxu1 %v5015_v5  ;;  %v418_v5 = vsel %vm397_vm0, %v6023_v63, 0.0  ;;  %v584_v63 = vld [vmem:[%s8317_s1 + $0x2b8] sm:$0xff]  ;;  %v6511_v62 = vsel %vm424_vm1, %v6469_v8, %v442_v25  ;;  %v842_v33 = vrot.slane %v6528_v44, 1  ;;  %v6556_v47 = vsel %vm424_vm1, %v442_v25, 0.0  ;;  %v590_v1 = vld [vmem:[%s8317_s1 + $0x2e8] sm:$0xff] }
  0xc3   : > { %4908 = vmatpush3.bf16.msra.mxu0 %v4907_v17  ;;  %5050 = vmatprep.subr.bf16.mxu1 %v5049_v24  ;;  %v3808_v17 = vld [vmem:[%s8317_s1 + $0x6f0] sm:$0xff]  ;;  %v4917_v24 = vpack.c.bf16 %v3825_v52, %v3824_v51  ;;  %v569_v51 = vld [vmem:[%s8317_s1 + $0x240] sm:$0xff]  ;;  %v570_v52 = vld [vmem:[%s8317_s1 + $0x248] sm:$0xff] }
  0xc4   : > { %4910 = vmatprep.subr.bf16.mxu0 %v4909_v61  ;;  %v6507_v61 = vsel %vm424_vm1, 0.0, %v6469_v8  ;;  %v588_v25 = vld [vmem:[%s8317_s1 + $0x2d8] sm:$0xff] }
  0xc5   : > { %3877 = vmatmul.mubr.msk.f32.vlgmr.msra.gmra.mrb[4].mxu1 %vm6186_vm4, %v5896_v60  ;;  %v565_v60 = vld [vmem:[%s8317_s1 + $0x220] sm:$0xff]  ;;  %v572_v43 = vld [vmem:[%s8317_s1 + $0x258] sm:$0xff] }
  0xc6   : > { %1312 = vmatprep.mubr.f32.mxu1 %v5920_v9  ;;  %5052 = vmatpush3.bf16.msra.mxu1 %v5051_v36  ;;  %v4915_v9 = vpack.c.bf16 %v3807_v26, %v3806_v6  ;;  %v5059_v41 = vpack.c.bf16 %v566_v50, %v565_v60  ;;  %v5061_v36 = vpack.c.bf16 %v584_v63, %v583_v16  ;;  %v818_v6 = vrot.slane %v6511_v62, 1  ;;  %v587_v50 = vld [vmem:[%s8317_s1 + $0x2d0] sm:$0xff] }
  0xc7   : > { %4912 = vmatpush3.bf16.msra.mxu0 %v4911_v35  ;;  %5054 = vmatprep.subr.bf16.mxu1 %v5053_v10  ;;  %v4919_v35 = vpack.c.bf16 %v3809_v14, %v3808_v17  ;;  %v817_v10 = vrot.slane %v6507_v61, 1  ;;  %v5065_v60 = vpack.c.bf16 %v586_v40, %v585_v57  ;;  %v3863_v17 = vld [vmem:[%s8317_s1 + $0x8a8] sm:$0xff]  ;;  %v843_v16 = vsel %vm804_vm2, %v821_v49, %v842_v33  ;;  %v589_v49 = vld [vmem:[%s8317_s1 + $0x2e0] sm:$0xff]  ;;  %v591_v40 = vld [vmem:[%s8317_s1 + $0x2f0] sm:$0xff] }
  0xc8   : > { %4914 = vmatprep.subr.bf16.mxu0 %v4913_v22  ;;  %v5067_v63 = vpack.c.bf16 %v570_v52, %v569_v51  ;;  %v592_v33 = vld [vmem:[%s8317_s1 + $0x2f8] sm:$0xff]  ;;  %v3866_v51 = vld [vmem:[%s8317_s1 + $0x8c0] sm:$0xff]  ;;  %v3867_v52 = vld [vmem:[%s8317_s1 + $0x8c8] sm:$0xff] }
  0xc9   : > { %1313 = vmatmul.mubr.f32.gmra.mrb[6].mxu1 %v5942_v18  ;;  %v6514_v18 = vrot.slane %v418_v5, 7  ;;  %v819_v5 = vsel %vm804_vm2, %v817_v10, %v818_v6  ;;  %v5071_v10 = vpack.c.bf16 %v572_v43, %v571_v28  ;;  %v3893_v28 = vld [vmem:[%s8317_s1 + $0x908] sm:$0xff] }
  0xca   : > { %5056 = vmatpush3.bf16.msra.mxu1 %v5055_v42  ;;  %3883 = vmatprep.mubr.msk.f32.mxu1 %vm6186_vm4, %v6246_v39  ;;  %v3860_v39 = vld [vmem:[%s8317_s1 + $0x890] sm:$0xff] }
  0xcb   : > { %4916 = vmatpush3.bf16.msra.mxu0 %v4915_v9  ;;  %5058 = vmatprep.subr.bf16.mxu1 %v5057_v3  ;;  %v6548_v22 = vsel %vm424_vm1, %v6514_v18, %v450_v46  ;;  %v6552_v26 = vsel %vm424_vm1, 0.0, %v6514_v18  ;;  %v4957_v42 = vpack.c.bf16 %v3861_v11, %v3860_v39  ;;  %v840_v9 = vrot.slane %v6556_v47, 1  ;;  %v3862_v3 = vld [vmem:[%s8317_s1 + $0x8a0] sm:$0xff]  ;;  %v574_v11 = vld [vmem:[%s8317_s1 + $0x268] sm:$0xff] }
  0xcc   : > { %4918 = vmatprep.subr.bf16.mxu0 %v4917_v24  ;;  %v829_v24 = vrot.slane %v6552_v26, 1  ;;  %v830_v14 = vrot.slane %v6548_v22, 1  ;;  %v4961_v48 = vpack.c.bf16 %v3863_v17, %v3862_v3  ;;  %v3909_v3 = vld [vmem:[%s8317_s1 + $0x988] sm:$0xff]  ;;  %v3868_v17 = vld [vmem:[%s8317_s1 + $0x8d0] sm:$0xff] }
  0xce   : > { %5060 = vmatpush3.bf16.msra.mxu1 %v5059_v41  ;;  %v5069_v41 = vpack.c.bf16 %v588_v25, %v587_v50  ;;  %v831_v39 = vsel %vm804_vm2, %v829_v24, %v830_v14  ;;  %v575_v50 = vld [vmem:[%s8317_s1 + $0x270] sm:$0xff]  ;;  %v576_v25 = vld [vmem:[%s8317_s1 + $0x278] sm:$0xff] }
  0xcf   : > { %4920 = vmatpush3.bf16.msra.mxu0 %v4919_v35  ;;  %5062 = vmatprep.subr.bf16.mxu1 %v5061_v36  ;;  %v841_v35 = vsel %vm804_vm2, %v818_v6, %v840_v9  ;;  %v3864_v36 = vld [vmem:[%s8317_s1 + $0x8b0] sm:$0xff]  ;;  %v573_v6 = vld [vmem:[%s8317_s1 + $0x260] sm:$0xff]  ;;  %v3869_v24 = vld [vmem:[%s8317_s1 + $0x8d8] sm:$0xff] }
  0xd0   : > { %4954 = vmatprep.subr.bf16.mxu0 %v4953_v53  ;;  %v3908_v9 = vld [vmem:[%s8317_s1 + $0x980] sm:$0xff]  ;;  %v4973_v43 = vpack.c.bf16 %v3869_v24, %v3868_v17  ;;  %v3898_v24 = vld [vmem:[%s8317_s1 + $0x930] sm:$0xff] }
  0xd2   : > { %1083 = vmatmul.mubr.f32.vlgmr.msra.gmra.mrb[8].mxu0 %v819_v5  ;;  %5064 = vmatpush3.bf16.msra.mxu1 %v5063_v55  ;;  %v5073_v55 = vpack.c.bf16 %v590_v1, %v589_v49  ;;  %v4969_v5 = vpack.c.bf16 %v3867_v52, %v3866_v51  ;;  %v3911_v49 = vld [vmem:[%s8317_s1 + $0x998] sm:$0xff]  ;;  %v3870_v1 = vld [vmem:[%s8317_s1 + $0x8e0] sm:$0xff] }
  0xd3   : > { %1087 = vmatprep.mubr.f32.mxu0 %v843_v16  ;;  %4956 = vmatpush3.bf16.msra.mxu0 %v4953_v53  ;;  %v3865_v53 = vld [vmem:[%s8317_s1 + $0x8b8] sm:$0xff]  ;;  %v5079_v16 = vpack.c.bf16 %v576_v25, %v575_v50  ;;  %v3896_v52 = vld [vmem:[%s8317_s1 + $0x920] sm:$0xff] }
  0xd4   : > { %4958 = vmatprep.subr.bf16.mxu0 %v4957_v42  ;;  %5066 = vmatprep.subr.bf16.mxu1 %v5065_v60  ;;  %v4965_v57 = vpack.c.bf16 %v3865_v53, %v3864_v36  ;;  %v5077_v60 = vpack.c.bf16 %v592_v33, %v591_v40  ;;  %v3873_v40 = vld [vmem:[%s8317_s1 + $0x8f8] sm:$0xff]  ;;  %v545_v25 = vld [vmem:[%s8317_s1 + $0x180] sm:$0xff] }
  0xd5   : > { %v3915_v50 = vld [vmem:[%s8317_s1 + $0x9b8] sm:$0xff] }
  0xd6   : > { %1088 = vmatmul.mubr.f32.gmra.mrb[10].mxu0 %v841_v35  ;;  %5068 = vmatpush3.bf16.msra.mxu1 %v5067_v63  ;;  %v5145_v63 = vpack.c.bf16 %v3909_v3, %v3908_v9  ;;  %v3871_v35 = vld [vmem:[%s8317_s1 + $0x8e8] sm:$0xff]  ;;  %v6703_v9 = vsel %vm424_vm1, %v450_v46, 0.0  ;;  %v529_v46 = vld [vmem:[%s8317_s1 + $0x100] sm:$0xff] }
  0xd7   : > { %4960 = vmatpush3.bf16.msra.mxu0 %v4957_v42  ;;  %5070 = vmatprep.subr.bf16.mxu1 %v5069_v41  ;;  %v5075_v42 = vpack.c.bf16 %v574_v11, %v573_v6  ;;  %v3892_v41 = vld [vmem:[%s8317_s1 + $0x900] sm:$0xff]  ;;  %v3913_v11 = vld [vmem:[%s8317_s1 + $0x9a8] sm:$0xff] }
  0xd8   : > { %4962 = vmatprep.subr.bf16.mxu0 %v4961_v48  ;;  %4752 = vmatprep.mubr.f32.mxu0 %v831_v39  ;;  %v5147_v36 = vpack.c.bf16 %v3893_v28, %v3892_v41  ;;  %v3894_v39 = vld [vmem:[%s8317_s1 + $0x910] sm:$0xff]  ;;  %v3912_v6 = vld [vmem:[%s8317_s1 + $0x9a0] sm:$0xff]  ;;  %v848_v41 = vrot.slane %v6703_v9, 1  ;;  %v548_v28 = vld [vmem:[%s8317_s1 + $0x198] sm:$0xff] }
  0xd9   : > { %v5153_v51 = vpack.c.bf16 %v3913_v11, %v3912_v6  ;;  %v3918_v6 = vld [vmem:[%s8317_s1 + $0x9d0] sm:$0xff]  ;;  %v3919_v11 = vld [vmem:[%s8317_s1 + $0x9d8] sm:$0xff] }
  0xda   : > { %5072 = vmatpush3.bf16.msra.mxu1 %v5071_v10  ;;  %v3895_v10 = vld [vmem:[%s8317_s1 + $0x918] sm:$0xff] }
  0xdb   : > { %4964 = vmatpush3.bf16.msra.mxu0 %v4961_v48  ;;  %5074 = vmatprep.subr.bf16.mxu1 %v5073_v55  ;;  %v3910_v48 = vld [vmem:[%s8317_s1 + $0x990] sm:$0xff]  ;;  %v4977_v55 = vpack.c.bf16 %v3871_v35, %v3870_v1  ;;  %v5151_v33 = vpack.c.bf16 %v3895_v10, %v3894_v39 }
  0xdc   : > { %4966 = vmatprep.subr.bf16.mxu0 %v4965_v57  ;;  %v5149_v53 = vpack.c.bf16 %v3911_v49, %v3910_v48  ;;  %v3917_v48 = vld [vmem:[%s8317_s1 + $0x9c8] sm:$0xff]  ;;  %v531_v35 = vld [vmem:[%s8317_s1 + $0x110] sm:$0xff] }
  0xde   : > { %5076 = vmatpush3.bf16.msra.mxu1 %v5075_v42 }
  0xdf   : > { %4968 = vmatpush3.bf16.msra.mxu0 %v4965_v57  ;;  %5078 = vmatprep.subr.bf16.mxu1 %v5077_v60  ;;  %v3872_v57 = vld [vmem:[%s8317_s1 + $0x8f0] sm:$0xff] }
  0xe0   : > { %4970 = vmatprep.subr.bf16.mxu0 %v4969_v5  ;;  %v4981_v42 = vpack.c.bf16 %v3873_v40, %v3872_v57  ;;  %v3914_v60 = vld [vmem:[%s8317_s1 + $0x9b0] sm:$0xff]  ;;  %v849_v57 = vsel %vm804_vm2, %v830_v14, %v848_v41  ;;  %v549_v40 = vld [vmem:[%s8317_s1 + $0x1a0] sm:$0xff] }
  0xe1   : > { %v5157_v17 = vpack.c.bf16 %v3915_v50, %v3914_v60  ;;  %v533_v14 = vld [vmem:[%s8317_s1 + $0x120] sm:$0xff]  ;;  %v3903_v60 = vld [vmem:[%s8317_s1 + $0x958] sm:$0xff] }
  0xe2   : > { %5080 = vmatpush3.bf16.msra.mxu1 %v5079_v16  ;;  %v3899_v16 = vld [vmem:[%s8317_s1 + $0x938] sm:$0xff] }
  0xe3   : > { %4972 = vmatpush3.bf16.msra.mxu0 %v4969_v5  ;;  %5146 = vmatprep.subr.bf16.mxu1 %v5145_v63  ;;  %v546_v5 = vld [vmem:[%s8317_s1 + $0x188] sm:$0xff]  ;;  %v547_v63 = vld [vmem:[%s8317_s1 + $0x190] sm:$0xff]  ;;  %v5159_v49 = vpack.c.bf16 %v3899_v16, %v3898_v24 }
  0xe4   : > { %4974 = vmatprep.subr.bf16.mxu0 %v4973_v43  ;;  %v5017_v12 = vpack.c.bf16 %v546_v5, %v545_v25  ;;  %v5021_v39 = vpack.c.bf16 %v548_v28, %v547_v63  ;;  %v3920_v25 = vld [vmem:[%s8317_s1 + $0x9e0] sm:$0xff]  ;;  %v3921_v5 = vld [vmem:[%s8317_s1 + $0x9e8] sm:$0xff]  ;;  %v536_v28 = vld [vmem:[%s8317_s1 + $0x138] sm:$0xff] }
  0xe5   : > { %3885 = vmatmul.mubr.msk.f32.vlgmr.msra.gmra.mrb[8].mxu1 %vm6186_vm4, %v6469_v8  ;;  %v3897_v8 = vld [vmem:[%s8317_s1 + $0x928] sm:$0xff] }
  0xe6   : > { %1462 = vmatprep.mubr.f32.mxu1 %v6298_v59  ;;  %5148 = vmatpush3.bf16.msra.mxu1 %v5147_v36  ;;  %v5155_v3 = vpack.c.bf16 %v3897_v8, %v3896_v52  ;;  %v3900_v36 = vld [vmem:[%s8317_s1 + $0x940] sm:$0xff]  ;;  %v5165_v8 = vpack.c.bf16 %v3919_v11, %v3918_v6  ;;  %v3905_v63 = vld [vmem:[%s8317_s1 + $0x968] sm:$0xff] }
  0xe7   : > { %4976 = vmatpush3.bf16.msra.mxu0 %v4973_v43  ;;  %5150 = vmatprep.subr.bf16.mxu1 %v5149_v53  ;;  %v3916_v43 = vld [vmem:[%s8317_s1 + $0x9c0] sm:$0xff]  ;;  %v3901_v53 = vld [vmem:[%s8317_s1 + $0x948] sm:$0xff] }
  0xe8   : > { %4978 = vmatprep.subr.bf16.mxu0 %v4977_v55  ;;  %v5161_v10 = vpack.c.bf16 %v3917_v48, %v3916_v43  ;;  %v3922_v43 = vld [vmem:[%s8317_s1 + $0x9f0] sm:$0xff]  ;;  %v3923_v48 = vld [vmem:[%s8317_s1 + $0x9f8] sm:$0xff]  ;;  %v538_v11 = vld [vmem:[%s8317_s1 + $0x148] sm:$0xff] }
  0xe9   : > { %1463 = vmatmul.mubr.f32.gmra.mrb[10].mxu1 %v6511_v62 }
  0xea   : > { %5152 = vmatpush3.bf16.msra.mxu1 %v5151_v33  ;;  %1891 = vmatprep.mubr.f32.mxu1 %v6225_v20  ;;  %v530_v20 = vld [vmem:[%s8317_s1 + $0x108] sm:$0xff] }
  0xeb   : > { %4980 = vmatpush3.bf16.msra.mxu0 %v4977_v55  ;;  %5154 = vmatprep.subr.bf16.mxu1 %v5153_v51  ;;  %v5019_v1 = vpack.c.bf16 %v530_v20, %v529_v46  ;;  %v532_v55 = vld [vmem:[%s8317_s1 + $0x118] sm:$0xff]  ;;  %v550_v33 = vld [vmem:[%s8317_s1 + $0x1a8] sm:$0xff]  ;;  %v5163_v51 = vpack.c.bf16 %v3901_v53, %v3900_v36  ;;  %v535_v46 = vld [vmem:[%s8317_s1 + $0x130] sm:$0xff]  ;;  %v5173_v53 = vpack.c.bf16 %v3923_v48, %v3922_v43 }
  0xec   : > { %4982 = vmatprep.subr.bf16.mxu0 %v4981_v42  ;;  %v5023_v52 = vpack.c.bf16 %v532_v55, %v531_v35  ;;  %v5025_v50 = vpack.c.bf16 %v550_v33, %v549_v40  ;;  %v3904_v20 = vld [vmem:[%s8317_s1 + $0x960] sm:$0xff]  ;;  %v5031_v36 = vpack.c.bf16 %v536_v28, %v535_v46  ;;  %v3907_v55 = vld [vmem:[%s8317_s1 + $0x978] sm:$0xff]  ;;  %v3941_v40 = vld [vmem:[%s8317_s1 + $0xa88] sm:$0xff] }
  0xed   : > { %v5171_v35 = vpack.c.bf16 %v3905_v63, %v3904_v20  ;;  %v555_v33 = vld [vmem:[%s8317_s1 + $0x1d0] sm:$0xff]  ;;  %v541_v20 = vld [vmem:[%s8317_s1 + $0x160] sm:$0xff]  ;;  %v542_v43 = vld [vmem:[%s8317_s1 + $0x168] sm:$0xff] }
  0xee   : > { %5156 = vmatpush3.bf16.msra.mxu1 %v5155_v3  ;;  %v551_v3 = vld [vmem:[%s8317_s1 + $0x1b0] sm:$0xff]  ;;  %v3944_v48 = vld [vmem:[%s8317_s1 + $0xaa0] sm:$0xff] }
  0xef   : > { %4984 = vmatpush3.bf16.msra.mxu0 %v4981_v42  ;;  %5158 = vmatprep.subr.bf16.mxu1 %v5157_v17  ;;  %v3902_v42 = vld [vmem:[%s8317_s1 + $0x950] sm:$0xff]  ;;  %v552_v17 = vld [vmem:[%s8317_s1 + $0x1b8] sm:$0xff] }
  0xf0   : > { %5018 = vmatprep.subr.bf16.mxu0 %v5017_v12  ;;  %v5167_v24 = vpack.c.bf16 %v3903_v60, %v3902_v42  ;;  %v5169_v12 = vpack.c.bf16 %v3921_v5, %v3920_v25  ;;  %v5029_v41 = vpack.c.bf16 %v552_v17, %v551_v3  ;;  %v539_v42 = vld [vmem:[%s8317_s1 + $0x150] sm:$0xff]  ;;  %v3924_v60 = vld [vmem:[%s8317_s1 + $0xa00] sm:$0xff]  ;;  %v540_v25 = vld [vmem:[%s8317_s1 + $0x158] sm:$0xff] }
  0xf1   : > { %v3942_v5 = vld [vmem:[%s8317_s1 + $0xa90] sm:$0xff]  ;;  %v3943_v3 = vld [vmem:[%s8317_s1 + $0xa98] sm:$0xff]  ;;  %v557_v17 = vld [vmem:[%s8317_s1 + $0x1e0] sm:$0xff] }
  0xf2   : > { %4753 = vmatmul.mubr.f32.vlgmr.msra.gmra.mrb[12].mxu0 %v849_v57  ;;  %5160 = vmatpush3.bf16.msra.mxu1 %v5159_v49  ;;  %v553_v49 = vld [vmem:[%s8317_s1 + $0x1c0] sm:$0xff]  ;;  %v5181_v46 = vpack.c.bf16 %v3943_v3, %v3942_v5  ;;  %v3926_v63 = vld [vmem:[%s8317_s1 + $0xa10] sm:$0xff]  ;;  %v612_v3 = vld [vmem:[%s8317_s1 + $0x398] sm:$0xff] }
  0xf3   : > { %5020 = vmatpush3.bf16.msra.mxu0 %v5019_v1  ;;  %3879 = vmatprep.mubr.msk.f32.mxu0 %vm6186_vm4, %v5955_v23  ;;  %v534_v23 = vld [vmem:[%s8317_s1 + $0x128] sm:$0xff]  ;;  %v3940_v57 = vld [vmem:[%s8317_s1 + $0xa80] sm:$0xff]  ;;  %v611_v5 = vld [vmem:[%s8317_s1 + $0x390] sm:$0xff] }
  0xf4   : > { %5022 = vmatprep.subr.bf16.mxu0 %v5021_v39  ;;  %5162 = vmatprep.subr.bf16.mxu1 %v5161_v10  ;;  %v5027_v16 = vpack.c.bf16 %v534_v23, %v533_v14  ;;  %v554_v1 = vld [vmem:[%s8317_s1 + $0x1c8] sm:$0xff]  ;;  %v537_v39 = vld [vmem:[%s8317_s1 + $0x140] sm:$0xff]  ;;  %v3906_v10 = vld [vmem:[%s8317_s1 + $0x970] sm:$0xff]  ;;  %v5177_v14 = vpack.c.bf16 %v3941_v40, %v3940_v57 }
  0xf5   : > { %v5033_v6 = vpack.c.bf16 %v554_v1, %v553_v49  ;;  %v3945_v49 = vld [vmem:[%s8317_s1 + $0xaa8] sm:$0xff]  ;;  %v1773_v1 = vrot.slane %v5983_v37, 2  ;;  %v543_v37 = vld [vmem:[%s8317_s1 + $0x170] sm:$0xff]  ;;  %v3947_v40 = vld [vmem:[%s8317_s1 + $0xab8] sm:$0xff] }
  0xf6   : > { %5164 = vmatpush3.bf16.msra.mxu1 %v5163_v51  ;;  %v556_v51 = vld [vmem:[%s8317_s1 + $0x1d8] sm:$0xff]  ;;  %v3946_v57 = vld [vmem:[%s8317_s1 + $0xab0] sm:$0xff] }
  0xf7   : > { %5024 = vmatpush3.bf16.msra.mxu0 %v5023_v52  ;;  %5166 = vmatprep.subr.bf16.mxu1 %v5165_v8  ;;  %v5175_v52 = vpack.c.bf16 %v3907_v55, %v3906_v10  ;;  %v5035_v8 = vpack.c.bf16 %v538_v11, %v537_v39  ;;  %v5037_v23 = vpack.c.bf16 %v556_v51, %v555_v33  ;;  %v3928_v55 = vld [vmem:[%s8317_s1 + $0xa20] sm:$0xff]  ;;  %v544_v11 = vld [vmem:[%s8317_s1 + $0x178] sm:$0xff] }
  0xf8   : > { %5026 = vmatprep.subr.bf16.mxu0 %v5025_v50  ;;  %v3925_v50 = vld [vmem:[%s8317_s1 + $0xa08] sm:$0xff]  ;;  %v5043_v10 = vpack.c.bf16 %v542_v43, %v541_v20  ;;  %v609_v51 = vld [vmem:[%s8317_s1 + $0x380] sm:$0xff]  ;;  %v596_v43 = vld [vmem:[%s8317_s1 + $0x318] sm:$0xff] }
  0xf9   : > { %v3933_v20 = vld [vmem:[%s8317_s1 + $0xa48] sm:$0xff] }
  0xfa   : > { %5168 = vmatpush3.bf16.msra.mxu1 %v5167_v24  ;;  %v558_v24 = vld [vmem:[%s8317_s1 + $0x1e8] sm:$0xff] }
  0xfb   : > { %5028 = vmatpush3.bf16.msra.mxu0 %v5027_v16  ;;  %5170 = vmatprep.subr.bf16.mxu1 %v5169_v12  ;;  %v5179_v16 = vpack.c.bf16 %v3925_v50, %v3924_v60  ;;  %v5039_v12 = vpack.c.bf16 %v540_v25, %v539_v42  ;;  %v5041_v28 = vpack.c.bf16 %v558_v24, %v557_v17  ;;  %v3931_v60 = vld [vmem:[%s8317_s1 + $0xa38] sm:$0xff]  ;;  %v594_v25 = vld [vmem:[%s8317_s1 + $0x308] sm:$0xff]  ;;  %v3948_v17 = vld [vmem:[%s8317_s1 + $0xac0] sm:$0xff] }
  0xfc   : > { %5030 = vmatprep.subr.bf16.mxu0 %v5029_v41  ;;  %v3927_v41 = vld [vmem:[%s8317_s1 + $0xa18] sm:$0xff]  ;;  %v5189_v42 = vpack.c.bf16 %v3947_v40, %v3946_v57  ;;  %v3949_v24 = vld [vmem:[%s8317_s1 + $0xac8] sm:$0xff]  ;;  %v615_v57 = vld [vmem:[%s8317_s1 + $0x3b0] sm:$0xff] }
  0xfd   : > { %v5183_v39 = vpack.c.bf16 %v3927_v41, %v3926_v63  ;;  %v5085_v63 = vpack.c.bf16 %v612_v3, %v611_v5  ;;  %v5193_v41 = vpack.c.bf16 %v3949_v24, %v3948_v17  ;;  %v616_v40 = vld [vmem:[%s8317_s1 + $0x3b8] sm:$0xff]  ;;  %v601_v24 = vld [vmem:[%s8317_s1 + $0x340] sm:$0xff] }
  0xfe   : > { %5172 = vmatpush3.bf16.msra.mxu1 %v5171_v35  ;;  %v1774_v35 = vrot.slane %v6000_v45, 2 }
  0xff   : > { %5032 = vmatpush3.bf16.msra.mxu0 %v5031_v36  ;;  %5174 = vmatprep.subr.bf16.mxu1 %v5173_v53  ;;  %v559_v36 = vld [vmem:[%s8317_s1 + $0x1f0] sm:$0xff]  ;;  %v560_v53 = vld [vmem:[%s8317_s1 + $0x1f8] sm:$0xff] }
 0x100   : > { %5034 = vmatprep.subr.bf16.mxu0 %v5033_v6  ;;  %v3929_v6 = vld [vmem:[%s8317_s1 + $0xa28] sm:$0xff]  ;;  %v1775_v33 = vsel %vm1763_vm3, %v1773_v1, %v1774_v35  ;;  %v3950_v1 = vld [vmem:[%s8317_s1 + $0xad0] sm:$0xff] }
 0x102   : > { %5176 = vmatpush3.bf16.msra.mxu1 %v5175_v52  ;;  %v610_v52 = vld [vmem:[%s8317_s1 + $0x388] sm:$0xff] }
 0x103   : > { %5036 = vmatpush3.bf16.msra.mxu0 %v5035_v8  ;;  %5178 = vmatprep.subr.bf16.mxu1 %v5177_v14  ;;  %v5187_v8 = vpack.c.bf16 %v3929_v6, %v3928_v55  ;;  %v5047_v14 = vpack.c.bf16 %v544_v11, %v543_v37  ;;  %v5081_v50 = vpack.c.bf16 %v610_v52, %v609_v51  ;;  %v3935_v37 = vld [vmem:[%s8317_s1 + $0xa58] sm:$0xff]  ;;  %v598_v6 = vld [vmem:[%s8317_s1 + $0x328] sm:$0xff] }
 0x104   : > { %5038 = vmatprep.subr.bf16.mxu0 %v5037_v23  ;;  %v593_v23 = vld [vmem:[%s8317_s1 + $0x300] sm:$0xff]  ;;  %v3953_v11 = vld [vmem:[%s8317_s1 + $0xae8] sm:$0xff] }
 0x105   : > { %1892 = vmatmul.mubr.f32.vlgmr.msra.gmra.mrb[12].mxu1 %v6228_v21  ;;  %v5185_v21 = vpack.c.bf16 %v3945_v49, %v3944_v48  ;;  %v613_v48 = vld [vmem:[%s8317_s1 + $0x3a0] sm:$0xff]  ;;  %v614_v49 = vld [vmem:[%s8317_s1 + $0x3a8] sm:$0xff] }
 0x106   : > { %1896 = vmatprep.mubr.f32.mxu1 %v6231_v19  ;;  %5180 = vmatpush3.bf16.msra.mxu1 %v5179_v16  ;;  %v5045_v19 = vpack.c.bf16 %v560_v53, %v559_v36  ;;  %v3951_v36 = vld [vmem:[%s8317_s1 + $0xad8] sm:$0xff] }
 0x107   : > { %5040 = vmatpush3.bf16.msra.mxu0 %v5039_v12  ;;  %5182 = vmatprep.subr.bf16.mxu1 %v5181_v46  ;;  %v5083_v12 = vpack.c.bf16 %v594_v25, %v593_v23  ;;  %v3932_v46 = vld [vmem:[%s8317_s1 + $0xa40] sm:$0xff]  ;;  %v5197_v55 = vpack.c.bf16 %v3951_v36, %v3950_v1  ;;  %v618_v25 = vld [vmem:[%s8317_s1 + $0x3c8] sm:$0xff]  ;;  %v603_v36 = vld [vmem:[%s8317_s1 + $0x350] sm:$0xff] }
 0x108   : > { %5042 = vmatprep.subr.bf16.mxu0 %v5041_v28  ;;  %v595_v28 = vld [vmem:[%s8317_s1 + $0x310] sm:$0xff]  ;;  %v5195_v53 = vpack.c.bf16 %v3933_v20, %v3932_v46  ;;  %v617_v23 = vld [vmem:[%s8317_s1 + $0x3c0] sm:$0xff]  ;;  %v602_v20 = vld [vmem:[%s8317_s1 + $0x348] sm:$0xff] }
 0x109   : > { %1897 = vmatmul.mubr.f32.gmra.mrb[14].mxu1 %v6240_v30  ;;  %v3930_v30 = vld [vmem:[%s8317_s1 + $0xa30] sm:$0xff]  ;;  %v5097_v46 = vpack.c.bf16 %v618_v25, %v617_v23  ;;  %v624_v25 = vld [vmem:[%s8317_s1 + $0x3f8] sm:$0xff] }
 0x10a   : > { %5184 = vmatpush3.bf16.msra.mxu1 %v5183_v39  ;;  %1966 = vmatprep.mubr.f32.mxu1 %v1775_v33  ;;  %v5191_v16 = vpack.c.bf16 %v3931_v60, %v3930_v30  ;;  %v5087_v39 = vpack.c.bf16 %v596_v43, %v595_v28  ;;  %v5093_v30 = vpack.c.bf16 %v616_v40, %v615_v57  ;;  %v3954_v60 = vld [vmem:[%s8317_s1 + $0xaf0] sm:$0xff]  ;;  %v620_v43 = vld [vmem:[%s8317_s1 + $0x3d8] sm:$0xff] }
 0x10b   : > { %5044 = vmatpush3.bf16.msra.mxu0 %v5043_v10  ;;  %5186 = vmatprep.subr.bf16.mxu1 %v5185_v21  ;;  %v597_v10 = vld [vmem:[%s8317_s1 + $0x320] sm:$0xff]  ;;  %v3934_v21 = vld [vmem:[%s8317_s1 + $0xa50] sm:$0xff] }
 0x10c   : > { %5046 = vmatprep.subr.bf16.mxu0 %v5045_v19  ;;  %v3952_v19 = vld [vmem:[%s8317_s1 + $0xae0] sm:$0xff]  ;;  %v5199_v33 = vpack.c.bf16 %v3935_v37, %v3934_v21  ;;  %v5091_v51 = vpack.c.bf16 %v598_v6, %v597_v10  ;;  %v619_v28 = vld [vmem:[%s8317_s1 + $0x3d0] sm:$0xff]  ;;  %v1771_v21 = vrot.slane %v6244_v31, 2  ;;  %v604_v37 = vld [vmem:[%s8317_s1 + $0x358] sm:$0xff]  ;;  %v1797_v6 = vrot.slane %v6261_v27, 2 }
 0x10d   : > { %v5201_v52 = vpack.c.bf16 %v3953_v11, %v3952_v19  ;;  %v5101_v10 = vpack.c.bf16 %v620_v43, %v619_v28  ;;  %v621_v19 = vld [vmem:[%s8317_s1 + $0x3e0] sm:$0xff]  ;;  %v1770_v11 = vrot.slane %v6265_v7, 2  ;;  %v5103_v40 = vpack.c.bf16 %v604_v37, %v603_v36  ;;  %v623_v23 = vld [vmem:[%s8317_s1 + $0x3f0] sm:$0xff]  ;;  %v626_v28 = vld [vmem:[%s8317_s1 + $0x408] sm:$0xff] }
 0x10e   : > { %5188 = vmatpush3.bf16.msra.mxu1 %v5187_v8  ;;  %v599_v8 = vld [vmem:[%s8317_s1 + $0x330] sm:$0xff]  ;;  %v605_v27 = vld [vmem:[%s8317_s1 + $0x360] sm:$0xff]  ;;  %v3995_v36 = vld [vmem:[%s8317_s1 + $0xc38] sm:$0xff] }
 0x10f   : > { %5048 = vmatpush3.bf16.msra.mxu0 %v5047_v14  ;;  %5190 = vmatprep.subr.bf16.mxu1 %v5189_v42  ;;  %v3936_v14 = vld [vmem:[%s8317_s1 + $0xa60] sm:$0xff]  ;;  %v3937_v42 = vld [vmem:[%s8317_s1 + $0xa68] sm:$0xff]  ;;  %v1772_v7 = vsel %vm1763_vm3, %v1770_v11, %v1771_v21 }
 0x110   : > { %5082 = vmatprep.subr.bf16.mxu0 %v5081_v50  ;;  %v3955_v50 = vld [vmem:[%s8317_s1 + $0xaf8] sm:$0xff]  ;;  %v5203_v5 = vpack.c.bf16 %v3937_v42, %v3936_v14  ;;  %v1795_v14 = vrot.slane %v6292_v56, 2  ;;  %v606_v42 = vld [vmem:[%s8317_s1 + $0x368] sm:$0xff]  ;;  %v1786_v56 = vrot.slane %v6121_v2, 2  ;;  %v629_v11 = vld [vmem:[%s8317_s1 + $0x420] sm:$0xff] }
 0x111   : > { %v5205_v17 = vpack.c.bf16 %v3955_v50, %v3954_v60  ;;  %v1798_v60 = vsel %vm1763_vm3, %v1774_v35, %v1797_v6  ;;  %v1785_v50 = vrot.slane %v6067_v32, 2  ;;  %v607_v32 = vld [vmem:[%s8317_s1 + $0x370] sm:$0xff]  ;;  %v3992_v35 = vld [vmem:[%s8317_s1 + $0xc20] sm:$0xff]  ;;  %v4013_v37 = vld [vmem:[%s8317_s1 + $0xcc8] sm:$0xff] }
 0x112   : > { %3881 = vmatmul.mubr.msk.f32.vlgmr.msra.gmra.mrb[14].mxu0 %vm6186_vm4, %v6213_v13  ;;  %5192 = vmatpush3.bf16.msra.mxu1 %v5191_v16  ;;  %v5089_v13 = vpack.c.bf16 %v614_v49, %v613_v48  ;;  %v3938_v16 = vld [vmem:[%s8317_s1 + $0xa70] sm:$0xff]  ;;  %v5099_v49 = vpack.c.bf16 %v602_v20, %v601_v24  ;;  %v1796_v24 = vsel %vm1763_vm3, %v1771_v21, %v1795_v14  ;;  %v4011_v20 = vld [vmem:[%s8317_s1 + $0xcb8] sm:$0xff]  ;;  %v4012_v21 = vld [vmem:[%s8317_s1 + $0xcc0] sm:$0xff] }
 0x113   : > { %1387 = vmatprep.mubr.f32.mxu0 %v6000_v45  ;;  %5084 = vmatpush3.bf16.msra.mxu0 %v5083_v12  ;;  %v3939_v12 = vld [vmem:[%s8317_s1 + $0xa78] sm:$0xff]  ;;  %v5107_v45 = vpack.c.bf16 %v606_v42, %v605_v27  ;;  %v3997_v6 = vld [vmem:[%s8317_s1 + $0xc48] sm:$0xff]  ;;  %v631_v42 = vld [vmem:[%s8317_s1 + $0x430] sm:$0xff] }
 0x114   : > { %5086 = vmatprep.subr.bf16.mxu0 %v5085_v63  ;;  %5194 = vmatprep.subr.bf16.mxu1 %v5193_v41  ;;  %v4004_v63 = vld [vmem:[%s8317_s1 + $0xc80] sm:$0xff]  ;;  %v4005_v41 = vld [vmem:[%s8317_s1 + $0xc88] sm:$0xff]  ;;  %v5207_v48 = vpack.c.bf16 %v3939_v12, %v3938_v16  ;;  %v5109_v16 = vpack.c.bf16 %v624_v25, %v623_v23  ;;  %v608_v12 = vld [vmem:[%s8317_s1 + $0x378] sm:$0xff] }
 0x115   : > { %v5241_v1 = vpack.c.bf16 %v4005_v41, %v4004_v63  ;;  %v1787_v63 = vsel %vm1763_vm3, %v1785_v50, %v1786_v56  ;;  %v625_v41 = vld [vmem:[%s8317_s1 + $0x400] sm:$0xff]  ;;  %v4017_v14 = vld [vmem:[%s8317_s1 + $0xce8] sm:$0xff] }
 0x116   : > { %1388 = vmatmul.mubr.f32.gmra.mrb[16].mxu0 %v6244_v31  ;;  %5196 = vmatpush3.bf16.msra.mxu1 %v5195_v53  ;;  %v3988_v53 = vld [vmem:[%s8317_s1 + $0xc00] sm:$0xff]  ;;  %v622_v31 = vld [vmem:[%s8317_s1 + $0x3e8] sm:$0xff] }
 0x117   : > { %5088 = vmatpush3.bf16.msra.mxu0 %v5087_v39  ;;  %3887 = vmatprep.mubr.msk.f32.mxu0 %vm6186_vm4, %v6045_v15  ;;  %v600_v15 = vld [vmem:[%s8317_s1 + $0x338] sm:$0xff]  ;;  %v3989_v39 = vld [vmem:[%s8317_s1 + $0xc08] sm:$0xff]  ;;  %v4000_v50 = vld [vmem:[%s8317_s1 + $0xc60] sm:$0xff] }
 0x118   : > { %5090 = vmatprep.subr.bf16.mxu0 %v5089_v13  ;;  %5198 = vmatprep.subr.bf16.mxu1 %v5197_v55  ;;  %v5095_v3 = vpack.c.bf16 %v600_v15, %v599_v8  ;;  %v4006_v13 = vld [vmem:[%s8317_s1 + $0xc90] sm:$0xff]  ;;  %v4007_v55 = vld [vmem:[%s8317_s1 + $0xc98] sm:$0xff]  ;;  %v5243_v57 = vpack.c.bf16 %v3989_v39, %v3988_v53  ;;  %v5105_v8 = vpack.c.bf16 %v622_v31, %v621_v19  ;;  %v4009_v15 = vld [vmem:[%s8317_s1 + $0xca8] sm:$0xff] }
 0x119   : > { %v5113_v53 = vpack.c.bf16 %v626_v28, %v625_v41  ;;  %v627_v39 = vld [vmem:[%s8317_s1 + $0x410] sm:$0xff]  ;;  %v5257_v31 = vpack.c.bf16 %v4013_v37, %v4012_v21  ;;  %v4001_v23 = vld [vmem:[%s8317_s1 + $0xc68] sm:$0xff]  ;;  %v1783_v41 = vrot.slane %v6127_v4, 2  ;;  %v1805_v28 = vrot.slane %v6157_v34, 2 }
 0x11a   : > { %5200 = vmatpush3.bf16.msra.mxu1 %v5199_v33  ;;  %v5245_v33 = vpack.c.bf16 %v4007_v55, %v4006_v13  ;;  %v3996_v55 = vld [vmem:[%s8317_s1 + $0xc40] sm:$0xff]  ;;  %v639_v34 = vld [vmem:[%s8317_s1 + $0x470] sm:$0xff]  ;;  %v3957_v21 = vld [vmem:[%s8317_s1 + $0xb08] sm:$0xff] }
 0x11b   : > { %5092 = vmatpush3.bf16.msra.mxu0 %v5091_v51  ;;  %5202 = vmatprep.subr.bf16.mxu1 %v5201_v52  ;;  %v3990_v51 = vld [vmem:[%s8317_s1 + $0xc10] sm:$0xff]  ;;  %v3991_v52 = vld [vmem:[%s8317_s1 + $0xc18] sm:$0xff]  ;;  %v5259_v27 = vpack.c.bf16 %v3997_v6, %v3996_v55  ;;  %v1779_v55 = vrot.slane %v6288_v0, 2  ;;  %v1780_v6 = vrot.slane %v6298_v59, 2  ;;  %v3977_v0 = vld [vmem:[%s8317_s1 + $0xba8] sm:$0xff] }
 0x11c   : > { %5094 = vmatprep.subr.bf16.mxu0 %v5093_v30  ;;  %v4008_v30 = vld [vmem:[%s8317_s1 + $0xca0] sm:$0xff]  ;;  %v3974_v37 = vld [vmem:[%s8317_s1 + $0xb90] sm:$0xff]  ;;  %v4027_v59 = vld [vmem:[%s8317_s1 + $0xd38] sm:$0xff] }
 0x11e   : > { %5204 = vmatpush3.bf16.msra.mxu1 %v5203_v5  ;;  %v5247_v5 = vpack.c.bf16 %v3991_v52, %v3990_v51  ;;  %v3998_v51 = vld [vmem:[%s8317_s1 + $0xc50] sm:$0xff]  ;;  %v3999_v52 = vld [vmem:[%s8317_s1 + $0xc58] sm:$0xff] }
 0x11f   : > { %5096 = vmatpush3.bf16.msra.mxu0 %v5095_v3  ;;  %5206 = vmatprep.subr.bf16.mxu1 %v5205_v17  ;;  %v5249_v3 = vpack.c.bf16 %v4009_v15, %v4008_v30  ;;  %v3993_v17 = vld [vmem:[%s8317_s1 + $0xc28] sm:$0xff]  ;;  %v632_v30 = vld [vmem:[%s8317_s1 + $0x438] sm:$0xff]  ;;  %v5263_v15 = vpack.c.bf16 %v3999_v52, %v3998_v51  ;;  %v3960_v52 = vld [vmem:[%s8317_s1 + $0xb20] sm:$0xff] }
 0x120   : > { %5098 = vmatprep.subr.bf16.mxu0 %v5097_v46  ;;  %v4010_v46 = vld [vmem:[%s8317_s1 + $0xcb0] sm:$0xff]  ;;  %v5251_v43 = vpack.c.bf16 %v3993_v17, %v3992_v35  ;;  %v5125_v25 = vpack.c.bf16 %v632_v30, %v631_v42  ;;  %v4003_v17 = vld [vmem:[%s8317_s1 + $0xc78] sm:$0xff] }
 0x121   : > { %v4002_v35 = vld [vmem:[%s8317_s1 + $0xc70] sm:$0xff] }
 0x122   : > { %5208 = vmatpush3.bf16.msra.mxu1 %v5207_v48  ;;  %v5111_v48 = vpack.c.bf16 %v608_v12, %v607_v32  ;;  %v636_v12 = vld [vmem:[%s8317_s1 + $0x458] sm:$0xff]  ;;  %v3962_v30 = vld [vmem:[%s8317_s1 + $0xb30] sm:$0xff] }
 0x123   : > { %5100 = vmatpush3.bf16.msra.mxu0 %v5099_v49  ;;  %5242 = vmatprep.subr.bf16.mxu1 %v5241_v1  ;;  %v5253_v49 = vpack.c.bf16 %v4011_v20, %v4010_v46  ;;  %v3994_v1 = vld [vmem:[%s8317_s1 + $0xc30] sm:$0xff]  ;;  %v5271_v46 = vpack.c.bf16 %v4003_v17, %v4002_v35  ;;  %v1782_v20 = vrot.slane %v6060_v29, 2  ;;  %v3967_v17 = vld [vmem:[%s8317_s1 + $0xb58] sm:$0xff] }
 0x124   : > { %5102 = vmatprep.subr.bf16.mxu0 %v5101_v10  ;;  %v628_v10 = vld [vmem:[%s8317_s1 + $0x418] sm:$0xff]  ;;  %v5255_v13 = vpack.c.bf16 %v3995_v36, %v3994_v1  ;;  %v1803_v1 = vrot.slane %v6162_v38, 2  ;;  %v3973_v38 = vld [vmem:[%s8317_s1 + $0xb88] sm:$0xff]  ;;  %v3966_v35 = vld [vmem:[%s8317_s1 + $0xb50] sm:$0xff] }
 0x125   : > { %1967 = vmatmul.mubr.f32.vlgmr.msra.gmra.mrb[16].mxu1 %v1772_v7  ;;  %v5117_v19 = vpack.c.bf16 %v628_v10, %v627_v39  ;;  %v640_v36 = vld [vmem:[%s8317_s1 + $0x478] sm:$0xff]  ;;  %v3956_v10 = vld [vmem:[%s8317_s1 + $0xb00] sm:$0xff] }
 0x126   : > { %1971 = vmatprep.mubr.f32.mxu1 %v1798_v60  ;;  %5244 = vmatpush3.bf16.msra.mxu1 %v5243_v57  ;;  %v630_v57 = vld [vmem:[%s8317_s1 + $0x428] sm:$0xff]  ;;  %v5141_v39 = vpack.c.bf16 %v640_v36, %v639_v34  ;;  %v3971_v34 = vld [vmem:[%s8317_s1 + $0xb78] sm:$0xff] }
 0x127   : > { %5104 = vmatpush3.bf16.msra.mxu0 %v5103_v40  ;;  %5246 = vmatprep.subr.bf16.mxu1 %v5245_v33  ;;  %v4014_v40 = vld [vmem:[%s8317_s1 + $0xcd0] sm:$0xff]  ;;  %v4015_v33 = vld [vmem:[%s8317_s1 + $0xcd8] sm:$0xff]  ;;  %v5121_v7 = vpack.c.bf16 %v630_v57, %v629_v11 }
 0x128   : > { %5106 = vmatprep.subr.bf16.mxu0 %v5105_v8  ;;  %v5261_v8 = vpack.c.bf16 %v4015_v33, %v4014_v40  ;;  %v3958_v11 = vld [vmem:[%s8317_s1 + $0xb10] sm:$0xff]  ;;  %v3959_v57 = vld [vmem:[%s8317_s1 + $0xb18] sm:$0xff]  ;;  %v3976_v40 = vld [vmem:[%s8317_s1 + $0xba0] sm:$0xff]  ;;  %v1781_v33 = vsel %vm1763_vm3, %v1779_v55, %v1780_v6 }
 0x129   : > { %1972 = vmatmul.mubr.f32.gmra.mrb[18].mxu1 %v1796_v24  ;;  %v5217_v51 = vpack.c.bf16 %v3977_v0, %v3976_v40  ;;  %v4023_v55 = vld [vmem:[%s8317_s1 + $0xd18] sm:$0xff]  ;;  %v1788_v40 = vrot.slane %v6552_v26, 2  ;;  %v1789_v0 = vrot.slane %v6548_v22, 2 }
 0x12a   : > { %5248 = vmatpush3.bf16.msra.mxu1 %v5247_v5  ;;  %2116 = vmatprep.mubr.f32.mxu1 %v1787_v63  ;;  %v4018_v5 = vld [vmem:[%s8317_s1 + $0xcf0] sm:$0xff] }
 0x12b   : > { %5108 = vmatpush3.bf16.msra.mxu0 %v5107_v45  ;;  %5250 = vmatprep.subr.bf16.mxu1 %v5249_v3  ;;  %v634_v45 = vld [vmem:[%s8317_s1 + $0x448] sm:$0xff]  ;;  %v5267_v3 = vpack.c.bf16 %v4001_v23, %v4000_v50  ;;  %v5269_v32 = vpack.c.bf16 %v4019_v54, %v4018_v5  ;;  %v3964_v5 = vld [vmem:[%s8317_s1 + $0xb40] sm:$0xff] }
 0x12c   : > { %5110 = vmatprep.subr.bf16.mxu0 %v5109_v16  ;;  %v635_v16 = vld [vmem:[%s8317_s1 + $0x450] sm:$0xff]  ;;  %v3981_v50 = vld [vmem:[%s8317_s1 + $0xbc8] sm:$0xff] }
 0x12d   : > { %v5133_v63 = vpack.c.bf16 %v636_v12, %v635_v16  ;;  %v3965_v54 = vld [vmem:[%s8317_s1 + $0xb48] sm:$0xff]  ;;  %v5231_v12 = vpack.c.bf16 %v3967_v17, %v3966_v35 }
 0x12e   : > { %5252 = vmatpush3.bf16.msra.mxu1 %v5251_v43  ;;  %v637_v43 = vld [vmem:[%s8317_s1 + $0x460] sm:$0xff]  ;;  %v3985_v16 = vld [vmem:[%s8317_s1 + $0xbe8] sm:$0xff] }
 0x12f   : > { %5112 = vmatpush3.bf16.msra.mxu0 %v5111_v48  ;;  %5254 = vmatprep.subr.bf16.mxu1 %v5253_v49  ;;  %v638_v48 = vld [vmem:[%s8317_s1 + $0x468] sm:$0xff]  ;;  %v1784_v49 = vsel %vm1763_vm3, %v1782_v20, %v1783_v41  ;;  %v3968_v20 = vld [vmem:[%s8317_s1 + $0xb60] sm:$0xff] }
 0x130   : > { %5114 = vmatprep.subr.bf16.mxu0 %v5113_v53  ;;  %v5137_v29 = vpack.c.bf16 %v638_v48, %v637_v43  ;;  %v3987_v43 = vld [vmem:[%s8317_s1 + $0xbf8] sm:$0xff] }
 0x132   : > { %3889 = vmatmul.mubr.msk.f32.vlgmr.msra.gmra.mrb[18].mxu0 %vm6186_vm4, %v6021_v58  ;;  %5256 = vmatpush3.bf16.msra.mxu1 %v5255_v13  ;;  %v4016_v58 = vld [vmem:[%s8317_s1 + $0xce0] sm:$0xff]  ;;  %v3975_v13 = vld [vmem:[%s8317_s1 + $0xb98] sm:$0xff] }
 0x133   : > { %1537 = vmatprep.mubr.f32.mxu0 %v6121_v2  ;;  %5116 = vmatpush3.bf16.msra.mxu0 %v5113_v53  ;;  %v5265_v60 = vpack.c.bf16 %v4017_v14, %v4016_v58  ;;  %v1804_v53 = vsel %vm1763_vm3, %v1783_v41, %v1803_v1  ;;  %v3972_v2 = vld [vmem:[%s8317_s1 + $0xb80] sm:$0xff]  ;;  %v3979_v58 = vld [vmem:[%s8317_s1 + $0xbb8] sm:$0xff] }
 0x134   : > { %5118 = vmatprep.subr.bf16.mxu0 %v5117_v19  ;;  %5258 = vmatprep.subr.bf16.mxu1 %v5257_v31  ;;  %v5213_v31 = vpack.c.bf16 %v3975_v13, %v3974_v37  ;;  %v1777_v37 = vrot.slane %v6511_v62, 2  ;;  %v4022_v13 = vld [vmem:[%s8317_s1 + $0xd10] sm:$0xff]  ;;  %v4025_v62 = vld [vmem:[%s8317_s1 + $0xd28] sm:$0xff] }
 0x136   : > { %1538 = vmatmul.mubr.f32.gmra.mrb[20].mxu0 %v6127_v4  ;;  %5260 = vmatpush3.bf16.msra.mxu1 %v5259_v27  ;;  %v1806_v4 = vsel %vm1763_vm3, %v1786_v56, %v1805_v28  ;;  %v5209_v56 = vpack.c.bf16 %v3973_v38, %v3972_v2  ;;  %v5215_v27 = vpack.c.bf16 %v3959_v57, %v3958_v11  ;;  %v3986_v28 = vld [vmem:[%s8317_s1 + $0xbf0] sm:$0xff]  ;;  %v1799_v57 = vrot.slane %v6556_v47, 2 }
 0x137   : > { %5120 = vmatpush3.bf16.msra.mxu0 %v5117_v19  ;;  %4787 = vmatprep.mubr.msk.f32.mxu0 %vm6186_vm4, %v6514_v18  ;;  %v633_v18 = vld [vmem:[%s8317_s1 + $0x440] sm:$0xff]  ;;  %v5211_v19 = vpack.c.bf16 %v3957_v21, %v3956_v10  ;;  %v5237_v1 = vpack.c.bf16 %v3987_v43, %v3986_v28  ;;  %v1776_v21 = vrot.slane %v6507_v61, 2 }
 0x138   : > { %5122 = vmatprep.subr.bf16.mxu0 %v5121_v7  ;;  %5262 = vmatprep.subr.bf16.mxu1 %v5261_v8  ;;  %v5129_v24 = vpack.c.bf16 %v634_v45, %v633_v18  ;;  %v3978_v8 = vld [vmem:[%s8317_s1 + $0xbb0] sm:$0xff]  ;;  %v3983_v45 = vld [vmem:[%s8317_s1 + $0xbd8] sm:$0xff]  ;;  %v4024_v61 = vld [vmem:[%s8317_s1 + $0xd20] sm:$0xff] }
 0x139   : > { %v5221_v42 = vpack.c.bf16 %v3979_v58, %v3978_v8  ;;  %v3982_v18 = vld [vmem:[%s8317_s1 + $0xbd0] sm:$0xff]  ;;  %v1778_v11 = vsel %vm1763_vm3, %v1776_v21, %v1777_v37  ;;  %v5281_v47 = vpack.c.bf16 %v4025_v62, %v4024_v61 }
 0x13a   : > { %5264 = vmatpush3.bf16.msra.mxu1 %v5263_v15  ;;  %v3963_v15 = vld [vmem:[%s8317_s1 + $0xb38] sm:$0xff] }
 0x13b   : > { %5124 = vmatpush3.bf16.msra.mxu0 %v5121_v7  ;;  %5266 = vmatprep.subr.bf16.mxu1 %v5265_v60  ;;  %v3961_v7 = vld [vmem:[%s8317_s1 + $0xb28] sm:$0xff]  ;;  %v3980_v60 = vld [vmem:[%s8317_s1 + $0xbc0] sm:$0xff]  ;;  %v5223_v23 = vpack.c.bf16 %v3963_v15, %v3962_v30  ;;  %v4031_v30 = vld [vmem:[%s8317_s1 + $0xd58] sm:$0xff] }
 0x13c   : > { %5126 = vmatprep.subr.bf16.mxu0 %v5125_v25  ;;  %v5219_v14 = vpack.c.bf16 %v3961_v7, %v3960_v52  ;;  %v4029_v52 = vld [vmem:[%s8317_s1 + $0xd48] sm:$0xff] }
 0x13e   : > { %5268 = vmatpush3.bf16.msra.mxu1 %v5267_v3  ;;  %v5227_v3 = vpack.c.bf16 %v3965_v54, %v3964_v5 }
 0x13f   : > { %5128 = vmatpush3.bf16.msra.mxu0 %v5125_v25  ;;  %5270 = vmatprep.subr.bf16.mxu1 %v5269_v32  ;;  %v5225_v25 = vpack.c.bf16 %v3981_v50, %v3980_v60  ;;  %v5229_v32 = vpack.c.bf16 %v3983_v45, %v3982_v18  ;;  %v4034_v18 = vld [vmem:[%s8317_s1 + $0xd70] sm:$0xff]  ;;  %v4035_v45 = vld [vmem:[%s8317_s1 + $0xd78] sm:$0xff] }
 0x140   : > { %5130 = vmatprep.subr.bf16.mxu0 %v5129_v24  ;;  %v5301_v35 = vpack.c.bf16 %v4035_v45, %v4034_v18  ;;  %v4062_v45 = vld [vmem:[%s8319_s3 + $0x308] sm:$0xff] }
 0x142   : > { %5272 = vmatpush3.bf16.msra.mxu1 %v5271_v46 }
 0x143   : > { %5132 = vmatpush3.bf16.msra.mxu0 %v5129_v24  ;;  %v3984_v24 = vld [vmem:[%s8317_s1 + $0xbe0] sm:$0xff] }
 0x144   : > { %5134 = vmatprep.subr.bf16.mxu0 %v5133_v63  ;;  %v5233_v46 = vpack.c.bf16 %v3985_v16, %v3984_v24 }
 0x145   : > { %2117 = vmatmul.mubr.f32.vlgmr.msra.gmra.mrb[20].mxu1 %v1784_v49 }
 0x146   : > { %2121 = vmatprep.mubr.f32.mxu1 %v1806_v4  ;;  %v3970_v4 = vld [vmem:[%s8317_s1 + $0xb70] sm:$0xff] }
 0x147   : > { %5136 = vmatpush3.bf16.msra.mxu0 %v5133_v63  ;;  %v3969_v63 = vld [vmem:[%s8317_s1 + $0xb68] sm:$0xff] }
 0x148   : > { %5138 = vmatprep.subr.bf16.mxu0 %v5137_v29 }
 0x149   : > { %2122 = vmatmul.mubr.f32.gmra.mrb[22].mxu1 %v1804_v53  ;;  %v4020_v53 = vld [vmem:[%s8317_s1 + $0xd00] sm:$0xff] }
 0x14b   : > { %5140 = vmatpush3.bf16.msra.mxu0 %v5137_v29  ;;  %v5235_v29 = vpack.c.bf16 %v3969_v63, %v3968_v20 }
 0x14c   : > { %5142 = vmatprep.subr.bf16.mxu0 %v5141_v39 }
 0x14f   : > { %5144 = vmatpush3.bf16.msra.mxu0 %v5141_v39  ;;  %v4021_v39 = vld [vmem:[%s8317_s1 + $0xd08] sm:$0xff] }
 0x150   : > { %5210 = vmatprep.subr.bf16.mxu0 %v5209_v56  ;;  %v5239_v56 = vpack.c.bf16 %v3971_v34, %v3970_v4  ;;  %v5273_v10 = vpack.c.bf16 %v4021_v39, %v4020_v53 }
 0x152   : > { %4788 = vmatmul.mubr.f32.vlgmr.msra.gmra.mrb[12].mxu0 %v6548_v22 }
 0x153   : > { %5212 = vmatpush3.bf16.msra.mxu0 %v5211_v19  ;;  %2041 = vmatprep.mubr.f32.mxu0 %v1781_v33  ;;  %v1801_v19 = vrot.slane %v6528_v44, 2  ;;  %v1800_v33 = vsel %vm1763_vm3, %v1777_v37, %v1799_v57 }
 0x154   : > { %5214 = vmatprep.subr.bf16.mxu0 %v5213_v31  ;;  %v5277_v31 = vpack.c.bf16 %v4023_v55, %v4022_v13 }
 0x155   : > { %v1802_v44 = vsel %vm1763_vm3, %v1780_v6, %v1801_v19  ;;  %v1790_v6 = vsel %vm1763_vm3, %v1788_v40, %v1789_v0 }
 0x157   : > { %5216 = vmatpush3.bf16.msra.mxu0 %v5215_v27  ;;  %v4026_v27 = vld [vmem:[%s8317_s1 + $0xd30] sm:$0xff] }
 0x158   : > { %5218 = vmatprep.subr.bf16.mxu0 %v5217_v51  ;;  %v5285_v22 = vpack.c.bf16 %v4027_v59, %v4026_v27  ;;  %v4028_v51 = vld [vmem:[%s8317_s1 + $0xd40] sm:$0xff] }
 0x159   : > { %v5289_v58 = vpack.c.bf16 %v4029_v52, %v4028_v51 }
 0x15b   : > { %5220 = vmatpush3.bf16.msra.mxu0 %v5219_v14 }
 0x15c   : > { %5222 = vmatprep.subr.bf16.mxu0 %v5221_v42  ;;  %v4030_v42 = vld [vmem:[%s8317_s1 + $0xd50] sm:$0xff] }
 0x15d   : > { %v5293_v50 = vpack.c.bf16 %v4031_v30, %v4030_v42  ;;  %v4050_v30 = vld [vmem:[%s8319_s3 + $0x2a8] sm:$0xff] }
 0x15f   : > { %5224 = vmatpush3.bf16.msra.mxu0 %v5223_v23  ;;  %v4032_v23 = vld [vmem:[%s8317_s1 + $0xd60] sm:$0xff] }
 0x160   : > { %5226 = vmatprep.subr.bf16.mxu0 %v5225_v25  ;;  %v4033_v25 = vld [vmem:[%s8317_s1 + $0xd68] sm:$0xff] }
 0x161   : > { %v5297_v5 = vpack.c.bf16 %v4033_v25, %v4032_v23  ;;  %v4041_v25 = vld [vmem:[%s8319_s3 + $0x260] sm:$0xff] }
 0x163   : > { %5228 = vmatpush3.bf16.msra.mxu0 %v5227_v3 }
 0x164   : > { %5230 = vmatprep.subr.bf16.mxu0 %v5229_v32  ;;  %v4242_v41 = vpop.f32.mrb[0].mxu0 }
 0x165   : > { %v4243_v48 = vpop.f32.mrb[1].mxu0 }
 0x166   : > { %v7336_v49 = vadd.f32 %v4243_v48, %v4242_v41 }
 0x167   : > { %5232 = vmatpush3.bf16.msra.mxu0 %v5231_v12 }
 0x168   : > { %5234 = vmatprep.subr.bf16.mxu0 %v5233_v46  ;;  %v4245_v36 = vpop.f32.mrb[2].mxu0  ;;  %v1807_v46 = vrot.slane %v6703_v9, 2 }
 0x169   : > { %v4246_v2 = vpop.f32.mrb[3].mxu0 }
 0x16a   : > { %v7350_v38 = vadd.f32 %v4246_v2, %v4245_v36  ;;  %v1808_v63 = vsel %vm1763_vm3, %v1789_v0, %v1807_v46 }
 0x16b   : > { %5236 = vmatpush3.bf16.msra.mxu0 %v5235_v29 }
 0x16c   : > { %5238 = vmatprep.subr.bf16.mxu0 %v5237_v1 }
 0x16f   : > { %5240 = vmatpush3.bf16.msra.mxu0 %v5239_v56 }
 0x170   : > { %5274 = vmatprep.subr.bf16.mxu0 %v5273_v10 }
 0x172   : > { %2042 = vmatmul.mubr.f32.vlgmr.msra.gmra.mrb[22].mxu0 %v1778_v11 }
 0x173   : > { %2046 = vmatprep.mubr.f32.mxu0 %v1802_v44  ;;  %5276 = vmatpush3.bf16.msra.mxu0 %v5273_v10 }
 0x174   : > { %5278 = vmatprep.subr.bf16.mxu0 %v5277_v31 }
 0x176   : > { %2047 = vmatmul.mubr.f32.gmra.mrb[24].mxu0 %v1800_v33 }
 0x177   : > { %5280 = vmatpush3.bf16.msra.mxu0 %v5277_v31  ;;  %4822 = vmatprep.mubr.f32.mxu0 %v1790_v6 }
 0x178   : > { %5282 = vmatprep.subr.bf16.mxu0 %v5281_v47  ;;  %v4356_v26 = vpop.f32.mrb[0].mxu1 }
 0x179   : > { %v4357_v7 = vpop.f32.mrb[1].mxu1 }
 0x17a   : > { %v4358_v8 = vadd.f32 %v4357_v7, %v4356_v26  ;;  %v4038_v7 = vld [vmem:[%s8319_s3 + $0x248] sm:$0xff] }
 0x17b   : > { %5284 = vmatpush3.bf16.msra.mxu0 %v5281_v47 }
 0x17c   : > { %5286 = vmatprep.subr.bf16.mxu0 %v5285_v22  ;;  %v4359_v14 = vpop.f32.mrb[2].mxu1 }
 0x17d   : > { %v4360_v15 = vpop.f32.mrb[3].mxu1 }
 0x17e   : > { %v4361_v60 = vadd.f32 %v4360_v15, %v4359_v14  ;;  %v4037_v15 = vld [vmem:[%s8319_s3 + $0x240] sm:$0xff] }
 0x17f   : > { %5288 = vmatpush3.bf16.msra.mxu0 %v5285_v22 }
 0x180   : > { %5290 = vmatprep.subr.bf16.mxu0 %v5289_v58 }
 0x183   : > { %5292 = vmatpush3.bf16.msra.mxu0 %v5289_v58  ;;  %v4042_v58 = vld [vmem:[%s8319_s3 + $0x268] sm:$0xff] }
 0x184   : > { %5294 = vmatprep.subr.bf16.mxu0 %v5293_v50 }
 0x185   : > { %v4280_v54 = vpop.f32.mrb[4].mxu0 }
 0x186   : > { %v4281_v3 = vpop.f32.mrb[5].mxu0 }
 0x187   : > { %v4282_v32 = vadd.f32 %v4281_v3, %v4280_v54  ;;  %5296 = vmatpush3.bf16.msra.mxu0 %v5293_v50  ;;  %v5337_v50 = vpack.c.bf16 %v4050_v30, %v4042_v58  ;;  %v4054_v54 = vld [vmem:[%s8319_s3 + $0x2c8] sm:$0xff] }
 0x188   : > { %5298 = vmatprep.subr.bf16.mxu0 %v5297_v5  ;;  %v4058_v3 = vld [vmem:[%s8319_s3 + $0x2e8] sm:$0xff] }
 0x189   : > { %v1010_v17 = vadd.f32 %v4282_v32, %v7336_v49  ;;  %v4283_v24 = vpop.f32.mrb[6].mxu0  ;;  %v4066_v32 = vld [vmem:[%s8319_s3 + $0x328] sm:$0xff] }
 0x18a   : > { %v4284_v16 = vpop.f32.mrb[7].mxu0 }
 0x18b   : > { %v4285_v12 = vadd.f32 %v4284_v16, %v4283_v24  ;;  %5300 = vmatpush3.bf16.msra.mxu0 %v5297_v5  ;;  %v4049_v5 = vld [vmem:[%s8319_s3 + $0x2a0] sm:$0xff] }
 0x18c   : > { %5302 = vmatprep.subr.bf16.mxu0 %v5301_v35  ;;  %v5339_v18 = vpack.c.bf16 %v4049_v5, %v4041_v25  ;;  %v4053_v24 = vld [vmem:[%s8319_s3 + $0x2c0] sm:$0xff]  ;;  %v4086_v5 = vld [vmem:[%s8319_s3 + $0x3c8] sm:$0xff] }
 0x18d   : > { %v1015_v20 = vadd.f32 %v4285_v12, %v7350_v38  ;;  %v4061_v16 = vld [vmem:[%s8319_s3 + $0x300] sm:$0xff] }
 0x18e   : > { %v4057_v12 = vld [vmem:[%s8319_s3 + $0x2e0] sm:$0xff]  ;;  %v5311_v46 = vpack.c.bf16 %v4061_v16, %v4053_v24  ;;  %v5592_v24 = vmov 0.0  }
 0x18f   : > { %5304 = vmatpush3.bf16.msra.mxu0 %v5301_v35  ;;  %v5309_v35 = vpack.c.bf16 %v4062_v45, %v4054_v54  ;;  %v4094_v54 = vld [vmem:[%s8319_s3 + $0x408] sm:$0xff]  ;;  %2463 = vmatprep.mubr.f32.mxu1 %v5592_v24 }
 0x190   : > { %5338 = vmatprep.subr.bf16.mxu0 %v5337_v50 }
 0x192   : > { %4823 = vmatmul.mubr.f32.vlgmr.msra.gmra.mrb[12].mxu0 %v1808_v63  ;;  %v4070_v63 = vld [vmem:[%s8319_s3 + $0x348] sm:$0xff] }
 0x193   : > { %5340 = vmatpush1.bf16.msra.mxu0 %v5339_v18  ;;  %v4090_v18 = vld [vmem:[%s8319_s3 + $0x3e8] sm:$0xff]  ;;  %2617 = vmatprep.mubr.f32.mxu0 %v5592_v24 }
 0x198   : > { %v4412_v41 = vpop.f32.mrb[4].mxu1 }
 0x199   : > { %v4413_v28 = vpop.f32.mrb[5].mxu1 }
 0x19a   : > { %v4414_v43 = vadd.f32 %v4413_v28, %v4412_v41  ;;  %v4078_v41 = vld [vmem:[%s8319_s3 + $0x388] sm:$0xff] }
 0x19c   : > { %v4415_v48 = vpop.f32.mrb[6].mxu1 }
 0x19d   : > { %v4416_v29 = vpop.f32.mrb[7].mxu1 }
 0x19e   : > { %v4417_v1 = vadd.f32 %v4416_v29, %v4415_v48  ;;  %v4074_v48 = vld [vmem:[%s8319_s3 + $0x368] sm:$0xff] }
 0x19f   : > { %v4082_v29 = vld [vmem:[%s8319_s3 + $0x3a8] sm:$0xff] }
 0x1a5   : > { %v4318_v49 = vpop.f32.mrb[8].mxu0 }
 0x1a6   : > { %v4319_v4 = vpop.f32.mrb[9].mxu0 }
 0x1a7   : > { %v4320_v34 = vadd.f32 %v4319_v4, %v4318_v49  ;;  %v5345_v49 = vpack.c.bf16 %v4082_v29, %v4074_v48  ;;  %v4077_v4 = vld [vmem:[%s8319_s3 + $0x380] sm:$0xff]  ;;  %v4106_v48 = vld [vmem:[%s8319_s3 + $0x468] sm:$0xff] }
 0x1a9   : > { %v1085_v36 = vadd.f32 %v4320_v34, %v1010_v17  ;;  %v4321_v53 = vpop.f32.mrb[10].mxu0  ;;  %v5341_v17 = vpack.c.bf16 %v4066_v32, %v4058_v3  ;;  %v4073_v34 = vld [vmem:[%s8319_s3 + $0x360] sm:$0xff]  ;;  %v5317_v3 = vpack.c.bf16 %v4094_v54, %v4086_v5  ;;  %v4098_v32 = vld [vmem:[%s8319_s3 + $0x428] sm:$0xff] }
 0x1aa   : > { %v4322_v39 = vpop.f32.mrb[11].mxu0  ;;  %v2287_v5 = vld [vmem:[%s8319_s3 + $0x168] sm:$0xff] }
 0x1ab   : > { %v1160_v2 = vadd.f32 %v4358_v8, %v1085_v36  ;;  %v4323_v9 = vadd.f32 %v4322_v39, %v4321_v53  ;;  %v4046_v8 = vld [vmem:[%s8319_s3 + $0x288] sm:$0xff]  ;;  %5342 = vmatprep.subr.bf16.mxu0 %v5341_v17  ;;  %v4081_v36 = vld [vmem:[%s8319_s3 + $0x3a0] sm:$0xff] }
 0x1ac   : > { %v5305_v42 = vpack.c.bf16 %v4046_v8, %v4038_v7  ;;  %v5347_v39 = vpack.c.bf16 %v4081_v36, %v4073_v34  ;;  %v4093_v17 = vld [vmem:[%s8319_s3 + $0x400] sm:$0xff] }
 0x1ad   : > { %v1090_v56 = vadd.f32 %v4323_v9, %v1015_v20  ;;  %v5503_v38 = vadd.f32 %v4414_v43, %v1160_v2  ;;  %v4065_v20 = vld [vmem:[%s8319_s3 + $0x320] sm:$0xff]  ;;  %v5313_v43 = vpack.c.bf16 %v4078_v41, %v4070_v63  ;;  %v4102_v41 = vld [vmem:[%s8319_s3 + $0x448] sm:$0xff] }
 0x1ae   : > { %5306 = vmatprep.subr.bf16.mxu1 %v5305_v42  ;;  %v5343_v28 = vpack.c.bf16 %v4065_v20, %v4057_v12  ;;  %v5349_v12 = vpack.c.bf16 %v4098_v32, %v4090_v18  ;;  %v4089_v20 = vld [vmem:[%s8319_s3 + $0x3e0] sm:$0xff] }
 0x1af   : > { %v1165_v10 = vadd.f32 %v4361_v60, %v1090_v56  ;;  %v4045_v60 = vld [vmem:[%s8319_s3 + $0x280] sm:$0xff] }
 0x1b0   : > { %v5307_v23 = vpack.c.bf16 %v4045_v60, %v4037_v15  ;;  %5344 = vmatpush1.bf16.msra.mxu0 %v5343_v28  ;;  %v4097_v63 = vld [vmem:[%s8319_s3 + $0x420] sm:$0xff] }
 0x1b1   : > { %v5497_v21 = vadd.f32 %v4417_v1, %v1165_v10  ;;  %v4069_v1 = vld [vmem:[%s8319_s3 + $0x340] sm:$0xff]  ;;  %5346 = vmatprep.subr.bf16.mxu0 %v5345_v49  ;;  %v4048_v49 = vld [vmem:[%s8319_s3 + $0x298] sm:$0xff] }
 0x1b2   : > { %5308 = vmatpush1.bf16.msra.mxu1 %v5307_v23  ;;  %v5315_v53 = vpack.c.bf16 %v4077_v4, %v4069_v1  ;;  %v4040_v1 = vld [vmem:[%s8319_s3 + $0x258] sm:$0xff]  ;;  %v2247_v4 = vld [vmem:[%s8319_s3 + $0x28] sm:$0xff]  ;;  %v4101_v36 = vld [vmem:[%s8319_s3 + $0x440] sm:$0xff] }
 0x1b3   : > { %5310 = vmatprep.subr.bf16.mxu1 %v5309_v35  ;;  %v4085_v35 = vld [vmem:[%s8319_s3 + $0x3c0] sm:$0xff] }
 0x1b4   : > { %5348 = vmatpush1.bf16.msra.mxu0 %v5347_v39  ;;  %v2255_v39 = vld [vmem:[%s8319_s3 + $0x68] sm:$0xff] }
 0x1b5   : > { %5350 = vmatprep.subr.bf16.mxu0 %v5349_v12  ;;  %v4088_v12 = vld [vmem:[%s8319_s3 + $0x3d8] sm:$0xff] }
 0x1b6   : > { %5312 = vmatpush1.bf16.msra.mxu1 %v5311_v46  ;;  %v5319_v46 = vpack.c.bf16 %v4093_v17, %v4085_v35  ;;  %v2278_v17 = vld [vmem:[%s8319_s3 + $0x120] sm:$0xff] }
 0x1b7   : > { %5314 = vmatprep.subr.bf16.mxu1 %v5313_v43  ;;  %v5351_v43 = vpack.c.bf16 %v4097_v63, %v4089_v20  ;;  %v4096_v20 = vld [vmem:[%s8319_s3 + $0x418] sm:$0xff]  ;;  %v2295_v63 = vld [vmem:[%s8319_s3 + $0x1a8] sm:$0xff] }
 0x1b8   : > { %v4488_v37 = vpop.f32.mrb[8].mxu1 }
 0x1b9   : > { %v4489_v13 = vpop.f32.mrb[9].mxu1  ;;  %5352 = vmatpush1.bf16.msra.mxu0 %v5351_v43 }
 0x1ba   : > { %v4490_v55 = vadd.f32 %v4489_v13, %v4488_v37  ;;  %5316 = vmatpush1.bf16.msra.mxu1 %v5315_v53  ;;  %v5321_v53 = vpack.c.bf16 %v4048_v49, %v4040_v1  ;;  %2569 = vmatprep.subr.mxu0 %v4106_v48  ;;  %v4087_v48 = vld [vmem:[%s8319_s3 + $0x3d0] sm:$0xff] }
 0x1bb   : > { %5318 = vmatprep.subr.bf16.mxu1 %v5317_v3  ;;  %v4079_v3 = vld [vmem:[%s8319_s3 + $0x390] sm:$0xff] }
 0x1bc   : > { %v4491_v19 = vpop.f32.mrb[10].mxu1  ;;  %v4095_v49 = vld [vmem:[%s8319_s3 + $0x410] sm:$0xff] }
 0x1bd   : > { %v4492_v31 = vpop.f32.mrb[11].mxu1 }
 0x1be   : > { %v4493_v11 = vadd.f32 %v4492_v31, %v4491_v19  ;;  %5320 = vmatpush1.bf16.msra.mxu1 %v5319_v46 }
 0x1bf   : > { %2415 = vmatprep.subr.mxu1 %v4102_v41  ;;  %v2303_v41 = vld [vmem:[%s8319_s3 + $0x1e8] sm:$0xff] }
 0x1c0   : > { %v5413_v1 = vpack.c.bf16 %v2303_v41, %v2295_v63  ;;  %v4099_v41 = vld [vmem:[%s8319_s3 + $0x430] sm:$0xff] }
 0x1c2   : > { %2416 = vmatpush1.msra.mxu1 %v4101_v36  ;;  %v5335_v36 = vpack.c.bf16 %v4095_v49, %v4087_v48  ;;  %v4194_v49 = vld [vmem:[%s8319_s3 + $0x6a8] sm:$0xff] }
 0x1c3   : > { %5322 = vmatprep.subr.bf16.mxu1 %v5321_v53 }
 0x1d8   : > { %v4582_v57 = vpop.f32.mrb[12].mxu1 }
 0x1d9   : > { %v4583_v61 = vpop.f32.mrb[13].mxu1 }
 0x1da   : > { %v7410_v62 = vadd.f32 %v4583_v61, %v4582_v57 }
 0x1dc   : > { %v4585_v44 = vpop.f32.mrb[14].mxu1 }
 0x1dd   : > { %v4586_v40 = vpop.f32.mrb[15].mxu1 }
 0x1de   : > { %v7412_v0 = vadd.f32 %v4586_v40, %v4585_v44 }
 0x1e5   : > { %v4450_v47 = vpop.f32.mrb[14].mxu0 }
 0x1e6   : > { %v4451_v33 = vpop.f32.mrb[15].mxu0 }
 0x1e7   : > { %v4452_v27 = vadd.f32 %v4451_v33, %v4450_v47 }
 0x1e9   : > { %v5504_v59 = vadd.f32 %v5503_v38, %v4452_v27  ;;  %v4453_v6 = vpop.f32.mrb[16].mxu0 }
 0x1ea   : > { %v4454_v22 = vpop.f32.mrb[17].mxu0 }
 0x1eb   : > { %v4455_v26 = vadd.f32 %v4454_v22, %v4453_v6  ;;  %v5505_v51 = vadd.f32 %v5504_v59, %v4490_v55 }
 0x1ed   : > { %v5498_v52 = vadd.f32 %v5497_v21, %v4455_v26 }
 0x1ef   : > { %v5499_v14 = vadd.f32 %v5498_v52, %v4493_v11 }
 0x1f8   : > { %v4620_v2 = vpop.f32.mrb[16].mxu1 }
 0x1f9   : > { %v4621_v9 = vpop.f32.mrb[17].mxu1 }
 0x1fa   : > { %v4622_v56 = vadd.f32 %v4621_v9, %v4620_v2  ;;  %v4105_v9 = vld [vmem:[%s8319_s3 + $0x460] sm:$0xff] }
 0x1fb   : > { %2570 = vmatpush1.msra.mxu0 %v4105_v9  ;;  %v4044_v9 = vld [vmem:[%s8319_s3 + $0x278] sm:$0xff] }
 0x1fc   : > { %v1969_v38 = vadd.f32 %v4622_v56, %v7410_v62  ;;  %v4623_v10 = vpop.f32.mrb[18].mxu1  ;;  %v5401_v56 = vpack.c.bf16 %v2255_v39, %v2247_v4  ;;  %v2294_v4 = vld [vmem:[%s8319_s3 + $0x1a0] sm:$0xff]  ;;  %v4104_v39 = vld [vmem:[%s8319_s3 + $0x458] sm:$0xff] }
 0x1fd   : > { %v4624_v21 = vpop.f32.mrb[19].mxu1 }
 0x1fe   : > { %v4625_v37 = vadd.f32 %v4624_v21, %v4623_v10  ;;  %5402 = vmatprep.subr.bf16.mxu0 %v5401_v56  ;;  %v4052_v56 = vld [vmem:[%s8319_s3 + $0x2b8] sm:$0xff] }
 0x200   : > { %v1974_v13 = vadd.f32 %v4625_v37, %v7412_v0 }
 0x205   : > { %v4526_v55 = vpop.f32.mrb[18].mxu0 }
 0x206   : > { %v4527_v19 = vpop.f32.mrb[19].mxu0 }
 0x207   : > { %v4528_v31 = vadd.f32 %v4527_v19, %v4526_v55 }
 0x209   : > { %v5506_v11 = vadd.f32 %v5505_v51, %v4528_v31  ;;  %v4529_v57 = vpop.f32.mrb[20].mxu0 }
 0x20a   : > { %v4530_v61 = vpop.f32.mrb[21].mxu0 }
 0x20b   : > { %v4531_v44 = vadd.f32 %v4530_v61, %v4529_v57  ;;  %v4047_v61 = vld [vmem:[%s8319_s3 + $0x290] sm:$0xff] }
 0x20d   : > { %v5500_v40 = vadd.f32 %v5499_v14, %v4531_v44  ;;  %v4036_v14 = vld [vmem:[%s8318_s2] ss:$0 sm:$0xff] }
 0x20e   : > { %v2246_v44 = vld [vmem:[%s8319_s3 + $0x20] sm:$0xff] }
 0x218   : > { %v4696_v47 = vpop.f32.mrb[20].mxu1 }
 0x219   : > { %v4697_v33 = vpop.f32.mrb[21].mxu1 }
 0x21a   : > { %v4698_v27 = vadd.f32 %v4697_v33, %v4696_v47  ;;  %v4056_v47 = vld [vmem:[%s8319_s3 + $0x2d8] sm:$0xff] }
 0x21b   : > { %v4064_v33 = vld [vmem:[%s8319_s3 + $0x318] sm:$0xff] }
 0x21c   : > { %v4699_v59 = vpop.f32.mrb[22].mxu1 }
 0x21d   : > { %v4700_v6 = vpop.f32.mrb[23].mxu1 }
 0x21e   : > { %v4701_v22 = vadd.f32 %v4700_v6, %v4699_v59 }
 0x245   : > { %v4658_v62 = vpop.f32.mrb[22].mxu0 }
 0x246   : > { %v4659_v26 = vpop.f32.mrb[23].mxu0 }
 0x247   : > { %v4660_v52 = vadd.f32 %v4659_v26, %v4658_v62  ;;  %v2271_v62 = vld [vmem:[%s8319_s3 + $0xe8] sm:$0xff] }
 0x249   : > { %v2044_v7 = vadd.f32 %v4660_v52, %v1969_v38  ;;  %v4661_v8 = vpop.f32.mrb[24].mxu0 }
 0x24a   : > { %v4662_v0 = vpop.f32.mrb[25].mxu0 }
 0x24b   : > { %v4663_v58 = vadd.f32 %v4662_v0, %v4661_v8  ;;  %v2119_v42 = vadd.f32 %v4698_v27, %v2044_v7  ;;  %v4055_v0 = vld [vmem:[%s8319_s3 + $0x2d0] sm:$0xff] }
 0x24d   : > { %v2049_v30 = vadd.f32 %v4663_v58, %v1974_v13  ;;  %v5507_v51 = vadd.f32 %v5506_v11, %v2119_v42  ;;  %v4039_v11 = vld [vmem:[%s8319_s3 + $0x250] sm:$0xff]  ;;  %v5325_v42 = vpack.c.bf16 %v4064_v33, %v4056_v47 }
 0x24e   : > { %v5323_v7 = vpack.c.bf16 %v4047_v61, %v4039_v11  ;;  %v4063_v58 = vld [vmem:[%s8319_s3 + $0x310] sm:$0xff]  ;;  %v5353_v11 = vpack.c.bf16 %v4052_v56, %v4044_v9  ;;  %v4060_v61 = vld [vmem:[%s8319_s3 + $0x2f8] sm:$0xff]  ;;  %v4193_v9 = vld [vmem:[%s8319_s3 + $0x6a0] sm:$0xff] }
 0x24f   : > { %v2124_v15 = vadd.f32 %v4701_v22, %v2049_v30  ;;  %v2263_v22 = vld [vmem:[%s8319_s3 + $0xa8] sm:$0xff]  ;;  %v2262_v30 = vld [vmem:[%s8319_s3 + $0xa0] sm:$0xff]  ;;  %v5327_v54 = vpack.c.bf16 %v4063_v58, %v4055_v0  ;;  %v4084_v58 = vld [vmem:[%s8319_s3 + $0x3b8] sm:$0xff] }
 0x251   : > { %v5501_v60 = vadd.f32 %v5500_v40, %v2124_v15  ;;  %v2254_v40 = vld [vmem:[%s8319_s3 + $0x60] sm:$0xff]  ;;  %v4072_v15 = vld [vmem:[%s8319_s3 + $0x358] sm:$0xff] }
 0x252   : > { %v5403_v8 = vpack.c.bf16 %v2254_v40, %v2246_v44  ;;  %v4068_v44 = vld [vmem:[%s8319_s3 + $0x338] sm:$0xff]  ;;  %v4146_v40 = vld [vmem:[%s8319_s3 + $0x528] sm:$0xff] }
 0x253   : > { %v5357_v0 = vpack.c.bf16 %v4068_v44, %v4060_v61 }
 0x265   : > { %v4824_v50 = vpop.f32.mrb[12].mxu0 }
 0x266   : > { %v5502_v23 = vadd.f32 %v5501_v60, %v4824_v50  ;;  %v2193_v25 = vpop.f32.mrb[13].mxu0 }
 0x267   : > { %v5508_v45 = vadd.f32 %v5507_v51, %v2193_v25  ;;  %v2270_v51 = vld [vmem:[%s8319_s3 + $0xe0] sm:$0xff]  ;;  %v2279_v25 = vld [vmem:[%s8319_s3 + $0x128] sm:$0xff] }
 0x268   : > { %v2212_v16 = vadd.f32 %v5502_v23, %v4036_v14  ;;  %v4080_v23 = vld [vmem:[%s8319_s3 + $0x398] sm:$0xff]  ;;  %v5407_v18 = vpack.c.bf16 %v2270_v51, %v2262_v30  ;;  %v5409_v35 = vpack.c.bf16 %v2287_v5, %v2279_v25  ;;  %v4170_v30 = vld [vmem:[%s8319_s3 + $0x5e8] sm:$0xff] }
 0x269   : > { %v2211_v28 = vadd.f32 %v5508_v45, %v4036_v14  ;;  %v5405_v14 = vpack.c.bf16 %v2271_v62, %v2263_v22  ;;  %v4071_v45 = vld [vmem:[%s8319_s3 + $0x350] sm:$0xff]  ;;  %v5329_v32 = vpack.c.bf16 %v4080_v23, %v4072_v15  ;;  %v4154_v22 = vld [vmem:[%s8319_s3 + $0x568] sm:$0xff] }
 0x26a   : > { %vm2214_vm5 = vcmp.ge.f32.partialorder %v2212_v16, 0.0  ;;  %v2216_v29 = vmul.f32 0.2, %v2212_v16  ;;  %v4059_v62 = vld [vmem:[%s8319_s3 + $0x2f0] sm:$0xff]  ;;  %v5469_v51 = vpack.c.bf16 %v4154_v22, %v4146_v40 }
 0x26b   : > { %vm2213_vm6 = vcmp.ge.f32.partialorder %v2211_v28, 0.0  ;;  %v2215_v34 = vmul.f32 0.2, %v2211_v28  ;;  %v4083_v23 = vld [vmem:[%s8319_s3 + $0x3b0] sm:$0xff] }
 0x26c   : > { %v2218_v2 = vsel %vm2214_vm5, %v2212_v16, %v2216_v29  ;;  %v2286_v16 = vld [vmem:[%s8319_s3 + $0x160] sm:$0xff]  ;;  %v5333_v29 = vpack.c.bf16 %v4096_v20, %v4088_v12  ;;  %v4091_v12 = vld [vmem:[%s8319_s3 + $0x3f0] sm:$0xff] }
 0x26d   : > { %2223 = vrot.lane.b32.xlu1 %v2218_v2, %s5593_s29  ;;  %v2217_v38 = vsel %vm2213_vm6, %v2211_v28, %v2215_v34  ;;  %v5331_v28 = vpack.c.bf16 %v4079_v3, %v4071_v45  ;;  %v5411_v43 = vpack.c.bf16 %v2286_v16, %v2278_v17  ;;  %v2302_v34 = vld [vmem:[%s8319_s3 + $0x1e0] sm:$0xff]  ;;  %v2311_v2 = vld [vmem:[%s8319_s3 + $0x228] sm:$0xff]  ;;  %v4092_v45 = vld [vmem:[%s8319_s3 + $0x3f8] sm:$0xff]  ;;  %v5367_v48 = vpack.c.bf16 %v4099_v41, %v4091_v12 }
 0x26e   : > { %2221 = vrot.lane.b32.xlu0 %v2217_v38, %s5593_s29  ;;  %v5415_v53 = vpack.c.bf16 %v2302_v34, %v2294_v4  ;;  %v4130_v38 = vld [vmem:[%s8319_s3 + $0x4a8] sm:$0xff]  ;;  %v4100_v3 = vld [vmem:[%s8319_s3 + $0x438] sm:$0xff]  ;;  %v2292_v41 = vld [vmem:[%s8319_s3 + $0x190] sm:$0xff] }
 0x26f   : > { %v5365_v20 = vpack.c.bf16 %v4100_v3, %v4092_v45  ;;  %v2243_v4 = vld [vmem:[%s8319_s3 + $0x8] sm:$0xff]  ;;  %v2285_v45 = vld [vmem:[%s8319_s3 + $0x158] sm:$0xff] }
 0x270   : > { %v2251_v34 = vld [vmem:[%s8319_s3 + $0x48] sm:$0xff]  ;;  %v2301_v12 = vld [vmem:[%s8319_s3 + $0x1d8] sm:$0xff] }
 0x271   : > { %v5369_v56 = vpack.c.bf16 %v2251_v34, %v2243_v4  ;;  %v2256_v4 = vld [vmem:[%s8319_s3 + $0x70] sm:$0xff]  ;;  %v2265_v34 = vld [vmem:[%s8319_s3 + $0xb8] sm:$0xff] }
 0x2df   : > { %v2224_v10 = vpop.permute.xlu1 %2223 }
 0x2e0   : > { %v2229_v21 = vsel %vm2227_vm7, 0.0, %v2224_v10  ;;  %v2222_v37 = vpop.permute.xlu0 %2221  ;;  %v4138_v10 = vld [vmem:[%s8319_s3 + $0x4e8] sm:$0xff] }
 0x2e1   : > { %v2232_v13 = vsel %vm2230_vm8, %v2229_v21, 0.0  ;;  %v2228_v55 = vsel %vm2227_vm7, 0.0, %v2222_v37  ;;  %v4043_v21 = vld [vmem:[%s8319_s3 + $0x270] sm:$0xff] }
 0x2e2   : > { %v2236_v19 = vrot.slane %v2232_v13, 7  ;;  %v2231_v31 = vsel %vm2230_vm8, %v2228_v55, 0.0  ;;  %v4051_v37 = vld [vmem:[%s8319_s3 + $0x2b0] sm:$0xff]  ;;  %v4129_v13 = vld [vmem:[%s8319_s3 + $0x4a0] sm:$0xff] }
 0x2e3   : > { %v2235_v57 = vrot.slane %v2231_v31, 7  ;;  %v4137_v55 = vld [vmem:[%s8319_s3 + $0x4e0] sm:$0xff]  ;;  %v5355_v47 = vpack.c.bf16 %v4051_v37, %v4043_v21  ;;  %v2267_v21 = vld [vmem:[%s8319_s3 + $0xc8] sm:$0xff] }
 0x2e4   : > { %v7560_v27 = vsel %vm424_vm1, %v2236_v19, 0.0  ;;  %v2310_v31 = vld [vmem:[%s8319_s3 + $0x220] sm:$0xff]  ;;  %v5467_v33 = vpack.c.bf16 %v4137_v55, %v4129_v13 }
 0x2e5   : > { %v7563_v59 = vsel %vm424_vm1, %v2235_v57, %v2236_v19  ;;  %v7566_v6 = vsel %vm424_vm1, 0.0, %v2235_v57  ;;  %v2392_v60 = vrot.slane %v7560_v27, 1  ;;  %v4103_v19 = vld [vmem:[%s8319_s3 + $0x450] sm:$0xff]  ;;  %v5465_v57 = vpack.c.bf16 %v4138_v10, %v4130_v38  ;;  %v2259_v10 = vld [vmem:[%s8319_s3 + $0x88] sm:$0xff]  ;;  %v2258_v13 = vld [vmem:[%s8319_s3 + $0x80] sm:$0xff] }
 0x2e6   : > { %v2389_v26 = vrot.slane %v7566_v6, 1  ;;  %v2390_v52 = vrot.slane %v7563_v59, 1  ;;  %v3093_v38 = vrot.slane %v7563_v59, 2  ;;  %v2266_v55 = vld [vmem:[%s8319_s3 + $0xc0] sm:$0xff] }
 0x2e7   : > { %v5375_v44 = vpack.c.bf16 %v2266_v55, %v2258_v13  ;;  %v2280_v55 = vld [vmem:[%s8319_s3 + $0x130] sm:$0xff] }
 0x2e8   : > { %v7593_v50 = vsel %vm804_vm2, %v2389_v26, %v2390_v52  ;;  %v7626_v46 = vsel %vm804_vm2, %v2390_v52, %v2392_v60  ;;  %v4067_v26 = vld [vmem:[%s8319_s3 + $0x330] sm:$0xff]  ;;  %v4145_v52 = vld [vmem:[%s8319_s3 + $0x520] sm:$0xff] }
 0x2e9   : > { %4109 = vmatmul.mubr.msk.f32.vlgmr.msra.gmra.mrb[24].mxu1 %vm2394_vm9, %v7593_v50  ;;  %4113 = vmatmul.mubr.msk.f32.vlgmr.msra.gmra.mrb[26].mxu0 %vm2394_vm9, %v7593_v50  ;;  %v5359_v15 = vpack.c.bf16 %v4067_v26, %v4059_v62 }
 0x2ea   : > { %5324 = vmatpush1.bf16.msra.mxu1 %v5323_v7  ;;  %5404 = vmatpush1.bf16.msra.mxu0 %v5403_v8  ;;  %v4153_v7 = vld [vmem:[%s8319_s3 + $0x560] sm:$0xff]  ;;  %v4076_v8 = vld [vmem:[%s8319_s3 + $0x378] sm:$0xff] }
 0x2eb   : > { %2469 = vmatprep.mubr.f32.mxu1 %v5592_v24  ;;  %5326 = vmatprep.subr.bf16.mxu1 %v5325_v42  ;;  %v4162_v42 = vld [vmem:[%s8319_s3 + $0x5a8] sm:$0xff]  ;;  %v5471_v60 = vpack.c.bf16 %v4153_v7, %v4145_v52  ;;  %v5361_v25 = vpack.c.bf16 %v4084_v58, %v4076_v8  ;;  %v2290_v52 = vld [vmem:[%s8319_s3 + $0x180] sm:$0xff]  ;;  %v2253_v58 = vld [vmem:[%s8319_s3 + $0x58] sm:$0xff] }
 0x2ec   : > { %2623 = vmatprep.mubr.f32.mxu0 %v5592_v24  ;;  %5406 = vmatprep.subr.bf16.mxu0 %v5405_v14  ;;  %v4075_v14 = vld [vmem:[%s8319_s3 + $0x370] sm:$0xff]  ;;  %v5473_v5 = vpack.c.bf16 %v4170_v30, %v4162_v42  ;;  %v2298_v7 = vld [vmem:[%s8319_s3 + $0x1c0] sm:$0xff]  ;;  %v2307_v8 = vld [vmem:[%s8319_s3 + $0x208] sm:$0xff] }
 0x2ed   : > { %4110 = vmatmul.mubr.msk.f32.gmra.mrb[26].mxu1 %vm2394_vm9, %v7626_v46  ;;  %4114 = vmatmul.mubr.msk.f32.gmra.mrb[28].mxu0 %vm2394_vm9, %v7626_v46  ;;  %v5363_v17 = vpack.c.bf16 %v4083_v23, %v4075_v14  ;;  %v2244_v42 = vld [vmem:[%s8319_s3 + $0x10] sm:$0xff] }
 0x2ee   : > { %5328 = vmatpush1.bf16.msra.mxu1 %v5327_v54  ;;  %5408 = vmatpush1.bf16.msra.mxu0 %v5407_v18  ;;  %v4161_v54 = vld [vmem:[%s8319_s3 + $0x5a0] sm:$0xff]  ;;  %v2252_v30 = vld [vmem:[%s8319_s3 + $0x50] sm:$0xff] }
 0x2ef   : > { %5330 = vmatprep.subr.bf16.mxu1 %v5329_v32  ;;  %5410 = vmatprep.subr.bf16.mxu0 %v5409_v35  ;;  %v4169_v18 = vld [vmem:[%s8319_s3 + $0x5e0] sm:$0xff]  ;;  %v4178_v32 = vld [vmem:[%s8319_s3 + $0x628] sm:$0xff]  ;;  %v5387_v23 = vpack.c.bf16 %v2252_v30, %v2244_v42 }
 0x2f0   : > { %2540 = vmatprep.mubr.f32.mxu1 %v5592_v24  ;;  %2929 = vmatprep.mubr.f32.mxu0 %v5592_v24  ;;  %v4186_v35 = vld [vmem:[%s8319_s3 + $0x668] sm:$0xff]  ;;  %v5475_v16 = vpack.c.bf16 %v4169_v18, %v4161_v54  ;;  %v2268_v54 = vld [vmem:[%s8319_s3 + $0xd0] sm:$0xff]  ;;  %v2277_v18 = vld [vmem:[%s8319_s3 + $0x118] sm:$0xff] }
 0x2f1   : > { %v5477_v63 = vpack.c.bf16 %v4186_v35, %v4178_v32  ;;  %v5393_v32 = vpack.c.bf16 %v2285_v45, %v2277_v18  ;;  %v2276_v35 = vld [vmem:[%s8319_s3 + $0x110] sm:$0xff]  ;;  %v4141_v30 = vld [vmem:[%s8319_s3 + $0x500] sm:$0xff] }
 0x2f2   : > { %5332 = vmatpush1.bf16.msra.mxu1 %v5331_v28  ;;  %5412 = vmatpush1.bf16.msra.mxu0 %v5411_v43  ;;  %v4177_v28 = vld [vmem:[%s8319_s3 + $0x620] sm:$0xff] }
 0x2f3   : > { %5334 = vmatprep.subr.bf16.mxu1 %v5333_v29  ;;  %5414 = vmatprep.subr.bf16.mxu0 %v5413_v1  ;;  %v4185_v43 = vld [vmem:[%s8319_s3 + $0x660] sm:$0xff]  ;;  %v4108_v1 = vld [vmem:[%s8319_s3 + $0x478] sm:$0xff] }
 0x2f4   : > { %v5479_v29 = vpack.c.bf16 %v4185_v43, %v4177_v28  ;;  %v2300_v28 = vld [vmem:[%s8319_s3 + $0x1d0] sm:$0xff] }
 0x2f5   : > { %v5399_v43 = vpack.c.bf16 %v2300_v28, %v2292_v41  ;;  %v4152_v41 = vld [vmem:[%s8319_s3 + $0x558] sm:$0xff]  ;;  %v4189_v28 = vld [vmem:[%s8319_s3 + $0x680] sm:$0xff] }
 0x2f6   : > { %5336 = vmatpush1.bf16.msra.mxu1 %v5335_v36  ;;  %5416 = vmatpush1.bf16.msra.mxu0 %v5415_v53  ;;  %v2242_v36 = vld [vmem:[%s8319_s3] sm:$0xff] }
 0x2f7   : > { %2492 = vmatprep.subr.mxu1 %v4104_v39  ;;  %2881 = vmatprep.subr.mxu0 %v2311_v2  ;;  %v2250_v53 = vld [vmem:[%s8319_s3 + $0x40] sm:$0xff]  ;;  %v4107_v39 = vld [vmem:[%s8319_s3 + $0x470] sm:$0xff]  ;;  %v3092_v2 = vrot.slane %v7566_v6, 2 }
 0x2f8   : > { %v5371_v37 = vpack.c.bf16 %v2250_v53, %v2242_v36  ;;  %v2273_v36 = vld [vmem:[%s8319_s3 + $0xf8] sm:$0xff]  ;;  %v2308_v53 = vld [vmem:[%s8319_s3 + $0x210] sm:$0xff] }
 0x2f9   : > { %v7823_v61 = vsel %vm1763_vm3, %v3092_v2, %v3093_v38 }
 0x2fa   : > { %2493 = vmatpush1.msra.mxu1 %v4103_v19  ;;  %2882 = vmatpush1.msra.mxu0 %v2310_v31  ;;  %v5373_v19 = vpack.c.bf16 %v2267_v21, %v2259_v10  ;;  %v2275_v31 = vld [vmem:[%s8319_s3 + $0x108] sm:$0xff]  ;;  %v2281_v10 = vld [vmem:[%s8319_s3 + $0x138] sm:$0xff] }
 0x2fb   : > { %4111 = vmatmul.mubr.msk.f32.vlgmr.msra.gmra.mrb[28].mxu1 %vm2394_vm9, %v7593_v50  ;;  %5354 = vmatprep.subr.bf16.mxu1 %v5353_v11  ;;  %v2283_v11 = vld [vmem:[%s8319_s3 + $0x148] sm:$0xff]  ;;  %v2289_v21 = vld [vmem:[%s8319_s3 + $0x178] sm:$0xff] }
 0x2fc   : > { %4121 = vmatmul.mubr.msk.f32.vlgmr.msra.gmra.mrb[26].mxu0 %vm2394_vm9, %v7566_v6  ;;  %5466 = vmatprep.subr.bf16.mxu0 %v5465_v57  ;;  %v3095_v57 = vrot.slane %v7560_v27, 2  ;;  %v5377_v40 = vpack.c.bf16 %v2283_v11, %v2275_v31  ;;  %v2274_v27 = vld [vmem:[%s8319_s3 + $0x100] sm:$0xff]  ;;  %v5425_v13 = vpack.c.bf16 %v2289_v21, %v2281_v10  ;;  %v2297_v31 = vld [vmem:[%s8319_s3 + $0x1b8] sm:$0xff]  ;;  %v4175_v21 = vld [vmem:[%s8319_s3 + $0x610] sm:$0xff] }
 0x2fd   : > { %5356 = vmatpush1.bf16.msra.mxu1 %v5355_v47  ;;  %5468 = vmatpush1.bf16.msra.mxu0 %v5467_v33  ;;  %v2291_v47 = vld [vmem:[%s8319_s3 + $0x188] sm:$0xff]  ;;  %v2305_v11 = vld [vmem:[%s8319_s3 + $0x1f8] sm:$0xff] }
 0x2fe   : > { %2546 = vmatprep.mubr.f32.mxu1 %v5592_v24  ;;  %2935 = vmatprep.mubr.f32.mxu0 %v5592_v24  ;;  %v2299_v33 = vld [vmem:[%s8319_s3 + $0x1c8] sm:$0xff]  ;;  %v7844_v22 = vsel %vm1763_vm3, %v3093_v38, %v3095_v57  ;;  %v2272_v38 = vld [vmem:[%s8319_s3 + $0xf0] sm:$0xff] }
 0x2ff   : > { %4112 = vmatmul.mubr.msk.f32.gmra.mrb[30].mxu1 %vm2394_vm9, %v7626_v46  ;;  %5358 = vmatprep.subr.bf16.mxu1 %v5357_v0  ;;  %v5381_v26 = vpack.c.bf16 %v2299_v33, %v2291_v47  ;;  %v2245_v0 = vld [vmem:[%s8319_s3 + $0x18] sm:$0xff]  ;;  %v4126_v33 = vld [vmem:[%s8319_s3 + $0x488] sm:$0xff] }
 0x300   : > { %4122 = vmatmul.mubr.msk.f32.gmra.mrb[28].mxu0 %vm2394_vm9, %v7563_v59  ;;  %5470 = vmatprep.subr.bf16.mxu0 %v5469_v51  ;;  %v2261_v51 = vld [vmem:[%s8319_s3 + $0x98] sm:$0xff]  ;;  %v5385_v14 = vpack.c.bf16 %v2253_v58, %v2245_v0 }
 0x301   : > { %5360 = vmatpush1.bf16.msra.mxu1 %v5359_v15  ;;  %5472 = vmatpush1.bf16.msra.mxu0 %v5471_v60  ;;  %v2269_v15 = vld [vmem:[%s8319_s3 + $0xd8] sm:$0xff]  ;;  %v2306_v60 = vld [vmem:[%s8319_s3 + $0x200] sm:$0xff] }
 0x302   : > { %5362 = vmatprep.subr.bf16.mxu1 %v5361_v25  ;;  %5474 = vmatprep.subr.bf16.mxu0 %v5473_v5  ;;  %v5389_v25 = vpack.c.bf16 %v2269_v15, %v2261_v51  ;;  %v2260_v5 = vld [vmem:[%s8319_s3 + $0x90] sm:$0xff]  ;;  %v2313_v47 = vld [vmem:[%s8319_s3 + $0x238] sm:$0xff]  ;;  %v4149_v51 = vld [vmem:[%s8319_s3 + $0x540] sm:$0xff] }
 0x303   : > { %2694 = vmatprep.mubr.f32.mxu1 %v5592_v24  ;;  %3319 = vmatprep.mubr.f32.mxu0 %v5592_v24  ;;  %v5391_v3 = vpack.c.bf16 %v2268_v54, %v2260_v5  ;;  %v4158_v15 = vld [vmem:[%s8319_s3 + $0x588] sm:$0xff]  ;;  %v4165_v5 = vld [vmem:[%s8319_s3 + $0x5c0] sm:$0xff] }
 0x304   : > { %v4174_v54 = vld [vmem:[%s8319_s3 + $0x608] sm:$0xff] }
 0x305   : > { %5364 = vmatpush1.bf16.msra.mxu1 %v5363_v17  ;;  %5476 = vmatpush1.bf16.msra.mxu0 %v5475_v16  ;;  %v2284_v17 = vld [vmem:[%s8319_s3 + $0x150] sm:$0xff]  ;;  %v2293_v16 = vld [vmem:[%s8319_s3 + $0x198] sm:$0xff] }
 0x306   : > { %5366 = vmatprep.subr.bf16.mxu1 %v5365_v20  ;;  %5478 = vmatprep.subr.bf16.mxu0 %v5477_v63  ;;  %v5395_v20 = vpack.c.bf16 %v2284_v17, %v2276_v35  ;;  %v5397_v63 = vpack.c.bf16 %v2301_v12, %v2293_v16  ;;  %v4128_v17 = vld [vmem:[%s8319_s3 + $0x498] sm:$0xff]  ;;  %v4127_v12 = vld [vmem:[%s8319_s3 + $0x490] sm:$0xff] }
 0x307   : > { %v4136_v16 = vld [vmem:[%s8319_s3 + $0x4d8] sm:$0xff] }
 0x309   : > { %5368 = vmatpush1.bf16.msra.mxu1 %v5367_v48  ;;  %5480 = vmatpush1.bf16.msra.mxu0 %v5479_v29  ;;  %v2309_v48 = vld [vmem:[%s8319_s3 + $0x218] sm:$0xff] }
 0x30a   : > { %2646 = vmatprep.subr.mxu1 %v4108_v1  ;;  %3271 = vmatprep.subr.mxu0 %v4194_v49  ;;  %v2249_v29 = vld [vmem:[%s8319_s3 + $0x38] sm:$0xff]  ;;  %v2248_v49 = vld [vmem:[%s8319_s3 + $0x30] sm:$0xff] }
 0x30b   : > { %v2257_v1 = vld [vmem:[%s8319_s3 + $0x78] sm:$0xff]  ;;  %v5419_v2 = vpack.c.bf16 %v2256_v4, %v2248_v49  ;;  %v4151_v49 = vld [vmem:[%s8319_s3 + $0x550] sm:$0xff] }
 0x30c   : > { %v4160_v4 = vld [vmem:[%s8319_s3 + $0x598] sm:$0xff] }
 0x30d   : > { %2647 = vmatpush1.msra.mxu1 %v4107_v39  ;;  %3272 = vmatpush1.msra.mxu0 %v4193_v9  ;;  %v5417_v39 = vpack.c.bf16 %v2257_v1, %v2249_v29  ;;  %v5421_v9 = vpack.c.bf16 %v2273_v36, %v2265_v34  ;;  %v4143_v1 = vld [vmem:[%s8319_s3 + $0x510] sm:$0xff]  ;;  %v4168_v34 = vld [vmem:[%s8319_s3 + $0x5d8] sm:$0xff] }
 0x30e   : > { %4115 = vmatmul.mubr.msk.f32.vlgmr.msra.gmra.mrb[32].mxu1 %vm2394_vm9, %v7593_v50  ;;  %5370 = vmatprep.subr.bf16.mxu1 %v5369_v56  ;;  %v2282_v50 = vld [vmem:[%s8319_s3 + $0x140] sm:$0xff]  ;;  %v2264_v56 = vld [vmem:[%s8319_s3 + $0xb0] sm:$0xff]  ;;  %v5455_v36 = vpack.c.bf16 %v4151_v49, %v4143_v1 }
 0x30f   : > { %4201 = vmatmul.mubr.msk.f32.vlgmr.msra.gmra.mrb[26].mxu0 %vm2394_vm9, %v7823_v61  ;;  %5372 = vmatpush1.bf16.msra.mxu1 %v5371_v37  ;;  %v5379_v62 = vpack.c.bf16 %v2282_v50, %v2274_v27  ;;  %v5423_v37 = vpack.c.bf16 %v2272_v38, %v2264_v56  ;;  %v2304_v27 = vld [vmem:[%s8319_s3 + $0x1f0] sm:$0xff]  ;;  %v4184_v56 = vld [vmem:[%s8319_s3 + $0x658] sm:$0xff] }
 0x310   : > { %2700 = vmatprep.mubr.f32.mxu1 %v5592_v24  ;;  %3325 = vmatprep.mubr.f32.mxu0 %v5592_v24 }
 0x311   : > { %5374 = vmatprep.subr.bf16.mxu1 %v5373_v19  ;;  %v2288_v19 = vld [vmem:[%s8319_s3 + $0x170] sm:$0xff] }
 0x312   : > { %4116 = vmatmul.mubr.msk.f32.gmra.mrb[34].mxu1 %vm2394_vm9, %v7626_v46  ;;  %v5383_v46 = vpack.c.bf16 %v2298_v7, %v2290_v52  ;;  %v5427_v57 = vpack.c.bf16 %v2288_v19, %v2280_v55  ;;  %v4133_v52 = vld [vmem:[%s8319_s3 + $0x4c0] sm:$0xff]  ;;  %v4142_v7 = vld [vmem:[%s8319_s3 + $0x508] sm:$0xff]  ;;  %v4192_v55 = vld [vmem:[%s8319_s3 + $0x698] sm:$0xff] }
 0x313   : > { %4202 = vmatmul.mubr.msk.f32.gmra.mrb[28].mxu0 %vm2394_vm9, %v7844_v22  ;;  %5376 = vmatpush1.bf16.msra.mxu1 %v5375_v44  ;;  %v5429_v44 = vpack.c.bf16 %v2305_v11, %v2297_v31  ;;  %v4132_v19 = vld [vmem:[%s8319_s3 + $0x4b8] sm:$0xff]  ;;  %v4131_v11 = vld [vmem:[%s8319_s3 + $0x4b0] sm:$0xff] }
 0x314   : > { %5378 = vmatprep.subr.bf16.mxu1 %v5377_v40  ;;  %2775 = vmatprep.mubr.f32.mxu1 %v5592_v24  ;;  %v2296_v40 = vld [vmem:[%s8319_s3 + $0x1b0] sm:$0xff]  ;;  %v4140_v31 = vld [vmem:[%s8319_s3 + $0x4f8] sm:$0xff] }
 0x315   : > { %v5431_v50 = vpack.c.bf16 %v2304_v27, %v2296_v40  ;;  %v4156_v40 = vld [vmem:[%s8319_s3 + $0x578] sm:$0xff]  ;;  %v4191_v27 = vld [vmem:[%s8319_s3 + $0x690] sm:$0xff] }
 0x317   : > { %5380 = vmatpush1.bf16.msra.mxu1 %v5379_v62  ;;  %v4134_v62 = vld [vmem:[%s8319_s3 + $0x4c8] sm:$0xff] }
 0x318   : > { %5382 = vmatprep.subr.bf16.mxu1 %v5381_v26  ;;  %v4125_v26 = vld [vmem:[%s8319_s3 + $0x480] sm:$0xff]  ;;  %v5433_v0 = vpack.c.bf16 %v4134_v62, %v4126_v33  ;;  %v4147_v62 = vld [vmem:[%s8319_s3 + $0x530] sm:$0xff] }
 0x319   : > { %v5435_v58 = vpack.c.bf16 %v4133_v52, %v4125_v26  ;;  %v4155_v26 = vld [vmem:[%s8319_s3 + $0x570] sm:$0xff]  ;;  %v4164_v52 = vld [vmem:[%s8319_s3 + $0x5b8] sm:$0xff] }
 0x31b   : > { %5384 = vmatpush1.bf16.msra.mxu1 %v5383_v46  ;;  %v4150_v46 = vld [vmem:[%s8319_s3 + $0x548] sm:$0xff] }
 0x31c   : > { %2727 = vmatprep.subr.mxu1 %v2307_v8  ;;  %v2312_v8 = vld [vmem:[%s8319_s3 + $0x230] sm:$0xff]  ;;  %v5437_v42 = vpack.c.bf16 %v4150_v46, %v4142_v7  ;;  %v4172_v7 = vld [vmem:[%s8319_s3 + $0x5f8] sm:$0xff]  ;;  %v5487_v46 = vpack.c.bf16 %v4155_v26, %v4147_v62 }
 0x31f   : > { %2728 = vmatpush1.msra.mxu1 %v2306_v60  ;;  %v4166_v60 = vld [vmem:[%s8319_s3 + $0x5c8] sm:$0xff] }
 0x320   : > { %4117 = vmatmul.mubr.msk.f32.vlgmr.msra.gmra.mrb[24].mxu1 %vm2394_vm9, %v7566_v6  ;;  %5386 = vmatprep.subr.bf16.mxu1 %v5385_v14  ;;  %v5439_v14 = vpack.c.bf16 %v4149_v51, %v4141_v30  ;;  %v4188_v30 = vld [vmem:[%s8319_s3 + $0x678] sm:$0xff] }
 0x321   : > { %5388 = vmatpush1.bf16.msra.mxu1 %v5387_v23  ;;  %2781 = vmatprep.mubr.f32.mxu1 %v5592_v24  ;;  %v5441_v23 = vpack.c.bf16 %v4166_v60, %v4158_v15  ;;  %v4179_v60 = vld [vmem:[%s8319_s3 + $0x630] sm:$0xff] }
 0x322   : > { %5390 = vmatprep.subr.bf16.mxu1 %v5389_v25  ;;  %v4157_v25 = vld [vmem:[%s8319_s3 + $0x580] sm:$0xff] }
 0x323   : > { %v5443_v18 = vpack.c.bf16 %v4165_v5, %v4157_v25  ;;  %v4196_v25 = vld [vmem:[%s8319_s3 + $0x6b8] sm:$0xff]  ;;  %v4195_v5 = vld [vmem:[%s8319_s3 + $0x6b0] sm:$0xff] }
 0x324   : > { %4118 = vmatmul.mubr.msk.f32.gmra.mrb[26].mxu1 %vm2394_vm9, %v7563_v59 }
 0x325   : > { %5392 = vmatpush1.bf16.msra.mxu1 %v5391_v3  ;;  %2852 = vmatprep.mubr.f32.mxu1 %v5592_v24  ;;  %v4173_v3 = vld [vmem:[%s8319_s3 + $0x600] sm:$0xff] }
 0x326   : > { %5394 = vmatprep.subr.bf16.mxu1 %v5393_v32  ;;  %v4181_v32 = vld [vmem:[%s8319_s3 + $0x640] sm:$0xff] }
 0x327   : > { %v5447_v35 = vpack.c.bf16 %v4181_v32, %v4173_v3  ;;  %v3427_v3 = vlaneseq }
 0x329   : > { %5396 = vmatpush1.bf16.msra.mxu1 %v5395_v20  ;;  %v4135_v20 = vld [vmem:[%s8319_s3 + $0x4d0] sm:$0xff]  ;;  %v8166_v32 = vshrl.u32 %v3427_v3, 7 }
 0x32a   : > { %5398 = vmatprep.subr.bf16.mxu1 %v5397_v63  ;;  %v4144_v63 = vld [vmem:[%s8319_s3 + $0x518] sm:$0xff] }
 0x32b   : > { %v5453_v29 = vpack.c.bf16 %v4152_v41, %v4144_v63  ;;  %v3449_v1 = vsub.s32 5, %v8166_v32 }
 0x32d   : > { %5400 = vmatpush1.bf16.msra.mxu1 %v5399_v43  ;;  %v5449_v43 = vpack.c.bf16 %v4136_v16, %v4128_v17 }
 0x32e   : > { %2804 = vmatprep.subr.mxu1 %v2309_v48  ;;  %v5451_v48 = vpack.c.bf16 %v4135_v20, %v4127_v12 }
 0x331   : > { %2805 = vmatpush1.msra.mxu1 %v2308_v53  ;;  %v5457_v53 = vpack.c.bf16 %v4168_v34, %v4160_v4 }
 0x332   : > { %4119 = vmatmul.mubr.msk.f32.vlgmr.msra.gmra.mrb[28].mxu1 %vm2394_vm9, %v7566_v6  ;;  %5418 = vmatprep.subr.bf16.mxu1 %v5417_v39  ;;  %v4159_v39 = vld [vmem:[%s8319_s3 + $0x590] sm:$0xff] }
 0x333   : > { %5420 = vmatpush1.bf16.msra.mxu1 %v5419_v2  ;;  %2858 = vmatprep.mubr.f32.mxu1 %v5592_v24  ;;  %v4167_v2 = vld [vmem:[%s8319_s3 + $0x5d0] sm:$0xff] }
 0x334   : > { %5422 = vmatprep.subr.bf16.mxu1 %v5421_v9  ;;  %v4176_v9 = vld [vmem:[%s8319_s3 + $0x618] sm:$0xff]  ;;  %v5459_v38 = vpack.c.bf16 %v4167_v2, %v4159_v39 }
 0x335   : > { %v5461_v10 = vpack.c.bf16 %v4184_v56, %v4176_v9 }
 0x336   : > { %4120 = vmatmul.mubr.msk.f32.gmra.mrb[30].mxu1 %vm2394_vm9, %v7563_v59 }
 0x337   : > { %5424 = vmatpush1.bf16.msra.mxu1 %v5423_v37  ;;  %3006 = vmatprep.mubr.f32.mxu1 %v5592_v24  ;;  %v4183_v37 = vld [vmem:[%s8319_s3 + $0x650] sm:$0xff] }
 0x338   : > { %5426 = vmatprep.subr.bf16.mxu1 %v5425_v13  ;;  %v5463_v13 = vpack.c.bf16 %v4183_v37, %v4175_v21  ;;  %v3437_v37 = vsub.s32 2, %v8166_v32 }
 0x33b   : > { %5428 = vmatpush1.bf16.msra.mxu1 %v5427_v57  ;;  %v4139_v57 = vld [vmem:[%s8319_s3 + $0x4f0] sm:$0xff] }
 0x33c   : > { %5430 = vmatprep.subr.bf16.mxu1 %v5429_v44  ;;  %v4148_v44 = vld [vmem:[%s8319_s3 + $0x538] sm:$0xff] }
 0x33d   : > { %v5485_v33 = vpack.c.bf16 %v4156_v40, %v4148_v44 }
 0x33f   : > { %5432 = vmatpush1.bf16.msra.mxu1 %v5431_v50  ;;  %v5481_v50 = vpack.c.bf16 %v4140_v31, %v4132_v19  ;;  %v3441_v19 = vsub.s32 3, %v8166_v32 }
 0x340   : > { %2958 = vmatprep.subr.mxu1 %v2313_v47  ;;  %v5483_v47 = vpack.c.bf16 %v4139_v57, %v4131_v11 }
 0x343   : > { %2959 = vmatpush1.msra.mxu1 %v2312_v8  ;;  %v5489_v8 = vpack.c.bf16 %v4172_v7, %v4164_v52 }
 0x344   : > { %4123 = vmatmul.mubr.msk.f32.vlgmr.msra.gmra.mrb[32].mxu1 %vm2394_vm9, %v7566_v6  ;;  %5434 = vmatprep.subr.bf16.mxu1 %v5433_v0  ;;  %v4182_v6 = vld [vmem:[%s8319_s3 + $0x648] sm:$0xff]  ;;  %v4163_v0 = vld [vmem:[%s8319_s3 + $0x5b0] sm:$0xff] }
 0x345   : > { %5436 = vmatpush1.bf16.msra.mxu1 %v5435_v58  ;;  %3012 = vmatprep.mubr.f32.mxu1 %v5592_v24  ;;  %v5445_v45 = vpack.c.bf16 %v4182_v6, %v4174_v54  ;;  %v4171_v58 = vld [vmem:[%s8319_s3 + $0x5f0] sm:$0xff] }
 0x346   : > { %5438 = vmatprep.subr.bf16.mxu1 %v5437_v42  ;;  %v4180_v42 = vld [vmem:[%s8319_s3 + $0x638] sm:$0xff]  ;;  %v5491_v51 = vpack.c.bf16 %v4171_v58, %v4163_v0 }
 0x347   : > { %v5493_v15 = vpack.c.bf16 %v4188_v30, %v4180_v42 }
 0x348   : > { %4124 = vmatmul.mubr.msk.f32.gmra.mrb[34].mxu1 %vm2394_vm9, %v7563_v59  ;;  %v4190_v59 = vld [vmem:[%s8319_s3 + $0x688] sm:$0xff] }
 0x349   : > { %5440 = vmatpush1.bf16.msra.mxu1 %v5439_v14  ;;  %3165 = vmatprep.mubr.f32.mxu1 %v5592_v24  ;;  %v4187_v14 = vld [vmem:[%s8319_s3 + $0x670] sm:$0xff] }
 0x34a   : > { %5442 = vmatprep.subr.bf16.mxu1 %v5441_v23  ;;  %v5495_v23 = vpack.c.bf16 %v4187_v14, %v4179_v60 }
 0x34d   : > { %5444 = vmatpush1.bf16.msra.mxu1 %v5443_v18 }
 0x34e   : > { %5446 = vmatprep.subr.bf16.mxu1 %v5445_v45 }
 0x351   : > { %5448 = vmatpush1.bf16.msra.mxu1 %v5447_v35  ;;  %v8169_v35 = vsub.s32 0, %v8166_v32 }
 0x352   : > { %3117 = vmatprep.subr.mxu1 %v4190_v59  ;;  %v3433_v59 = vsub.s32 1, %v8166_v32 }
 0x355   : > { %3118 = vmatpush1.msra.mxu1 %v4189_v28 }
 0x356   : > { %4197 = vmatmul.mubr.msk.f32.vlgmr.msra.gmra.mrb[24].mxu1 %vm2394_vm9, %v7823_v61  ;;  %5450 = vmatprep.subr.bf16.mxu1 %v5449_v43 }
 0x357   : > { %5452 = vmatpush1.bf16.msra.mxu1 %v5451_v48  ;;  %3171 = vmatprep.mubr.f32.mxu1 %v5592_v24  ;;  %v3445_v48 = vsub.s32 4, %v8166_v32 }
 0x358   : > { %5454 = vmatprep.subr.bf16.mxu1 %v5453_v29 }
 0x35a   : > { %4198 = vmatmul.mubr.msk.f32.gmra.mrb[26].mxu1 %vm2394_vm9, %v7844_v22 }
 0x35b   : > { %5456 = vmatpush1.bf16.msra.mxu1 %v5455_v36  ;;  %3242 = vmatprep.mubr.f32.mxu1 %v5592_v24 }
 0x35c   : > { %5458 = vmatprep.subr.bf16.mxu1 %v5457_v53 }
 0x35f   : > { %5460 = vmatpush1.bf16.msra.mxu1 %v5459_v38 }
 0x360   : > { %5462 = vmatprep.subr.bf16.mxu1 %v5461_v10 }
 0x363   : > { %5464 = vmatpush1.bf16.msra.mxu1 %v5463_v13 }
 0x364   : > { %3194 = vmatprep.subr.mxu1 %v4192_v55 }
 0x367   : > { %3195 = vmatpush1.msra.mxu1 %v4191_v27 }
 0x368   : > { %4199 = vmatmul.mubr.msk.f32.vlgmr.msra.gmra.mrb[28].mxu1 %vm2394_vm9, %v7823_v61  ;;  %5482 = vmatprep.subr.bf16.mxu1 %v5481_v50 }
 0x369   : > { %5484 = vmatpush1.bf16.msra.mxu1 %v5483_v47  ;;  %3248 = vmatprep.mubr.f32.mxu1 %v5592_v24 }
 0x36a   : > { %5486 = vmatprep.subr.bf16.mxu1 %v5485_v33 }
 0x36c   : > { %4200 = vmatmul.mubr.msk.f32.gmra.mrb[30].mxu1 %vm2394_vm9, %v7844_v22 }
 0x36d   : > { %5488 = vmatpush1.bf16.msra.mxu1 %v5487_v46  ;;  %3396 = vmatprep.mubr.f32.mxu1 %v5592_v24 }
 0x36e   : > { %5490 = vmatprep.subr.bf16.mxu1 %v5489_v8 }
 0x371   : > { %5492 = vmatpush1.bf16.msra.mxu1 %v5491_v51 }
 0x372   : > { %5494 = vmatprep.subr.bf16.mxu1 %v5493_v15 }
 0x375   : > { %5496 = vmatpush1.bf16.msra.mxu1 %v5495_v23 }
 0x376   : > { %3348 = vmatprep.subr.mxu1 %v4196_v25 }
 0x379   : > { %3349 = vmatpush1.msra.mxu1 %v4195_v5 }
 0x37a   : > { %4203 = vmatmul.mubr.msk.f32.vlgmr.msra.gmra.mrb[32].mxu1 %vm2394_vm9, %v7823_v61  ;;  %v8175_v61 = vld [vmem:[%s8320_s4] sm:$0xff] }
 0x37b   : > { %3402 = vmatprep.mubr.f32.mxu1 %v5592_v24  ;;  %v3434_v16 = vrot.slane %v8175_v61, %v3433_v59  ;;  %v3446_v36 = vrot.slane %v8175_v61, %v3445_v48  ;;  %v3450_v39 = vrot.slane %v8175_v61, %v3449_v1  ;;  %v3438_v50 = vrot.slane %v8175_v61, %v3437_v37 }
 0x37c   : > { %v3442_v62 = vrot.slane %v8175_v61, %v3441_v19  ;;  %v3453_v59 = vsub.s32 6, %v8166_v32 }
 0x37e   : > { %4204 = vmatmul.mubr.msk.f32.gmra.mrb[34].mxu1 %vm2394_vm9, %v7844_v22  ;;  %v3430_v22 = vrot.slane %v8175_v61, %v8169_v35  ;;  %v3454_v1 = vrot.slane %v8175_v61, %v3453_v59 }
 0x3e2   : > { %v3321_v54 = vpop.f32.mrb[26].mxu0 }
 0x3e3   : > { %v3323_v6 = vpop.f32.mrb[27].mxu0  ;;  %v8200_v21 = vadd.f32 %v3446_v36, %v3321_v54 }
 0x3e4   : > { %v8203_v55 = vadd.f32 %v3450_v39, %v3323_v6 }
 0x3e6   : > { %v3327_v18 = vpop.f32.mrb[28].mxu0 }
 0x3e7   : > { %v3329_v45 = vpop.f32.mrb[29].mxu0  ;;  %v8196_v9 = vadd.f32 %v3446_v36, %v3327_v18 }
 0x3e8   : > { %v8198_v38 = vadd.f32 %v3450_v39, %v3329_v45 }
 0x3e9   : > { %v3511_v11 = vadd.f32 %v8196_v9, %v8200_v21 }
 0x3ea   : > { %v3518_v44 = vadd.f32 %v8198_v38, %v8203_v55 }
 0x3eb   : > { %v3512_v52 = vrot.slane %v3511_v11, 4 }
 0x3ec   : > { %v3519_v7 = vrot.slane %v3518_v44, 4 }
 0x3ed   : > { %v3513_v51 = vadd.f32 %v3512_v52, %v3511_v11 }
 0x3ee   : > { %v3520_v60 = vadd.f32 %v3519_v7, %v3518_v44 }
 0x3ef   : > { %v3514_v5 = vrot.slane %v3513_v51, 2 }
 0x3f0   : > { %v3521_v6 = vrot.slane %v3520_v60, 2 }
 0x429   : > { %v3167_v24 = vpop.f32.mrb[24].mxu1 }
 0x42a   : > { %v3169_v17 = vpop.f32.mrb[25].mxu1  ;;  %v8180_v20 = vadd.f32 %v3430_v22, %v3167_v24 }
 0x42b   : > { %v8184_v28 = vadd.f32 %v3434_v16, %v3169_v17  ;;  %v3457_v17 = vsub.s32 7, %v8166_v32 }
 0x42d   : > { %v3173_v12 = vpop.f32.mrb[26].mxu1  ;;  %v3458_v36 = vrot.slane %v8175_v61, %v3457_v17 }
 0x42e   : > { %v8182_v63 = vadd.f32 %v3430_v22, %v3173_v12  ;;  %v3175_v41 = vpop.f32.mrb[27].mxu1  ;;  %v3515_v22 = vadd.f32 %v3514_v5, %v3513_v51  ;;  %v3522_v12 = vadd.f32 %v3521_v6, %v3520_v60 }
 0x42f   : > { %v8186_v43 = vadd.f32 %v3434_v16, %v3175_v41 }
 0x430   : > { %v3483_v29 = vadd.f32 %v8182_v63, %v8180_v20  ;;  %v3523_v39 = vrot.slane %v3522_v12, 1 }
 0x431   : > { %v3490_v49 = vadd.f32 %v8186_v43, %v8184_v28 }
 0x432   : > { %v3484_v4 = vrot.slane %v3483_v29, 4 }
 0x433   : > { %v3491_v34 = vrot.slane %v3490_v49, 4 }
 0x434   : > { %v3485_v53 = vadd.f32 %v3484_v4, %v3483_v29 }
 0x435   : > { %v3492_v2 = vadd.f32 %v3491_v34, %v3490_v49  ;;  %v3516_v34 = vrot.slane %v3515_v22, 1 }
 0x436   : > { %v3486_v56 = vrot.slane %v3485_v53, 2 }
 0x437   : > { %v3493_v10 = vrot.slane %v3492_v2, 2  ;;  %v3517_v37 = vadd.f32 %v3516_v34, %v3515_v22 }
 0x438   : > { %v3487_v13 = vadd.f32 %v3486_v56, %v3485_v53 }
 0x439   : > { %v3494_v31 = vadd.f32 %v3493_v10, %v3492_v2 }
 0x43a   : > { %v3488_v57 = vrot.slane %v3487_v13, 1 }
 0x43b   : > { %v3244_v40 = vpop.f32.mrb[28].mxu1  ;;  %v3495_v27 = vrot.slane %v3494_v31, 1 }
 0x43c   : > { %v3246_v47 = vpop.f32.mrb[29].mxu1  ;;  %v8211_v33 = vadd.f32 %v3488_v57, %v3487_v13  ;;  %v8220_v8 = vadd.f32 %v3438_v50, %v3244_v40 }
 0x43d   : > { %v8214_v26 = vadd.f32 %v3495_v27, %v3494_v31  ;;  %v8224_v42 = vadd.f32 %v3442_v62, %v3246_v47  ;;  %v3524_v31 = vadd.f32 %v3523_v39, %v3522_v12  ;;  %v5594_v39 = vmov 0  }
 0x43e   : > { %3541 = vrot.lane.b32.xlu0 %v8211_v33, %s5591_s24  ;;  %5577 = vset.pattern.permute.xlu1 %v5594_v39 }
 0x43f   : > { %3547 = vrot.lane.b32.xlu1 %v8214_v26, %s5591_s24  ;;  %v3250_v46 = vpop.f32.mrb[30].mxu1  ;;  %5578 = vset.pattern.permute.xlu0 %v5594_v39 }
 0x440   : > { %v8222_v0 = vadd.f32 %v3438_v50, %v3250_v46  ;;  %v3252_v58 = vpop.f32.mrb[31].mxu1 }
 0x441   : > { %v8226_v30 = vadd.f32 %v3442_v62, %v3252_v58 }
 0x442   : > { %v3497_v15 = vadd.f32 %v8222_v0, %v8220_v8 }
 0x443   : > { %v3504_v14 = vadd.f32 %v8226_v30, %v8224_v42 }
 0x444   : > { %v3498_v23 = vrot.slane %v3497_v15, 4 }
 0x445   : > { %v3505_v25 = vrot.slane %v3504_v14, 4 }
 0x446   : > { %v3499_v54 = vadd.f32 %v3498_v23, %v3497_v15 }
 0x447   : > { %v3506_v18 = vadd.f32 %v3505_v25, %v3504_v14 }
 0x448   : > { %v3500_v45 = vrot.slane %v3499_v54, 2 }
 0x449   : > { %v3507_v3 = vrot.slane %v3506_v18, 2 }
 0x44a   : > { %v3501_v24 = vadd.f32 %v3500_v45, %v3499_v54 }
 0x44b   : > { %v3508_v16 = vadd.f32 %v3507_v3, %v3506_v18 }
 0x44c   : > { %v3502_v41 = vrot.slane %v3501_v24, 1 }
 0x44d   : > { %v3398_v48 = vpop.f32.mrb[32].mxu1  ;;  %v3509_v29 = vrot.slane %v3508_v16, 1 }
 0x44e   : > { %v3400_v49 = vpop.f32.mrb[33].mxu1  ;;  %v3503_v4 = vadd.f32 %v3502_v41, %v3501_v24  ;;  %v8238_v32 = vadd.f32 %v3454_v1, %v3398_v48 }
 0x44f   : > { %v3510_v53 = vadd.f32 %v3509_v29, %v3508_v16  ;;  %v8242_v13 = vadd.f32 %v3458_v36, %v3400_v49 }
 0x450   : > { %3553 = vrot.lane.b32.xlu0 %v3503_v4, %s5591_s24 }
 0x451   : > { %3559 = vrot.lane.b32.xlu1 %v3510_v53, %s5591_s24  ;;  %v3404_v2 = vpop.f32.mrb[34].mxu1 }
 0x452   : > { %v8240_v56 = vadd.f32 %v3454_v1, %v3404_v2  ;;  %v3406_v10 = vpop.f32.mrb[35].mxu1  ;;  %v3598_v2 = vld [vmem:[%s8322_s6] sm:$0x3] }
 0x453   : > { %v8244_v19 = vadd.f32 %v3458_v36, %v3406_v10 }
 0x454   : > { %v3525_v61 = vadd.f32 %v8240_v56, %v8238_v32  ;;  %3565 = vrot.lane.b32.xlu0 %v3517_v37, %s5591_s24 }
 0x455   : > { %v3532_v11 = vadd.f32 %v8244_v19, %v8242_v13  ;;  %3571 = vrot.lane.b32.xlu1 %v3524_v31, %s5591_s24 }
 0x456   : > { %v3526_v57 = vrot.slane %v3525_v61, 4 }
 0x457   : > { %v3533_v44 = vrot.slane %v3532_v11, 4 }
 0x458   : > { %v3527_v40 = vadd.f32 %v3526_v57, %v3525_v61 }
 0x459   : > { %v3534_v27 = vadd.f32 %v3533_v44, %v3532_v11  ;;  %v3603_v11 = vld [vmem:[%s8323_s7] sm:$0x3] }
 0x45a   : > { %v3528_v50 = vrot.slane %v3527_v40, 2 }
 0x45b   : > { %v3535_v47 = vrot.slane %v3534_v27, 2 }
 0x45c   : > { %v3529_v62 = vadd.f32 %v3528_v50, %v3527_v40 }
 0x45d   : > { %v3536_v52 = vadd.f32 %v3535_v47, %v3534_v27 }
 0x45e   : > { %v3530_v7 = vrot.slane %v3529_v62, 1 }
 0x45f   : > { %v3537_v46 = vrot.slane %v3536_v52, 1 }
 0x460   : > { %v3531_v58 = vadd.f32 %v3530_v7, %v3529_v62  ;;  %v3617_v7 = vld [vmem:[%s8324_s8] sm:$0x1] }
 0x461   : > { %v3538_v51 = vadd.f32 %v3537_v46, %v3536_v52 }
 0x462   : > { %3577 = vrot.lane.b32.xlu0 %v3531_v58, %s5591_s24 }
 0x463   : > { %3583 = vrot.lane.b32.xlu1 %v3538_v51, %s5591_s24 }
 0x4b0   : > { %v3542_v15 = vpop.permute.xlu0 %3541 }
 0x4b1   : > { %v3544_v60 = vadd.f32 %v3542_v15, %v8211_v33  ;;  %v3548_v23 = vpop.permute.xlu1 %3547 }
 0x4b3   : > { %v3545_v14 = vadd.f32 %v3544_v60, %v8214_v26 }
 0x4b5   : > { %v3550_v25 = vadd.f32 %v3548_v23, %v3545_v14 }
 0x4b7   : > { %v3551_v5 = vadd.f32 %v3550_v25, %v3503_v4  ;;  %v3588_v4 = vld [vmem:[%s8321_s5] sm:$0x3] }
 0x4c2   : > { %v3554_v54 = vpop.permute.xlu0 %3553 }
 0x4c3   : > { %v3556_v6 = vadd.f32 %v3554_v54, %v3551_v5  ;;  %v3560_v45 = vpop.permute.xlu1 %3559 }
 0x4c5   : > { %v3557_v18 = vadd.f32 %v3556_v6, %v3510_v53 }
 0x4c6   : > { %v3566_v24 = vpop.permute.xlu0 %3565 }
 0x4c7   : > { %v3562_v3 = vadd.f32 %v3560_v45, %v3557_v18  ;;  %v3572_v16 = vpop.permute.xlu1 %3571 }
 0x4c9   : > { %v3563_v59 = vadd.f32 %v3562_v3, %v3517_v37 }
 0x4cb   : > { %v3568_v22 = vadd.f32 %v3566_v24, %v3563_v59 }
 0x4cd   : > { %v3569_v17 = vadd.f32 %v3568_v22, %v3524_v31 }
 0x4cf   : > { %v3574_v12 = vadd.f32 %v3572_v16, %v3569_v17 }
 0x4d1   : > { %v3575_v41 = vadd.f32 %v3574_v12, %v3531_v58 }
 0x4d4   : > { %v3578_v48 = vpop.permute.xlu0 %3577 }
 0x4d5   : > { %v3580_v29 = vadd.f32 %v3578_v48, %v3575_v41  ;;  %v3584_v1 = vpop.permute.xlu1 %3583 }
 0x4d7   : > { %v3581_v33 = vadd.f32 %v3580_v29, %v3538_v51 }
 0x4d9   : > { %v3586_v26 = vadd.f32 %v3584_v1, %v3581_v33 }
 0x4db   : > { %v3587_v49 = vmul.f32 0.00390625, %v3586_v26 }
 0x4dd   : > { %v3592_v34 = vrot.slane %v3587_v49, %v8169_v35 }
 0x4df   : > { %v3593_v36 = vmul.f32 %v3592_v34, %v3588_v4 }
 0x4e1   : > { %v3595_v53 = vsel %vm3594_vm10, %v3593_v36, 0.0 }
 0x4e2   : > { %3596 = vadd.xlane.f32.xlu0 %v3595_v53 }
 0x56f   : > { %v3597_v10 = vpop.xlane.xlu0 %3596 }
 0x570   : > { %v3599_v37 = vadd.f32 %v3598_v2, %v3597_v10 }
 0x572   : > { %v3601_v31 = vmul.f32 0.2, %v3599_v37  ;;  %vm3600_vm11 = vcmp.ge.f32.partialorder %v3599_v37, 0.0 }
 0x574   : > { %v3602_v61 = vsel %vm3600_vm11, %v3599_v37, %v3601_v31 }
 0x575   : > { %3606 = vperm.xlu1 %5577, %v3602_v61  }
 0x5f4   : > { %v3607_v57 = vpop.permute.xlu1 %3606 }
 0x5f5   : > { %v3609_v44 = vmul.f32 %v3607_v57, %v3603_v11 }
 0x5f7   : > { %v3610_v40 = vsel %vm3594_vm10, %v3609_v44, 0.0 }
 0x5f8   : > { %v3611_v27 = vrot.slane %v3610_v40, 4 }
 0x5fa   : > { %v3612_v50 = vadd.f32 %v3611_v27, %v3610_v40 }
 0x5fc   : > { %v3613_v47 = vrot.slane %v3612_v50, 2 }
 0x5fe   : > { %v3614_v62 = vadd.f32 %v3613_v47, %v3612_v50 }
 0x600   : > { %v3615_v52 = vrot.slane %v3614_v62, 1 }
 0x602   : > { %v3616_v46 = vadd.f32 %v3615_v52, %v3614_v62 }
 0x604   : > { %v3618_v58 = vadd.f32 %v3617_v7, %v3616_v46 }
 0x606   : > { %v4205_v51 = vmul.f32 -1.442695, %v3618_v58 }
 0x608   : > { %5579 = vpow2.f32 %v4205_v51 }
 0x612   : > { %v5580_v15 = vpop.eup %5579 }
 0x613   : > { %v3622_v60 = vadd.f32 1.0, %v5580_v15 }
 0x615   : > { %5581 = vrcp.f32 %v3622_v60 }
 0x61f   : > { %v5582_v14 = vpop.eup %5581 }
 0x620   : > { %3626 = vrot.lane.b32.xlu1 %v5582_v14, %s5591_s24 }
 0x692   : > { %v3627_v23 = vpop.permute.xlu1 %3626 }
 0x693   : > { %v3629_v25 = vsel %vm397_vm0, %v5582_v14, %v3627_v23 }
 0x694   : > { %v3633_v5 = vrot.slane %v3629_v25, %v8169_v35 }
 0x696   : > { %v3634_v54 = vmul.f32 %v3633_v5, %v8180_v20  ;;  %v3635_v6 = vmul.f32 %v3633_v5, %v8184_v28  ;;  %v3636_v18 = vmul.f32 %v3633_v5, %v8220_v8  ;;  %v3637_v45 = vmul.f32 %v3633_v5, %v8224_v42 }
 0x697   : > { %v3638_v35 = vmul.f32 %v3633_v5, %v8200_v21  ;;  %v3639_v3 = vmul.f32 %v3633_v5, %v8203_v55  ;;  %v3640_v59 = vmul.f32 %v3633_v5, %v8238_v32  ;;  %v3641_v24 = vmul.f32 %v3633_v5, %v8242_v13 }
 0x698   : > { %v3642_v20 = vmul.f32 %v3633_v5, %v8182_v63  ;;  %v3643_v28 = vmul.f32 %v3633_v5, %v8186_v43  ;;  %v3644_v8 = vmul.f32 %v3633_v5, %v8222_v0  ;;  %v3645_v21 = vmul.f32 %v3633_v5, %v8226_v30  ;;  %3650 = vst [vmem:[%s8279_s19] sm:$0xff] %v3634_v54 }
 0x699   : > { %3651 = vst [vmem:[%s8279_s19 + $0x8] sm:$0xff] %v3635_v6  ;;  %3652 = vst [vmem:[%s8279_s19 + $0x10] sm:$0xff] %v3636_v18  ;;  %v3646_v63 = vmul.f32 %v3633_v5, %v8196_v9  ;;  %v3647_v55 = vmul.f32 %v3633_v5, %v8198_v38  ;;  %v3648_v43 = vmul.f32 %v3633_v5, %v8240_v56 }
 0x69a   : > { %3653 = vst [vmem:[%s8279_s19 + $0x18] sm:$0xff] %v3637_v45  ;;  %v3649_v0 = vmul.f32 %v3633_v5, %v8244_v19  ;;  %3654 = vst [vmem:[%s8279_s19 + $0x20] sm:$0xff] %v3638_v35 }
 0x69b   : > { %3655 = vst [vmem:[%s8279_s19 + $0x28] sm:$0xff] %v3639_v3  ;;  %3656 = vst [vmem:[%s8279_s19 + $0x30] sm:$0xff] %v3640_v59 }
 0x69c   : > { %3657 = vst [vmem:[%s8279_s19 + $0x38] sm:$0xff] %v3641_v24  ;;  %3658 = vst [vmem:[%s8279_s19 + $0x40] sm:$0xff] %v3642_v20 }
 0x69d   : > { %3659 = vst [vmem:[%s8279_s19 + $0x48] sm:$0xff] %v3643_v28  ;;  %3660 = vst [vmem:[%s8279_s19 + $0x50] sm:$0xff] %v3644_v8 }
 0x69e   : > { %3661 = vst [vmem:[%s8279_s19 + $0x58] sm:$0xff] %v3645_v21  ;;  %3662 = vst [vmem:[%s8279_s19 + $0x60] sm:$0xff] %v3646_v63 }
 0x69f   : > { %3663 = vst [vmem:[%s8279_s19 + $0x68] sm:$0xff] %v3647_v55  ;;  %3664 = vst [vmem:[%s8279_s19 + $0x70] sm:$0xff] %v3648_v43 }
 0x6a0   : > { %3665 = vst [vmem:[%s8279_s19 + $0x78] sm:$0xff] %v3649_v0 }
 0x6a1 PF: > { %s19_s30 = sadd.s32 1, %s5589_s30  }
 0x6a2   : > { %p16_p4 = scmp.ge.s32.totalorder %s19_s30, 4  }
 0x6a4   :  { %18 = sbr.rel (!%p16_p4) target bundleno = 1 (0x1), region = 90 }

</bundles_post_ra>
